<compile_context>
chip_gen: v5e
topology: v5e:2x2
jax: 0.10.0
libtpu: 0.0.40
codegen_flags: <defaults>
</compile_context>

<pallas_src>
import jax
import jax.numpy as jnp
from jax.experimental import pallas as pl
from jax.experimental.pallas import tpu as pltpu

NUM_CLASSES = 7
NUM_CLASSES_PAD = 128          # lane-dense logits, sliced back to 7 in the wrapper

_COMPILER_PARAMS = pltpu.CompilerParams(
    dimension_semantics=("parallel",),
    vmem_limit_bytes=32 * 1024 * 1024,
)


# --------------------------------------------------------------------------- kernels
def _stem_kernel(xs_ref, w_ref, b_ref, o_ref):
    # 3x3 stride-2 pad-1 conv + swish; one image per grid step.
    #   xs_ref: (1, Ho+1, Wo+1, 4*Cin) space-to-depth input, zero-padded top/left (bf16)
    #   w_ref : (4, 4*Cin, Cs) per-window-tap weights (bf16)   b_ref: (1, Cs) f32
    #   o_ref : (Ho*Wo, Cs) bf16
    _, Hp, Wp, C4 = xs_ref.shape
    Ho, Wo = Hp - 1, Wp - 1
    R, Cs = o_ref.shape

    acc = jnp.zeros((R, Cs), jnp.float32)
    for di in range(2):
        for dj in range(2):
            tap = xs_ref[0, di:di + Ho, dj:dj + Wo, :].reshape(R, C4)   # unit stride
            acc += jnp.dot(tap, w_ref[di * 2 + dj],
                           preferred_element_type=jnp.float32)
    y = acc + b_ref[...]
    y = y * jax.nn.sigmoid(y)                                  # swish, f32 math
    o_ref[...] = y.astype(o_ref.dtype)


def _mbconv_kernel(x_ref, exp_w_ref, exp_b_ref, dw_w_ref,
                   se_w1_ref, se_b1_ref, se_w2_ref, se_b2_ref,
                   proj_w_ref, proj_b_ref, o_ref, pad_ref):
    # Fused MBConv: expand 1x1 -> depthwise 3x3 -> SE -> project 1x1 + residual.
    # One image per grid step; all intermediates stay in VMEM.
    #   x_ref : (Ho*Wo, Cs) bf16      pad_ref: VMEM scratch (Ho+2, Wo+2, Ce) f32
    R, Cs = x_ref.shape
    Hp, Wp, Ce = pad_ref.shape
    Ho, Wo = Hp - 2, Wp - 2

    x = x_ref[...]                                             # bf16 (R, Cs), residual

    # ---- expand 1x1 conv + swish
    e = jnp.dot(x, exp_w_ref[...], preferred_element_type=jnp.float32)
    e = e + exp_b_ref[...]
    e = e * jax.nn.sigmoid(e)                                  # (R, Ce) f32

    # ---- depthwise 3x3 (stride 1, pad 1) + swish via zero-padded VMEM scratch
    pad_ref[...] = jnp.zeros_like(pad_ref)
    pad_ref[1:Ho + 1, 1:Wo + 1, :] = e.reshape(Ho, Wo, Ce)
    acc = jnp.zeros((Ho, Wo, Ce), jnp.float32)
    for i in range(3):
        for j in range(3):
            acc = acc + pad_ref[i:i + Ho, j:j + Wo, :] * dw_w_ref[i * 3 + j, :]
    dw = acc * jax.nn.sigmoid(acc)                             # (Ho, Wo, Ce) f32
    dw2 = dw.reshape(R, Ce)

    # ---- squeeze-and-excite: global pool -> FC -> swish -> FC -> sigmoid gate
    pooled = jnp.mean(dw2, axis=0, keepdims=True)              # (1, Ce) f32
    s = jnp.dot(pooled.astype(jnp.bfloat16), se_w1_ref[...],
                preferred_element_type=jnp.float32) + se_b1_ref[...]
    s = s * jax.nn.sigmoid(s)
    g = jnp.dot(s.astype(jnp.bfloat16), se_w2_ref[...],
                preferred_element_type=jnp.float32) + se_b2_ref[...]
    g = jax.nn.sigmoid(g)                                      # (1, Ce) f32
    gated = dw2 * g                                            # channel gate

    # ---- project 1x1 conv + residual (residual block already resident in VMEM)
    p = jnp.dot(gated.astype(jnp.bfloat16), proj_w_ref[...],
                preferred_element_type=jnp.float32) + proj_b_ref[...]
    o_ref[...] = (p + x.astype(jnp.float32)).astype(o_ref.dtype)


def _head_pool_fc_kernel(x_ref, hw_ref, hb_ref, fw_ref, fb_ref, o_ref):
    # Fused head 1x1 conv + swish + global average pool + classifier Linear.
    #   x_ref: (Ho*Wo, Cs) bf16     o_ref: (1, 1, NUM_CLASSES_PAD) f32
    y = jnp.dot(x_ref[...], hw_ref[...], preferred_element_type=jnp.float32)
    y = y + hb_ref[...]
    y = y * jax.nn.sigmoid(y)                                  # (R, Chead) f32
    pooled = jnp.mean(y, axis=0, keepdims=True)                # (1, Chead)
    logits = jnp.dot(pooled.astype(jnp.bfloat16), fw_ref[...],
                     preferred_element_type=jnp.float32) + fb_ref[...]
    o_ref[...] = logits.reshape(o_ref.shape)


# --------------------------------------------------------------------------- forward
def emotion_efficientnet_forward(params, x_nchw):
    """PyTorch semantics: NCHW float32 input -> (N, 7) float32 logits."""
    x = jnp.transpose(x_nchw, (0, 2, 3, 1)).astype(jnp.float32)   # -> NHWC
    N, H, W, Cin = x.shape
    # TODO(synk): PyTorch Conv2d(k=3, s=2, p=1) handles odd H/W via floor((H-1)/2)+1;
    # the space-to-depth formulation below assumes even H/W (true for b4's 380 input).
    assert H % 2 == 0 and W % 2 == 0
    Ho, Wo = H // 2, W // 2
    R = Ho * Wo
    C4 = 4 * Cin
    Cs = params["exp_w"].shape[0]
    Ce = params["exp_w"].shape[1]

    # ---- stem input prep: fold the stride-2 phases into channels (pure layout op,
    #      no 9x im2col), zero-pad one block on top/left so the in-kernel 2x2 window
    #      covers the 3x3 stride-2 receptive field.
    xs = (x.reshape(N, Ho, 2, Wo, 2, Cin)
            .transpose(0, 1, 3, 2, 4, 5)
            .reshape(N, Ho, Wo, C4))
    xs_p = jnp.pad(xs, ((0, 0), (1, 0), (1, 0), (0, 0))).astype(jnp.bfloat16)

    stem = pl.pallas_call(
        _stem_kernel,
        out_shape=jax.ShapeDtypeStruct((N * R, Cs), jnp.bfloat16),
        grid=(N,),
        in_specs=[
            pl.BlockSpec((1, Ho + 1, Wo + 1, C4), lambda n: (n, 0, 0, 0)),
            pl.BlockSpec((4, C4, Cs), lambda n: (0, 0, 0)),
            pl.BlockSpec((1, Cs), lambda n: (0, 0)),
        ],
        out_specs=pl.BlockSpec((R, Cs), lambda n: (n, 0)),
        compiler_params=_COMPILER_PARAMS,
    )(xs_p, params["stem_w"], params["stem_b"])

    # ---- fused MBConv block (expand -> depthwise -> SE -> project + residual)
    block = pl.pallas_call(
        _mbconv_kernel,
        out_shape=jax.ShapeDtypeStruct((N * R, Cs), jnp.bfloat16),
        grid=(N,),
        in_specs=[
            pl.BlockSpec((R, Cs), lambda n: (n, 0)),
            pl.BlockSpec(params["exp_w"].shape, lambda n: (0, 0)),
            pl.BlockSpec(params["exp_b"].shape, lambda n: (0, 0)),
            pl.BlockSpec(params["dw_w"].shape, lambda n: (0, 0)),
            pl.BlockSpec(params["se_w1"].shape, lambda n: (0, 0)),
            pl.BlockSpec(params["se_b1"].shape, lambda n: (0, 0)),
            pl.BlockSpec(params["se_w2"].shape, lambda n: (0, 0)),
            pl.BlockSpec(params["se_b2"].shape, lambda n: (0, 0)),
            pl.BlockSpec(params["proj_w"].shape, lambda n: (0, 0)),
            pl.BlockSpec(params["proj_b"].shape, lambda n: (0, 0)),
        ],
        out_specs=pl.BlockSpec((R, Cs), lambda n: (n, 0)),
        scratch_shapes=[pltpu.VMEM((Ho + 2, Wo + 2, Ce), jnp.float32)],
        compiler_params=_COMPILER_PARAMS,
    )(stem, params["exp_w"], params["exp_b"], params["dw_w"],
      params["se_w1"], params["se_b1"], params["se_w2"], params["se_b2"],
      params["proj_w"], params["proj_b"])

    # ---- fused head 1x1 conv + swish + global average pool + Linear(in_features, 7)
    logits_pad = pl.pallas_call(
        _head_pool_fc_kernel,
        out_shape=jax.ShapeDtypeStruct((N, 1, NUM_CLASSES_PAD), jnp.float32),
        grid=(N,),
        in_specs=[
            pl.BlockSpec((R, Cs), lambda n: (n, 0)),
            pl.BlockSpec(params["head_w"].shape, lambda n: (0, 0)),
            pl.BlockSpec(params["head_b"].shape, lambda n: (0, 0)),
            pl.BlockSpec(params["fc_w"].shape, lambda n: (0, 0)),
            pl.BlockSpec(params["fc_b"].shape, lambda n: (0, 0)),
        ],
        out_specs=pl.BlockSpec((1, 1, NUM_CLASSES_PAD), lambda n: (n, 0, 0)),
        compiler_params=_COMPILER_PARAMS,
    )(block, params["head_w"], params["head_b"], params["fc_w"], params["fc_b"])

    return logits_pad[:, 0, :NUM_CLASSES]


# --------------------------------------------------------------------------- params
def init_params(key, cin=3, c_stem=128, c_exp=256, c_se=128, c_head=256,
                num_classes=NUM_CLASSES):
    ks = jax.random.split(key, 15)

    def w(k, shape, scale=0.1, dtype=jnp.float32):
        return (scale * jax.random.normal(k, shape)).astype(dtype)

    # stem: 3x3 stride-2 conv weight re-expressed over the space-to-depth layout as
    # 4 window taps x (2x2 phases x cin) -> c_stem  (zero where the 2x2 window position
    # does not correspond to a valid 3x3 tap).
    w3 = w(ks[0], (3, 3, cin, c_stem))
    w4 = jnp.zeros((2, 2, 2, 2, cin, c_stem), jnp.float32)
    for di in range(2):
        for dj in range(2):
            for pr in range(2):
                for pc in range(2):
                    ki, kj = 2 * di - 1 + pr, 2 * dj - 1 + pc
                    if 0 <= ki < 3 and 0 <= kj < 3:
                        w4 = w4.at[di, dj, pr, pc].set(w3[ki, kj])
    stem_w = w4.reshape(4, 4 * cin, c_stem).astype(jnp.bfloat16)

    # classifier: Linear(in_features, 7), zero-padded to 128 lane-dense output columns
    fc_w7 = w(ks[13], (c_head, num_classes))
    fc_b7 = w(ks[14], (1, num_classes))
    fc_w = jnp.zeros((c_head, NUM_CLASSES_PAD), jnp.float32).at[:, :num_classes].set(fc_w7)
    fc_b = jnp.zeros((1, NUM_CLASSES_PAD), jnp.float32).at[:, :num_classes].set(fc_b7)

    return dict(
        stem_w=stem_w,
        stem_b=w(ks[1], (1, c_stem)),
        exp_w=w(ks[2], (c_stem, c_exp), dtype=jnp.bfloat16),
        exp_b=w(ks[3], (1, c_exp)),
        dw_w=w(ks[4], (9, c_exp)),
        se_w1=w(ks[5], (c_exp, c_se), dtype=jnp.bfloat16),
        se_b1=w(ks[6], (1, c_se)),
        se_w2=w(ks[7], (c_se, c_exp), dtype=jnp.bfloat16),
        se_b2=w(ks[8], (1, c_exp)),
        proj_w=w(ks[9], (c_exp, c_stem), dtype=jnp.bfloat16),
        proj_b=w(ks[10], (1, c_stem)),
        head_w=w(ks[11], (c_stem, c_head), dtype=jnp.bfloat16),
        head_b=w(ks[12], (1, c_head)),
        fc_w=fc_w.astype(jnp.bfloat16),
        fc_b=fc_b,
    )


if __name__ == "__main__":
    key = jax.random.PRNGKey(0)
    pkey, xkey = jax.random.split(key)
    params = init_params(pkey)

    # small shapes consistent with the module's forward: NCHW image batch
    x = jax.random.normal(xkey, (2, 3, 16, 16), dtype=jnp.float32)

    logits = jax.jit(emotion_efficientnet_forward)(params, x)
    jax.block_until_ready(logits)

    assert logits.shape == (2, NUM_CLASSES), logits.shape
    assert logits.dtype == jnp.float32
    assert bool(jnp.all(jnp.isfinite(logits)))
    print("KERNEL_OK")
</pallas_src>

<mosaic_0001>
module attributes {stable_mosaic.version = 11 : i64} {
  func.func @_stem_kernel(%arg0: i32, %arg1: memref<1x9x9x12xbf16, #tpu.memory_space<vmem>>, %arg2: memref<4x12x128xbf16, #tpu.memory_space<vmem>>, %arg3: memref<1x128xf32, #tpu.memory_space<vmem>>, %arg4: memref<64x128xbf16, #tpu.memory_space<vmem>>) attributes {dimension_semantics = [#tpu.dimension_semantics<parallel>], iteration_bounds = array<i64: 2>, scalar_prefetch = 0 : i64, scratch_operands = 0 : i64, tpu.core_type = #tpu.core_type<tc>, window_params = [{transform_indices = @transform_0, window_bounds = array<i64: 1, 9, 9, 12>}, {pipeline_mode = #tpu.pipeline_mode<synchronous>, transform_indices = @transform_1, window_bounds = array<i64: 4, 12, 128>}, {pipeline_mode = #tpu.pipeline_mode<synchronous>, transform_indices = @transform_2, window_bounds = array<i64: 1, 128>}, {transform_indices = @transform_3, window_bounds = array<i64: 64, 128>}]} {
    %cst = arith.constant 0.000000e+00 : f32
    %0 = vector.broadcast %cst : f32 to vector<64x128xf32>
    %c0 = arith.constant 0 : index
    %c0_0 = arith.constant 0 : index
    %c0_1 = arith.constant 0 : index
    %c0_2 = arith.constant 0 : index
    %1 = vector.load %arg1[%c0, %c0_0, %c0_1, %c0_2] : memref<1x9x9x12xbf16, #tpu.memory_space<vmem>>, vector<1x8x8x12xbf16>
    %2 = vector.shape_cast %1 : vector<1x8x8x12xbf16> to vector<8x8x12xbf16>
    %3 = vector.shape_cast %2 : vector<8x8x12xbf16> to vector<64x12xbf16>
    %c0_3 = arith.constant 0 : index
    %c0_4 = arith.constant 0 : index
    %c0_5 = arith.constant 0 : index
    %4 = vector.load %arg2[%c0_3, %c0_4, %c0_5] : memref<4x12x128xbf16, #tpu.memory_space<vmem>>, vector<1x12x128xbf16>
    %5 = vector.shape_cast %4 : vector<1x12x128xbf16> to vector<12x128xbf16>
    %cst_6 = arith.constant dense<0.000000e+00> : vector<64x128xf32>
    %6 = tpu.matmul %3, %5, %cst_6 {dimension_numbers = #tpu.dot_dimension_numbers<[1], [0], [0], [1], [0, 0, 1, 1], [], []>} : vector<64x12xbf16>, vector<12x128xbf16>, vector<64x128xf32> -> vector<64x128xf32>
    %7 = arith.addf %0, %6 : vector<64x128xf32>
    %c0_7 = arith.constant 0 : index
    %c0_8 = arith.constant 0 : index
    %c1 = arith.constant 1 : index
    %c0_9 = arith.constant 0 : index
    %8 = vector.load %arg1[%c0_7, %c0_8, %c1, %c0_9] : memref<1x9x9x12xbf16, #tpu.memory_space<vmem>>, vector<1x8x8x12xbf16>
    %9 = vector.shape_cast %8 : vector<1x8x8x12xbf16> to vector<8x8x12xbf16>
    %10 = vector.shape_cast %9 : vector<8x8x12xbf16> to vector<64x12xbf16>
    %c1_10 = arith.constant 1 : index
    %c0_11 = arith.constant 0 : index
    %c0_12 = arith.constant 0 : index
    %11 = vector.load %arg2[%c1_10, %c0_11, %c0_12] : memref<4x12x128xbf16, #tpu.memory_space<vmem>>, vector<1x12x128xbf16>
    %12 = vector.shape_cast %11 : vector<1x12x128xbf16> to vector<12x128xbf16>
    %cst_13 = arith.constant dense<0.000000e+00> : vector<64x128xf32>
    %13 = tpu.matmul %10, %12, %cst_13 {dimension_numbers = #tpu.dot_dimension_numbers<[1], [0], [0], [1], [0, 0, 1, 1], [], []>} : vector<64x12xbf16>, vector<12x128xbf16>, vector<64x128xf32> -> vector<64x128xf32>
    %14 = arith.addf %7, %13 : vector<64x128xf32>
    %c0_14 = arith.constant 0 : index
    %c1_15 = arith.constant 1 : index
    %c0_16 = arith.constant 0 : index
    %c0_17 = arith.constant 0 : index
    %15 = vector.load %arg1[%c0_14, %c1_15, %c0_16, %c0_17] : memref<1x9x9x12xbf16, #tpu.memory_space<vmem>>, vector<1x8x8x12xbf16>
    %16 = vector.shape_cast %15 : vector<1x8x8x12xbf16> to vector<8x8x12xbf16>
    %17 = vector.shape_cast %16 : vector<8x8x12xbf16> to vector<64x12xbf16>
    %c2 = arith.constant 2 : index
    %c0_18 = arith.constant 0 : index
    %c0_19 = arith.constant 0 : index
    %18 = vector.load %arg2[%c2, %c0_18, %c0_19] : memref<4x12x128xbf16, #tpu.memory_space<vmem>>, vector<1x12x128xbf16>
    %19 = vector.shape_cast %18 : vector<1x12x128xbf16> to vector<12x128xbf16>
    %cst_20 = arith.constant dense<0.000000e+00> : vector<64x128xf32>
    %20 = tpu.matmul %17, %19, %cst_20 {dimension_numbers = #tpu.dot_dimension_numbers<[1], [0], [0], [1], [0, 0, 1, 1], [], []>} : vector<64x12xbf16>, vector<12x128xbf16>, vector<64x128xf32> -> vector<64x128xf32>
    %21 = arith.addf %14, %20 : vector<64x128xf32>
    %c0_21 = arith.constant 0 : index
    %c1_22 = arith.constant 1 : index
    %c1_23 = arith.constant 1 : index
    %c0_24 = arith.constant 0 : index
    %22 = vector.load %arg1[%c0_21, %c1_22, %c1_23, %c0_24] : memref<1x9x9x12xbf16, #tpu.memory_space<vmem>>, vector<1x8x8x12xbf16>
    %23 = vector.shape_cast %22 : vector<1x8x8x12xbf16> to vector<8x8x12xbf16>
    %24 = vector.shape_cast %23 : vector<8x8x12xbf16> to vector<64x12xbf16>
    %c3 = arith.constant 3 : index
    %c0_25 = arith.constant 0 : index
    %c0_26 = arith.constant 0 : index
    %25 = vector.load %arg2[%c3, %c0_25, %c0_26] : memref<4x12x128xbf16, #tpu.memory_space<vmem>>, vector<1x12x128xbf16>
    %26 = vector.shape_cast %25 : vector<1x12x128xbf16> to vector<12x128xbf16>
    %cst_27 = arith.constant dense<0.000000e+00> : vector<64x128xf32>
    %27 = tpu.matmul %24, %26, %cst_27 {dimension_numbers = #tpu.dot_dimension_numbers<[1], [0], [0], [1], [0, 0, 1, 1], [], []>} : vector<64x12xbf16>, vector<12x128xbf16>, vector<64x128xf32> -> vector<64x128xf32>
    %28 = arith.addf %21, %27 : vector<64x128xf32>
    %c0_28 = arith.constant 0 : index
    %c0_29 = arith.constant 0 : index
    %29 = vector.load %arg3[%c0_28, %c0_29] : memref<1x128xf32, #tpu.memory_space<vmem>>, vector<1x128xf32>
    %30 = vector.broadcast %29 : vector<1x128xf32> to vector<64x128xf32>
    %31 = arith.addf %28, %30 : vector<64x128xf32>
    %32 = arith.negf %31 : vector<64x128xf32>
    %33 = math.exp %32 : vector<64x128xf32>
    %cst_30 = arith.constant 1.000000e+00 : f32
    %34 = vector.broadcast %cst_30 : f32 to vector<64x128xf32>
    %35 = arith.addf %34, %33 : vector<64x128xf32>
    %36 = arith.divf %34, %35 : vector<64x128xf32>
    %37 = arith.mulf %31, %36 : vector<64x128xf32>
    %38 = arith.truncf %37 : vector<64x128xf32> to vector<64x128xbf16>
    %c0_31 = arith.constant 0 : index
    %c0_32 = arith.constant 0 : index
    %39 = vector.load %arg4[%c0_31, %c0_32] : memref<64x128xbf16, #tpu.memory_space<vmem>>, vector<64x128xbf16>
    tpu.vector_store %arg4[%c0_31, %c0_32], %38 {strides = array<i32>} : memref<64x128xbf16, #tpu.memory_space<vmem>>, vector<64x128xbf16>,
    return
  }
  func.func @transform_0(%arg0: i32) -> (i32, i32, i32, i32) {
    %c0_i32 = arith.constant 0 : i32
    %c0_i32_0 = arith.constant 0 : i32
    %c0_i32_1 = arith.constant 0 : i32
    %c0_i32_2 = arith.constant 0 : i32
    return %arg0, %c0_i32, %c0_i32_0, %c0_i32_1 : i32, i32, i32, i32
  }
  func.func @transform_1(%arg0: i32) -> (i32, i32, i32) {
    %c0_i32 = arith.constant 0 : i32
    %c0_i32_0 = arith.constant 0 : i32
    %c0_i32_1 = arith.constant 0 : i32
    %c0_i32_2 = arith.constant 0 : i32
    return %c0_i32, %c0_i32_0, %c0_i32_1 : i32, i32, i32
  }
  func.func @transform_2(%arg0: i32) -> (i32, i32) {
    %c0_i32 = arith.constant 0 : i32
    %c0_i32_0 = arith.constant 0 : i32
    %c0_i32_1 = arith.constant 0 : i32
    return %c0_i32, %c0_i32_0 : i32, i32
  }
  func.func @transform_3(%arg0: i32) -> (i32, i32) {
    %c0_i32 = arith.constant 0 : i32
    %c0_i32_0 = arith.constant 0 : i32
    return %arg0, %c0_i32 : i32, i32
  }
}

module attributes {stable_mosaic.version = 11 : i64} {
  func.func @_head_pool_fc_kernel(%arg0: i32, %arg1: memref<64x128xbf16, #tpu.memory_space<vmem>>, %arg2: memref<128x256xbf16, #tpu.memory_space<vmem>>, %arg3: memref<1x256xf32, #tpu.memory_space<vmem>>, %arg4: memref<256x128xbf16, #tpu.memory_space<vmem>>, %arg5: memref<1x128xf32, #tpu.memory_space<vmem>>, %arg6: memref<1x1x128xf32, #tpu.memory_space<vmem>>) attributes {dimension_semantics = [#tpu.dimension_semantics<parallel>], iteration_bounds = array<i64: 2>, scalar_prefetch = 0 : i64, scratch_operands = 0 : i64, tpu.core_type = #tpu.core_type<tc>, window_params = [{transform_indices = @transform_0, window_bounds = array<i64: 64, 128>}, {pipeline_mode = #tpu.pipeline_mode<synchronous>, transform_indices = @transform_1, window_bounds = array<i64: 128, 256>}, {pipeline_mode = #tpu.pipeline_mode<synchronous>, transform_indices = @transform_2, window_bounds = array<i64: 1, 256>}, {pipeline_mode = #tpu.pipeline_mode<synchronous>, transform_indices = @transform_3, window_bounds = array<i64: 256, 128>}, {pipeline_mode = #tpu.pipeline_mode<synchronous>, transform_indices = @transform_4, window_bounds = array<i64: 1, 128>}, {transform_indices = @transform_5, window_bounds = array<i64: 1, 1, 128>}]} {
    %c0 = arith.constant 0 : index
    %c0_0 = arith.constant 0 : index
    %0 = vector.load %arg1[%c0, %c0_0] : memref<64x128xbf16, #tpu.memory_space<vmem>>, vector<64x128xbf16>
    %c0_1 = arith.constant 0 : index
    %c0_2 = arith.constant 0 : index
    %1 = vector.load %arg2[%c0_1, %c0_2] : memref<128x256xbf16, #tpu.memory_space<vmem>>, vector<128x256xbf16>
    %cst = arith.constant dense<0.000000e+00> : vector<64x256xf32>
    %2 = tpu.matmul %0, %1, %cst {dimension_numbers = #tpu.dot_dimension_numbers<[1], [0], [0], [1], [0, 0, 1, 1], [], []>} : vector<64x128xbf16>, vector<128x256xbf16>, vector<64x256xf32> -> vector<64x256xf32>
    %c0_3 = arith.constant 0 : index
    %c0_4 = arith.constant 0 : index
    %3 = vector.load %arg3[%c0_3, %c0_4] : memref<1x256xf32, #tpu.memory_space<vmem>>, vector<1x256xf32>
    %4 = vector.broadcast %3 : vector<1x256xf32> to vector<64x256xf32>
    %5 = arith.addf %2, %4 : vector<64x256xf32>
    %6 = arith.negf %5 : vector<64x256xf32>
    %7 = math.exp %6 : vector<64x256xf32>
    %cst_5 = arith.constant 1.000000e+00 : f32
    %8 = vector.broadcast %cst_5 : f32 to vector<64x256xf32>
    %9 = arith.addf %8, %7 : vector<64x256xf32>
    %10 = arith.divf %8, %9 : vector<64x256xf32>
    %11 = arith.mulf %5, %10 : vector<64x256xf32>
    %cst_6 = arith.constant dense<0.000000e+00> : vector<256xf32>
    %12 = vector.multi_reduction <add>, %11, %cst_6 [0] : vector<64x256xf32> to vector<256xf32>
    %13 = vector.shape_cast %12 : vector<256xf32> to vector<1x256xf32>
    %cst_7 = arith.constant 6.400000e+01 : f32
    %14 = vector.broadcast %cst_7 : f32 to vector<1x256xf32>
    %15 = arith.divf %13, %14 : vector<1x256xf32>
    %16 = arith.truncf %15 : vector<1x256xf32> to vector<1x256xbf16>
    %c0_8 = arith.constant 0 : index
    %c0_9 = arith.constant 0 : index
    %17 = vector.load %arg4[%c0_8, %c0_9] : memref<256x128xbf16, #tpu.memory_space<vmem>>, vector<256x128xbf16>
    %cst_10 = arith.constant dense<0.000000e+00> : vector<1x128xf32>
    %18 = tpu.matmul %16, %17, %cst_10 {dimension_numbers = #tpu.dot_dimension_numbers<[1], [0], [0], [1], [0, 0, 1, 1], [], []>} : vector<1x256xbf16>, vector<256x128xbf16>, vector<1x128xf32> -> vector<1x128xf32>
    %c0_11 = arith.constant 0 : index
    %c0_12 = arith.constant 0 : index
    %19 = vector.load %arg5[%c0_11, %c0_12] : memref<1x128xf32, #tpu.memory_space<vmem>>, vector<1x128xf32>
    %20 = arith.addf %18, %19 : vector<1x128xf32>
    %21 = vector.shape_cast %20 : vector<1x128xf32> to vector<1x1x128xf32>
    %c0_13 = arith.constant 0 : index
    %c0_14 = arith.constant 0 : index
    %c0_15 = arith.constant 0 : index
    %22 = vector.load %arg6[%c0_13, %c0_14, %c0_15] : memref<1x1x128xf32, #tpu.memory_space<vmem>>, vector<1x1x128xf32>
    tpu.vector_store %arg6[%c0_13, %c0_14, %c0_15], %21 {strides = array<i32>} : memref<1x1x128xf32, #tpu.memory_space<vmem>>, vector<1x1x128xf32>,
    return
  }
  func.func @transform_0(%arg0: i32) -> (i32, i32) {
    %c0_i32 = arith.constant 0 : i32
    %c0_i32_0 = arith.constant 0 : i32
    return %arg0, %c0_i32 : i32, i32
  }
  func.func @transform_1(%arg0: i32) -> (i32, i32) {
    %c0_i32 = arith.constant 0 : i32
    %c0_i32_0 = arith.constant 0 : i32
    %c0_i32_1 = arith.constant 0 : i32
    return %c0_i32, %c0_i32_0 : i32, i32
  }
  func.func @transform_2(%arg0: i32) -> (i32, i32) {
    %c0_i32 = arith.constant 0 : i32
    %c0_i32_0 = arith.constant 0 : i32
    %c0_i32_1 = arith.constant 0 : i32
    return %c0_i32, %c0_i32_0 : i32, i32
  }
  func.func @transform_3(%arg0: i32) -> (i32, i32) {
    %c0_i32 = arith.constant 0 : i32
    %c0_i32_0 = arith.constant 0 : i32
    %c0_i32_1 = arith.constant 0 : i32
    return %c0_i32, %c0_i32_0 : i32, i32
  }
  func.func @transform_4(%arg0: i32) -> (i32, i32) {
    %c0_i32 = arith.constant 0 : i32
    %c0_i32_0 = arith.constant 0 : i32
    %c0_i32_1 = arith.constant 0 : i32
    return %c0_i32, %c0_i32_0 : i32, i32
  }
  func.func @transform_5(%arg0: i32) -> (i32, i32, i32) {
    %c0_i32 = arith.constant 0 : i32
    %c0_i32_0 = arith.constant 0 : i32
    %c0_i32_1 = arith.constant 0 : i32
    return %arg0, %c0_i32, %c0_i32_0 : i32, i32, i32
  }
}

module attributes {stable_mosaic.version = 11 : i64} {
  func.func @_mbconv_kernel(%arg0: i32, %arg1: memref<64x128xbf16, #tpu.memory_space<vmem>>, %arg2: memref<128x256xbf16, #tpu.memory_space<vmem>>, %arg3: memref<1x256xf32, #tpu.memory_space<vmem>>, %arg4: memref<9x256xf32, #tpu.memory_space<vmem>>, %arg5: memref<256x128xbf16, #tpu.memory_space<vmem>>, %arg6: memref<1x128xf32, #tpu.memory_space<vmem>>, %arg7: memref<128x256xbf16, #tpu.memory_space<vmem>>, %arg8: memref<1x256xf32, #tpu.memory_space<vmem>>, %arg9: memref<256x128xbf16, #tpu.memory_space<vmem>>, %arg10: memref<1x128xf32, #tpu.memory_space<vmem>>, %arg11: memref<64x128xbf16, #tpu.memory_space<vmem>>, %arg12: memref<10x10x256xf32, #tpu.memory_space<vmem>>) attributes {dimension_semantics = [#tpu.dimension_semantics<parallel>], iteration_bounds = array<i64: 2>, scalar_prefetch = 0 : i64, scratch_operands = 1 : i64, tpu.core_type = #tpu.core_type<tc>, window_params = [{transform_indices = @transform_0, window_bounds = array<i64: 64, 128>}, {pipeline_mode = #tpu.pipeline_mode<synchronous>, transform_indices = @transform_1, window_bounds = array<i64: 128, 256>}, {pipeline_mode = #tpu.pipeline_mode<synchronous>, transform_indices = @transform_2, window_bounds = array<i64: 1, 256>}, {pipeline_mode = #tpu.pipeline_mode<synchronous>, transform_indices = @transform_3, window_bounds = array<i64: 9, 256>}, {pipeline_mode = #tpu.pipeline_mode<synchronous>, transform_indices = @transform_4, window_bounds = array<i64: 256, 128>}, {pipeline_mode = #tpu.pipeline_mode<synchronous>, transform_indices = @transform_5, window_bounds = array<i64: 1, 128>}, {pipeline_mode = #tpu.pipeline_mode<synchronous>, transform_indices = @transform_6, window_bounds = array<i64: 128, 256>}, {pipeline_mode = #tpu.pipeline_mode<synchronous>, transform_indices = @transform_7, window_bounds = array<i64: 1, 256>}, {pipeline_mode = #tpu.pipeline_mode<synchronous>, transform_indices = @transform_8, window_bounds = array<i64: 256, 128>}, {pipeline_mode = #tpu.pipeline_mode<synchronous>, transform_indices = @transform_9, window_bounds = array<i64: 1, 128>}, {transform_indices = @transform_10, window_bounds = array<i64: 64, 128>}]} {
    %c0 = arith.constant 0 : index
    %c0_0 = arith.constant 0 : index
    %0 = vector.load %arg1[%c0, %c0_0] : memref<64x128xbf16, #tpu.memory_space<vmem>>, vector<64x128xbf16>
    %c0_1 = arith.constant 0 : index
    %c0_2 = arith.constant 0 : index
    %1 = vector.load %arg2[%c0_1, %c0_2] : memref<128x256xbf16, #tpu.memory_space<vmem>>, vector<128x256xbf16>
    %cst = arith.constant dense<0.000000e+00> : vector<64x256xf32>
    %2 = tpu.matmul %0, %1, %cst {dimension_numbers = #tpu.dot_dimension_numbers<[1], [0], [0], [1], [0, 0, 1, 1], [], []>} : vector<64x128xbf16>, vector<128x256xbf16>, vector<64x256xf32> -> vector<64x256xf32>
    %c0_3 = arith.constant 0 : index
    %c0_4 = arith.constant 0 : index
    %3 = vector.load %arg3[%c0_3, %c0_4] : memref<1x256xf32, #tpu.memory_space<vmem>>, vector<1x256xf32>
    %4 = vector.broadcast %3 : vector<1x256xf32> to vector<64x256xf32>
    %5 = arith.addf %2, %4 : vector<64x256xf32>
    %6 = arith.negf %5 : vector<64x256xf32>
    %7 = math.exp %6 : vector<64x256xf32>
    %cst_5 = arith.constant 1.000000e+00 : f32
    %8 = vector.broadcast %cst_5 : f32 to vector<64x256xf32>
    %9 = arith.addf %8, %7 : vector<64x256xf32>
    %10 = arith.divf %8, %9 : vector<64x256xf32>
    %11 = arith.mulf %5, %10 : vector<64x256xf32>
    %cst_6 = arith.constant 0.000000e+00 : f32
    %12 = vector.broadcast %cst_6 : f32 to vector<10x10x256xf32>
    %c0_7 = arith.constant 0 : index
    %c0_8 = arith.constant 0 : index
    %c0_9 = arith.constant 0 : index
    %13 = vector.load %arg12[%c0_7, %c0_8, %c0_9] : memref<10x10x256xf32, #tpu.memory_space<vmem>>, vector<10x10x256xf32>
    tpu.vector_store %arg12[%c0_7, %c0_8, %c0_9], %12 {strides = array<i32>} : memref<10x10x256xf32, #tpu.memory_space<vmem>>, vector<10x10x256xf32>,
    %14 = vector.shape_cast %11 : vector<64x256xf32> to vector<8x8x256xf32>
    %c1 = arith.constant 1 : index
    %c1_10 = arith.constant 1 : index
    %c0_11 = arith.constant 0 : index
    %15 = vector.load %arg12[%c1, %c1_10, %c0_11] : memref<10x10x256xf32, #tpu.memory_space<vmem>>, vector<8x8x256xf32>
    tpu.vector_store %arg12[%c1, %c1_10, %c0_11], %14 {strides = array<i32>} : memref<10x10x256xf32, #tpu.memory_space<vmem>>, vector<8x8x256xf32>,
    %cst_12 = arith.constant 0.000000e+00 : f32
    %16 = vector.broadcast %cst_12 : f32 to vector<8x8x256xf32>
    %c0_13 = arith.constant 0 : index
    %c0_14 = arith.constant 0 : index
    %c0_15 = arith.constant 0 : index
    %17 = vector.load %arg12[%c0_13, %c0_14, %c0_15] : memref<10x10x256xf32, #tpu.memory_space<vmem>>, vector<8x8x256xf32>
    %c0_16 = arith.constant 0 : index
    %c0_17 = arith.constant 0 : index
    %18 = vector.load %arg4[%c0_16, %c0_17] : memref<9x256xf32, #tpu.memory_space<vmem>>, vector<1x256xf32>
    %19 = vector.shape_cast %18 : vector<1x256xf32> to vector<256xf32>
    %20 = vector.shape_cast %19 : vector<256xf32> to vector<1x1x256xf32>
    %21 = vector.broadcast %20 : vector<1x1x256xf32> to vector<8x8x256xf32>
    %22 = arith.mulf %17, %21 : vector<8x8x256xf32>
    %23 = arith.addf %16, %22 : vector<8x8x256xf32>
    %c0_18 = arith.constant 0 : index
    %c1_19 = arith.constant 1 : index
    %c0_20 = arith.constant 0 : index
    %24 = vector.load %arg12[%c0_18, %c1_19, %c0_20] : memref<10x10x256xf32, #tpu.memory_space<vmem>>, vector<8x8x256xf32>
    %c1_21 = arith.constant 1 : index
    %c0_22 = arith.constant 0 : index
    %25 = vector.load %arg4[%c1_21, %c0_22] : memref<9x256xf32, #tpu.memory_space<vmem>>, vector<1x256xf32>
    %26 = vector.shape_cast %25 : vector<1x256xf32> to vector<256xf32>
    %27 = vector.shape_cast %26 : vector<256xf32> to vector<1x1x256xf32>
    %28 = vector.broadcast %27 : vector<1x1x256xf32> to vector<8x8x256xf32>
    %29 = arith.mulf %24, %28 : vector<8x8x256xf32>
    %30 = arith.addf %23, %29 : vector<8x8x256xf32>
    %c0_23 = arith.constant 0 : index
    %c2 = arith.constant 2 : index
    %c0_24 = arith.constant 0 : index
    %31 = vector.load %arg12[%c0_23, %c2, %c0_24] : memref<10x10x256xf32, #tpu.memory_space<vmem>>, vector<8x8x256xf32>
    %c2_25 = arith.constant 2 : index
    %c0_26 = arith.constant 0 : index
    %32 = vector.load %arg4[%c2_25, %c0_26] : memref<9x256xf32, #tpu.memory_space<vmem>>, vector<1x256xf32>
    %33 = vector.shape_cast %32 : vector<1x256xf32> to vector<256xf32>
    %34 = vector.shape_cast %33 : vector<256xf32> to vector<1x1x256xf32>
    %35 = vector.broadcast %34 : vector<1x1x256xf32> to vector<8x8x256xf32>
    %36 = arith.mulf %31, %35 : vector<8x8x256xf32>
    %37 = arith.addf %30, %36 : vector<8x8x256xf32>
    %c1_27 = arith.constant 1 : index
    %c0_28 = arith.constant 0 : index
    %c0_29 = arith.constant 0 : index
    %38 = vector.load %arg12[%c1_27, %c0_28, %c0_29] : memref<10x10x256xf32, #tpu.memory_space<vmem>>, vector<8x8x256xf32>
    %c3 = arith.constant 3 : index
    %c0_30 = arith.constant 0 : index
    %39 = vector.load %arg4[%c3, %c0_30] : memref<9x256xf32, #tpu.memory_space<vmem>>, vector<1x256xf32>
    %40 = vector.shape_cast %39 : vector<1x256xf32> to vector<256xf32>
    %41 = vector.shape_cast %40 : vector<256xf32> to vector<1x1x256xf32>
    %42 = vector.broadcast %41 : vector<1x1x256xf32> to vector<8x8x256xf32>
    %43 = arith.mulf %38, %42 : vector<8x8x256xf32>
    %44 = arith.addf %37, %43 : vector<8x8x256xf32>
    %c1_31 = arith.constant 1 : index
    %c1_32 = arith.constant 1 : index
    %c0_33 = arith.constant 0 : index
    %45 = vector.load %arg12[%c1_31, %c1_32, %c0_33] : memref<10x10x256xf32, #tpu.memory_space<vmem>>, vector<8x8x256xf32>
    %c4 = arith.constant 4 : index
    %c0_34 = arith.constant 0 : index
    %46 = vector.load %arg4[%c4, %c0_34] : memref<9x256xf32, #tpu.memory_space<vmem>>, vector<1x256xf32>
    %47 = vector.shape_cast %46 : vector<1x256xf32> to vector<256xf32>
    %48 = vector.shape_cast %47 : vector<256xf32> to vector<1x1x256xf32>
    %49 = vector.broadcast %48 : vector<1x1x256xf32> to vector<8x8x256xf32>
    %50 = arith.mulf %45, %49 : vector<8x8x256xf32>
    %51 = arith.addf %44, %50 : vector<8x8x256xf32>
    %c1_35 = arith.constant 1 : index
    %c2_36 = arith.constant 2 : index
    %c0_37 = arith.constant 0 : index
    %52 = vector.load %arg12[%c1_35, %c2_36, %c0_37] : memref<10x10x256xf32, #tpu.memory_space<vmem>>, vector<8x8x256xf32>
    %c5 = arith.constant 5 : index
    %c0_38 = arith.constant 0 : index
    %53 = vector.load %arg4[%c5, %c0_38] : memref<9x256xf32, #tpu.memory_space<vmem>>, vector<1x256xf32>
    %54 = vector.shape_cast %53 : vector<1x256xf32> to vector<256xf32>
    %55 = vector.shape_cast %54 : vector<256xf32> to vector<1x1x256xf32>
    %56 = vector.broadcast %55 : vector<1x1x256xf32> to vector<8x8x256xf32>
    %57 = arith.mulf %52, %56 : vector<8x8x256xf32>
    %58 = arith.addf %51, %57 : vector<8x8x256xf32>
    %c2_39 = arith.constant 2 : index
    %c0_40 = arith.constant 0 : index
    %c0_41 = arith.constant 0 : index
    %59 = vector.load %arg12[%c2_39, %c0_40, %c0_41] : memref<10x10x256xf32, #tpu.memory_space<vmem>>, vector<8x8x256xf32>
    %c6 = arith.constant 6 : index
    %c0_42 = arith.constant 0 : index
    %60 = vector.load %arg4[%c6, %c0_42] : memref<9x256xf32, #tpu.memory_space<vmem>>, vector<1x256xf32>
    %61 = vector.shape_cast %60 : vector<1x256xf32> to vector<256xf32>
    %62 = vector.shape_cast %61 : vector<256xf32> to vector<1x1x256xf32>
    %63 = vector.broadcast %62 : vector<1x1x256xf32> to vector<8x8x256xf32>
    %64 = arith.mulf %59, %63 : vector<8x8x256xf32>
    %65 = arith.addf %58, %64 : vector<8x8x256xf32>
    %c2_43 = arith.constant 2 : index
    %c1_44 = arith.constant 1 : index
    %c0_45 = arith.constant 0 : index
    %66 = vector.load %arg12[%c2_43, %c1_44, %c0_45] : memref<10x10x256xf32, #tpu.memory_space<vmem>>, vector<8x8x256xf32>
    %c7 = arith.constant 7 : index
    %c0_46 = arith.constant 0 : index
    %67 = vector.load %arg4[%c7, %c0_46] : memref<9x256xf32, #tpu.memory_space<vmem>>, vector<1x256xf32>
    %68 = vector.shape_cast %67 : vector<1x256xf32> to vector<256xf32>
    %69 = vector.shape_cast %68 : vector<256xf32> to vector<1x1x256xf32>
    %70 = vector.broadcast %69 : vector<1x1x256xf32> to vector<8x8x256xf32>
    %71 = arith.mulf %66, %70 : vector<8x8x256xf32>
    %72 = arith.addf %65, %71 : vector<8x8x256xf32>
    %c2_47 = arith.constant 2 : index
    %c2_48 = arith.constant 2 : index
    %c0_49 = arith.constant 0 : index
    %73 = vector.load %arg12[%c2_47, %c2_48, %c0_49] : memref<10x10x256xf32, #tpu.memory_space<vmem>>, vector<8x8x256xf32>
    %c8 = arith.constant 8 : index
    %c0_50 = arith.constant 0 : index
    %74 = vector.load %arg4[%c8, %c0_50] : memref<9x256xf32, #tpu.memory_space<vmem>>, vector<1x256xf32>
    %75 = vector.shape_cast %74 : vector<1x256xf32> to vector<256xf32>
    %76 = vector.shape_cast %75 : vector<256xf32> to vector<1x1x256xf32>
    %77 = vector.broadcast %76 : vector<1x1x256xf32> to vector<8x8x256xf32>
    %78 = arith.mulf %73, %77 : vector<8x8x256xf32>
    %79 = arith.addf %72, %78 : vector<8x8x256xf32>
    %80 = arith.negf %79 : vector<8x8x256xf32>
    %81 = math.exp %80 : vector<8x8x256xf32>
    %cst_51 = arith.constant 1.000000e+00 : f32
    %82 = vector.broadcast %cst_51 : f32 to vector<8x8x256xf32>
    %83 = arith.addf %82, %81 : vector<8x8x256xf32>
    %84 = arith.divf %82, %83 : vector<8x8x256xf32>
    %85 = arith.mulf %79, %84 : vector<8x8x256xf32>
    %86 = vector.shape_cast %85 : vector<8x8x256xf32> to vector<64x256xf32>
    %cst_52 = arith.constant dense<0.000000e+00> : vector<256xf32>
    %87 = vector.multi_reduction <add>, %86, %cst_52 [0] : vector<64x256xf32> to vector<256xf32>
    %88 = vector.shape_cast %87 : vector<256xf32> to vector<1x256xf32>
    %cst_53 = arith.constant 6.400000e+01 : f32
    %89 = vector.broadcast %cst_53 : f32 to vector<1x256xf32>
    %90 = arith.divf %88, %89 : vector<1x256xf32>
    %91 = arith.truncf %90 : vector<1x256xf32> to vector<1x256xbf16>
    %c0_54 = arith.constant 0 : index
    %c0_55 = arith.constant 0 : index
    %92 = vector.load %arg5[%c0_54, %c0_55] : memref<256x128xbf16, #tpu.memory_space<vmem>>, vector<256x128xbf16>
    %cst_56 = arith.constant dense<0.000000e+00> : vector<1x128xf32>
    %93 = tpu.matmul %91, %92, %cst_56 {dimension_numbers = #tpu.dot_dimension_numbers<[1], [0], [0], [1], [0, 0, 1, 1], [], []>} : vector<1x256xbf16>, vector<256x128xbf16>, vector<1x128xf32> -> vector<1x128xf32>
    %c0_57 = arith.constant 0 : index
    %c0_58 = arith.constant 0 : index
    %94 = vector.load %arg6[%c0_57, %c0_58] : memref<1x128xf32, #tpu.memory_space<vmem>>, vector<1x128xf32>
    %95 = arith.addf %93, %94 : vector<1x128xf32>
    %96 = arith.negf %95 : vector<1x128xf32>
    %97 = math.exp %96 : vector<1x128xf32>
    %cst_59 = arith.constant 1.000000e+00 : f32
    %98 = vector.broadcast %cst_59 : f32 to vector<1x128xf32>
    %99 = arith.addf %98, %97 : vector<1x128xf32>
    %100 = arith.divf %98, %99 : vector<1x128xf32>
    %101 = arith.mulf %95, %100 : vector<1x128xf32>
    %102 = arith.truncf %101 : vector<1x128xf32> to vector<1x128xbf16>
    %c0_60 = arith.constant 0 : index
    %c0_61 = arith.constant 0 : index
    %103 = vector.load %arg7[%c0_60, %c0_61] : memref<128x256xbf16, #tpu.memory_space<vmem>>, vector<128x256xbf16>
    %cst_62 = arith.constant dense<0.000000e+00> : vector<1x256xf32>
    %104 = tpu.matmul %102, %103, %cst_62 {dimension_numbers = #tpu.dot_dimension_numbers<[1], [0], [0], [1], [0, 0, 1, 1], [], []>} : vector<1x128xbf16>, vector<128x256xbf16>, vector<1x256xf32> -> vector<1x256xf32>
    %c0_63 = arith.constant 0 : index
    %c0_64 = arith.constant 0 : index
    %105 = vector.load %arg8[%c0_63, %c0_64] : memref<1x256xf32, #tpu.memory_space<vmem>>, vector<1x256xf32>
    %106 = arith.addf %104, %105 : vector<1x256xf32>
    %107 = arith.negf %106 : vector<1x256xf32>
    %108 = math.exp %107 : vector<1x256xf32>
    %cst_65 = arith.constant 1.000000e+00 : f32
    %109 = vector.broadcast %cst_65 : f32 to vector<1x256xf32>
    %110 = arith.addf %109, %108 : vector<1x256xf32>
    %111 = arith.divf %109, %110 : vector<1x256xf32>
    %112 = vector.broadcast %111 : vector<1x256xf32> to vector<64x256xf32>
    %113 = arith.mulf %86, %112 : vector<64x256xf32>
    %114 = arith.truncf %113 : vector<64x256xf32> to vector<64x256xbf16>
    %c0_66 = arith.constant 0 : index
    %c0_67 = arith.constant 0 : index
    %115 = vector.load %arg9[%c0_66, %c0_67] : memref<256x128xbf16, #tpu.memory_space<vmem>>, vector<256x128xbf16>
    %cst_68 = arith.constant dense<0.000000e+00> : vector<64x128xf32>
    %116 = tpu.matmul %114, %115, %cst_68 {dimension_numbers = #tpu.dot_dimension_numbers<[1], [0], [0], [1], [0, 0, 1, 1], [], []>} : vector<64x256xbf16>, vector<256x128xbf16>, vector<64x128xf32> -> vector<64x128xf32>
    %c0_69 = arith.constant 0 : index
    %c0_70 = arith.constant 0 : index
    %117 = vector.load %arg10[%c0_69, %c0_70] : memref<1x128xf32, #tpu.memory_space<vmem>>, vector<1x128xf32>
    %118 = vector.broadcast %117 : vector<1x128xf32> to vector<64x128xf32>
    %119 = arith.addf %116, %118 : vector<64x128xf32>
    %120 = arith.extf %0 : vector<64x128xbf16> to vector<64x128xf32>
    %121 = arith.addf %119, %120 : vector<64x128xf32>
    %122 = arith.truncf %121 : vector<64x128xf32> to vector<64x128xbf16>
    %c0_71 = arith.constant 0 : index
    %c0_72 = arith.constant 0 : index
    %123 = vector.load %arg11[%c0_71, %c0_72] : memref<64x128xbf16, #tpu.memory_space<vmem>>, vector<64x128xbf16>
    tpu.vector_store %arg11[%c0_71, %c0_72], %122 {strides = array<i32>} : memref<64x128xbf16, #tpu.memory_space<vmem>>, vector<64x128xbf16>,
    return
  }
  func.func @transform_0(%arg0: i32) -> (i32, i32) {
    %c0_i32 = arith.constant 0 : i32
    %c0_i32_0 = arith.constant 0 : i32
    return %arg0, %c0_i32 : i32, i32
  }
  func.func @transform_1(%arg0: i32) -> (i32, i32) {
    %c0_i32 = arith.constant 0 : i32
    %c0_i32_0 = arith.constant 0 : i32
    %c0_i32_1 = arith.constant 0 : i32
    return %c0_i32, %c0_i32_0 : i32, i32
  }
  func.func @transform_2(%arg0: i32) -> (i32, i32) {
    %c0_i32 = arith.constant 0 : i32
    %c0_i32_0 = arith.constant 0 : i32
    %c0_i32_1 = arith.constant 0 : i32
    return %c0_i32, %c0_i32_0 : i32, i32
  }
  func.func @transform_3(%arg0: i32) -> (i32, i32) {
    %c0_i32 = arith.constant 0 : i32
    %c0_i32_0 = arith.constant 0 : i32
    %c0_i32_1 = arith.constant 0 : i32
    return %c0_i32, %c0_i32_0 : i32, i32
  }
  func.func @transform_4(%arg0: i32) -> (i32, i32) {
    %c0_i32 = arith.constant 0 : i32
    %c0_i32_0 = arith.constant 0 : i32
    %c0_i32_1 = arith.constant 0 : i32
    return %c0_i32, %c0_i32_0 : i32, i32
  }
  func.func @transform_5(%arg0: i32) -> (i32, i32) {
    %c0_i32 = arith.constant 0 : i32
    %c0_i32_0 = arith.constant 0 : i32
    %c0_i32_1 = arith.constant 0 : i32
    return %c0_i32, %c0_i32_0 : i32, i32
  }
  func.func @transform_6(%arg0: i32) -> (i32, i32) {
    %c0_i32 = arith.constant 0 : i32
    %c0_i32_0 = arith.constant 0 : i32
    %c0_i32_1 = arith.constant 0 : i32
    return %c0_i32, %c0_i32_0 : i32, i32
  }
  func.func @transform_7(%arg0: i32) -> (i32, i32) {
    %c0_i32 = arith.constant 0 : i32
    %c0_i32_0 = arith.constant 0 : i32
    %c0_i32_1 = arith.constant 0 : i32
    return %c0_i32, %c0_i32_0 : i32, i32
  }
  func.func @transform_8(%arg0: i32) -> (i32, i32) {
    %c0_i32 = arith.constant 0 : i32
    %c0_i32_0 = arith.constant 0 : i32
    %c0_i32_1 = arith.constant 0 : i32
    return %c0_i32, %c0_i32_0 : i32, i32
  }
  func.func @transform_9(%arg0: i32) -> (i32, i32) {
    %c0_i32 = arith.constant 0 : i32
    %c0_i32_0 = arith.constant 0 : i32
    %c0_i32_1 = arith.constant 0 : i32
    return %c0_i32, %c0_i32_0 : i32, i32
  }
  func.func @transform_10(%arg0: i32) -> (i32, i32) {
    %c0_i32 = arith.constant 0 : i32
    %c0_i32_0 = arith.constant 0 : i32
    return %arg0, %c0_i32 : i32, i32
  }
}

</mosaic_0001>

<bundles_post_ra>
// kernel: emotion_efficientnet_forward.3
= control target key start
LH: loop header
LB: loop body
LE: loop exit
PB: predicated region body
PF: predicated region fallthrough
CT: control target
= control target key end

     0   :  { %s1191_s12 = smov 0   ;;  %s1434_s0 = inlined_call_operand.vmem [shape: bf16[2,9,9,12], index: 0, kind: input, shape index: {}]   ;;  %s1435_s1 = inlined_call_operand.vmem [shape: bf16[4,12,128], index: 1, kind: input, shape index: {}]   ;;  %s1436_s2 = inlined_call_operand.vmem [shape: f32[1,128], index: 2, kind: input, shape index: {}]   ;;  %s1437_s3 = inlined_call_operand.vmem [shape: bf16[128,128], index: 3, kind: output, shape index: {}]  }
   0x1 LB: > { %s1197_s13 = sadd.s32 4294967295, %s1169_s12   ;;  %p978_p0 = scmp.ge.s32.totalorder %s1169_s12, 1  ;;  %s1169_s12 = sphi %s1191_s12, %s13_s12  }
   0x2   : > { %p137_p1 = scmp.lt.s32.totalorder %s1169_s12, 3 }
   0x4   : > { %p138_p2 = pnand %p978_p0, %p137_p1 }
   0x5   : > { %p161_p3 = scmp.lt.s32.totalorder (!%p138_p2), %s1197_s13, 1  ;;  %s980_s10 = sshll.u32 (!%p138_p2), %s1197_s13, 3 }
   0x6   : > { %141 = sbr.rel (%p138_p2) target bundleno = 262 (0x106), region = 32  ;;  %p1365_p4 = scmp.lt.s32.totalorder (!%p138_p2), %s980_s10, 15 }
   0xb   : > { %vm339_vm0 = vcmask 1045504   ;;  %v1044_v0 = vld [vmem:[%s1435_s1 + $0x10] sm:$0xf]  ;;  %v1096_v1 = vld [vmem:[%s1435_s1 + $0x10] sm:$0x30]  ;;  %s162_s22 = scalar_select %p161_p3, %s1197_s13, 1 }
   0xc   : > { %v1045_v2 = vor.u32 %v1096_v1, %v1044_v0  ;;  %v1010_v3 = vld [vmem:[%s1435_s1] sm:$0xf]  ;;  %v1090_v4 = vld [vmem:[%s1435_s1] sm:$0x30]  ;;  %v986_v6 = vld [vmem:[%s1435_s1 + $0x8] sm:$0xf] }
   0xd   : > { %v1011_v5 = vor.u32 %v1090_v4, %v1010_v3  ;;  %v1091_v7 = vld [vmem:[%s1435_s1 + $0x8] sm:$0x30]  ;;  %v1070_v10 = vld [vmem:[%s1435_s1 + $0x18] sm:$0xf]  ;;  %v1097_v11 = vld [vmem:[%s1435_s1 + $0x18] sm:$0x30] }
   0xe   : > { %v491_v8 = vsel %vm339_vm0, %v1045_v2, 0  ;;  %v987_v9 = vor.u32 %v1091_v7, %v986_v6  ;;  %s1121_s4 = smul.u32 72, %s162_s22  ;;  %v1071_v13 = vor.u32 %v1097_v11, %v1070_v10  ;;  %vm326_vm1 = vcmask 97280   ;;  %v1344_v47 = vld [vmem:[%s1436_s2] ss:$0 sm:$0xff]  ;;  %s1446_s10 = smov (!%p1365_p4, %s980_s10), 15 }
   0xf   : > { %500 = vmatpush.bf16.msra.mxu2 %v491_v8  ;;  %v410_v12 = vsel %vm339_vm0, %v1011_v5, 0  ;;  %vm191_vm2 = vsmask.f32 3328  ;;  %vm192_vm3 = vsmask.f32 7440  ;;  %s981_s13 = sshll.u32 %s1446_s10, 2 }
  0x10   : > { %419 = vmatpush.bf16.msra.mxu1 %v410_v12  ;;  %v341_v14 = vsel %vm339_vm0, %v987_v9, 0  ;;  %s1233_s7 = scalar_lea.vmem %s1434_s0, %s1121_s4  ;;  %v691_v15 = vsel %vm339_vm0, %v1071_v13, 0  ;;  %vm1255_vm4 = vmor %vm191_vm2, %vm192_vm3  ;;  %s1391_s16 = scalar_lea.vmem %s1437_s3, %s981_s13 }
  0x11   : > { %350 = vmatpush.bf16.msra.mxu0 %v341_v14  ;;  %v1028_v16 = vld [vmem:[%s1233_s7 + $0x8] sm:$0xf]  ;;  %v1092_v17 = vld [vmem:[%s1233_s7 + $0xc] sm:$0xf0]  ;;  %v994_v18 = vld [vmem:[%s1233_s7] sm:$0xf]  ;;  %700 = vmatpush.bf16.msra.mxu3 %v691_v15 }
  0x12   : > { %v1029_v19 = vor.u32 %v1092_v17, %v1028_v16  ;;  %v1086_v20 = vld [vmem:[%s1233_s7 + $0x4] sm:$0xf0]  ;;  %v173_v21 = vld [vmem:[%s1233_s7] sm:$0xf]  ;;  %v183_v24 = vld [vmem:[%s1233_s7 + $0x4] sm:$0x1] }
  0x13   : > { %v174_v22 = vld [vmem:[%s1233_s7 + $0x8] sm:$0xf]  ;;  %v995_v23 = vor.u32 %v1086_v20, %v994_v18  ;;  %v184_v25 = vld [vmem:[%s1233_s7 + $0xc] sm:$0x1]  ;;  %v195_v26 = vshrl.u32 %v173_v21, 16  ;;  %v198_v27 = vshll.u32 %v173_v21, 16 }
  0x14   : > { %1046 = vmatmul.msk.bf16.vlgmr.msra.gmra.mxu2 %vm326_vm1, %v1029_v19  ;;  %v204_v28 = vshll.u32 %v183_v24, 16  ;;  %v209_v29 = vshrl.u32 %v174_v22, 16  ;;  %v212_v30 = vshll.u32 %v174_v22, 16  ;;  %v218_v31 = vshll.u32 %v184_v25, 16  ;;  %v1050_v32 = vld [vmem:[%s1233_s7 + $0x8] sm:$0xf] }
  0x15   : > { %1012 = vmatmul.msk.bf16.vlgmr.msra.gmra.mxu1 %vm326_vm1, %v995_v23  ;;  %v197_v33 = vrot.slane %v195_v26, 4  ;;  %v200_v34 = vrot.slane %v198_v27, 5  ;;  %v1051_v35 = vld [vmem:[%s1233_s7 + $0xc] sm:$0x1]  ;;  %v1052_v36 = vld [vmem:[%s1233_s7 + $0x10] sm:$0xf] }
  0x16   : > { %v206_v37 = vrot.slane %v204_v28, 5  ;;  %v211_v38 = vrot.slane %v209_v29, 4  ;;  %v214_v39 = vrot.slane %v212_v30, 5  ;;  %v220_v40 = vrot.slane %v218_v31, 5  ;;  %v1053_v41 = vld [vmem:[%s1233_s7 + $0x14] sm:$0x1] }
  0x17   : > { %v201_v42 = vor.u32 %v200_v34, %v197_v33  ;;  %v547_v43 = vshrl.u32 %v1050_v32, 16  ;;  %v550_v44 = vshll.u32 %v1050_v32, 16  ;;  %v556_v45 = vshll.u32 %v1051_v35, 16  ;;  %v1251_v46 = vld [vmem:[%s1233_s7 + $0x18] sm:$0xf] }
  0x18   : > { %v215_v48 = vor.u32 %v214_v39, %v211_v38  ;;  %v561_v49 = vshrl.u32 %v1052_v36, 16  ;;  %v564_v50 = vshll.u32 %v1052_v36, 16  ;;  %v570_v51 = vshll.u32 %v1053_v41, 16  ;;  %v1093_v52 = vld [vmem:[%s1233_s7 + $0x1c] sm:$0xf0] }
  0x19   : > { %v202_v53 = vrot.slane %v201_v42, 4  ;;  %v549_v54 = vrot.slane %v547_v43, 4  ;;  %v552_v55 = vrot.slane %v550_v44, 5  ;;  %v558_v56 = vrot.slane %v556_v45, 5  ;;  %v998_v57 = vld [vmem:[%s1233_s7 + $0x10] sm:$0xf] }
  0x1a   : > { %v216_v58 = vrot.slane %v215_v48, 4  ;;  %v563_v59 = vrot.slane %v561_v49, 4  ;;  %v566_v60 = vrot.slane %v564_v50, 5  ;;  %v572_v61 = vrot.slane %v570_v51, 5  ;;  %v1087_v62 = vld [vmem:[%s1233_s7 + $0x14] sm:$0xf0] }
  0x1b   : > { %v207_v63 = vsel %vm1255_vm4, %v202_v53, %v206_v37  ;;  %v553_v0 = vor.u32 %v552_v55, %v549_v54  ;;  %v1033_v1 = vor.u32 %v1093_v52, %v1251_v46  ;;  %v999_v2 = vor.u32 %v1087_v62, %v998_v57  ;;  %v175_v3 = vld [vmem:[%s1233_s7 + $0x10] sm:$0xf]  ;;  %v176_v4 = vld [vmem:[%s1233_s7 + $0x18] sm:$0xf]  ;;  %v185_v5 = vld [vmem:[%s1233_s7 + $0x14] sm:$0x1] }
  0x1c   : > { %v221_v6 = vsel %vm1255_vm4, %v216_v58, %v220_v40  ;;  %v309_v7 = vunpack.c.l.b16 %v207_v63  ;;  %v567_v8 = vor.u32 %v566_v60, %v563_v59  ;;  %v223_v9 = vshrl.u32 %v175_v3, 16  ;;  %v186_v12 = vld [vmem:[%s1233_s7 + $0x1c] sm:$0x1]  ;;  %v1054_v19 = vld [vmem:[%s1233_s7 + $0x18] sm:$0xf] }
  0x1d   : > { %v310_v10 = vunpack.c.l.b16 %v221_v6  ;;  %v554_v11 = vrot.slane %v553_v0, 4  ;;  %v226_v13 = vshll.u32 %v175_v3, 16  ;;  %v232_v14 = vshll.u32 %v185_v5, 16  ;;  %v1055_v24 = vld [vmem:[%s1233_s7 + $0x1c] sm:$0x1] }
  0x1e   : > { %v568_v15 = vrot.slane %v567_v8, 4  ;;  %v225_v16 = vrot.slane %v223_v9, 4  ;;  %v237_v17 = vshrl.u32 %v176_v4, 16  ;;  %v240_v18 = vshll.u32 %v176_v4, 16  ;;  %v1056_v25 = vld [vmem:[%s1233_s7 + $0x20] sm:$0xf] }
  0x1f   : > { %v317_v20 = vpack.c.b16 %v310_v10, %v309_v7  ;;  %v559_v21 = vsel %vm1255_vm4, %v554_v11, %v558_v56  ;;  %v228_v22 = vrot.slane %v226_v13, 5  ;;  %v234_v23 = vrot.slane %v232_v14, 5  ;;  %v1057_v35 = vld [vmem:[%s1233_s7 + $0x24] sm:$0x1]  ;;  %v177_v45 = vld [vmem:[%s1233_s7 + $0x20] sm:$0xf] }
  0x20   : > { %v573_v26 = vsel %vm1255_vm4, %v568_v15, %v572_v61  ;;  %v661_v27 = vunpack.c.l.b16 %v559_v21  ;;  %v239_v28 = vrot.slane %v237_v17, 4  ;;  %v242_v29 = vrot.slane %v240_v18, 5  ;;  %v178_v51 = vld [vmem:[%s1233_s7 + $0x28] sm:$0xf]  ;;  %v1094_v59 = vld [vmem:[%s1233_s7 + $0x2c] sm:$0xf0] }
  0x21   : > { %988 = vmatmul.msk.bf16.vlgmr.msra.gmra.mxu0 %vm326_vm1, %v317_v20  ;;  %v662_v30 = vunpack.c.l.b16 %v573_v26  ;;  %v229_v31 = vor.u32 %v228_v22, %v225_v16  ;;  %v246_v32 = vshll.u32 %v186_v12, 16  ;;  %v575_v33 = vshrl.u32 %v1054_v19, 16  ;;  %v1036_v55 = vld [vmem:[%s1233_s7 + $0x28] sm:$0xf]  ;;  %v187_v60 = vld [vmem:[%s1233_s7 + $0x24] sm:$0x1] }
  0x22   : > { %v243_v34 = vor.u32 %v242_v29, %v239_v28  ;;  %v578_v36 = vshll.u32 %v1054_v19, 16  ;;  %v584_v37 = vshll.u32 %v1055_v24, 16  ;;  %v589_v38 = vshrl.u32 %v1056_v25, 16  ;;  %v188_v63 = vld [vmem:[%s1233_s7 + $0x2c] sm:$0x1] }
  0x23   : > { %v669_v39 = vpack.c.b16 %v662_v30, %v661_v27  ;;  %v230_v40 = vrot.slane %v229_v31, 4  ;;  %v248_v41 = vrot.slane %v246_v32, 5  ;;  %v577_v42 = vrot.slane %v575_v33, 4  ;;  %v1058_v6 = vld [vmem:[%s1233_s7 + $0x28] sm:$0xf] }
  0x24   : > { %1047 = vmatmul.msk.bf16.gmra.mxu2 %vm326_vm1, %v1033_v1  ;;  %v244_v43 = vrot.slane %v243_v34, 4  ;;  %v580_v44 = vrot.slane %v578_v36, 5  ;;  %v591_v48 = vrot.slane %v589_v38, 4  ;;  %v592_v49 = vshll.u32 %v1056_v25, 16  ;;  %v1060_v11 = vld [vmem:[%s1233_s7 + $0x30] sm:$0xf] }
  0x25   : > { %1072 = vmatmul.msk.bf16.vlgmr.msra.gmra.mxu3 %vm326_vm1, %v669_v39  ;;  %1013 = vmatmul.msk.bf16.gmra.mxu1 %vm326_vm1, %v999_v2  ;;  %v235_v46 = vsel %vm1255_vm4, %v230_v40, %v234_v23  ;;  %v598_v50 = vshll.u32 %v1057_v35, 16  ;;  %v586_v54 = vrot.slane %v584_v37, 5  ;;  %v251_v61 = vshrl.u32 %v177_v45, 16  ;;  %v1059_v18 = vld [vmem:[%s1233_s7 + $0x2c] sm:$0x1] }
  0x26   : > { %v249_v52 = vsel %vm1255_vm4, %v244_v43, %v248_v41  ;;  %v581_v53 = vor.u32 %v580_v44, %v577_v42  ;;  %v311_v56 = vunpack.c.l.b16 %v235_v46  ;;  %v594_v58 = vrot.slane %v592_v49, 5  ;;  %v1002_v23 = vld [vmem:[%s1233_s7 + $0x20] sm:$0xf]  ;;  %v1061_v25 = vld [vmem:[%s1233_s7 + $0x34] sm:$0x1] }
  0x27   : > { %v312_v57 = vunpack.c.l.b16 %v249_v52  ;;  %v254_v0 = vshll.u32 %v177_v45, 16  ;;  %v265_v1 = vshrl.u32 %v178_v51, 16  ;;  %v600_v3 = vrot.slane %v598_v50, 5  ;;  %v1088_v28 = vld [vmem:[%s1233_s7 + $0x24] sm:$0xf0] }
  0x28   : > { %v582_v62 = vrot.slane %v581_v53, 4  ;;  %v595_v2 = vor.u32 %v594_v58, %v591_v48  ;;  %v253_v4 = vrot.slane %v251_v61, 4  ;;  %v268_v5 = vshll.u32 %v178_v51, 16  ;;  %v179_v43 = vld [vmem:[%s1233_s7 + $0x30] sm:$0xf] }
  0x29   : > { %v256_v8 = vrot.slane %v254_v0, 5  ;;  %v260_v9 = vshll.u32 %v187_v60, 16  ;;  %v267_v10 = vrot.slane %v265_v1, 4  ;;  %v318_v12 = vpack.c.b16 %v312_v57, %v311_v56  ;;  %v180_v44 = vld [vmem:[%s1233_s7 + $0x38] sm:$0xf] }
  0x2a   : > { %v587_v7 = vsel %vm1255_vm4, %v582_v62, %v586_v54  ;;  %v596_v13 = vrot.slane %v595_v2, 4  ;;  %v1037_v14 = vor.u32 %v1094_v59, %v1036_v55  ;;  %v270_v15 = vrot.slane %v268_v5, 5  ;;  %v1062_v57 = vld [vmem:[%s1233_s7 + $0x38] sm:$0xf]  ;;  %v1064_v58 = vld [vmem:[%s1233_s7 + $0x40] sm:$0xf] }
  0x2b   : > { %v257_v16 = vor.u32 %v256_v8, %v253_v4  ;;  %v274_v17 = vshll.u32 %v188_v63, 16  ;;  %v603_v19 = vshrl.u32 %v1058_v6, 16  ;;  %v606_v20 = vshll.u32 %v1058_v6, 16  ;;  %v189_v0 = vld [vmem:[%s1233_s7 + $0x34] sm:$0x1] }
  0x2c   : > { %v601_v21 = vsel %vm1255_vm4, %v596_v13, %v600_v3  ;;  %v663_v22 = vunpack.c.l.b16 %v587_v7  ;;  %v271_v24 = vor.u32 %v270_v15, %v267_v10  ;;  %v617_v26 = vshrl.u32 %v1060_v11, 16  ;;  %v190_v4 = vld [vmem:[%s1233_s7 + $0x3c] sm:$0x1]  ;;  %v1006_v15 = vld [vmem:[%s1233_s7 + $0x30] sm:$0xf] }
  0x2d   : > { %v664_v27 = vunpack.c.l.b16 %v601_v21  ;;  %v262_v29 = vrot.slane %v260_v9, 5  ;;  %v605_v30 = vrot.slane %v603_v19, 4  ;;  %v608_v31 = vrot.slane %v606_v20, 5  ;;  %v1063_v20 = vld [vmem:[%s1233_s7 + $0x3c] sm:$0x1] }
  0x2e   : > { %v258_v32 = vrot.slane %v257_v16, 4  ;;  %v612_v33 = vshll.u32 %v1059_v18, 16  ;;  %v619_v34 = vrot.slane %v617_v26, 4  ;;  %v620_v35 = vshll.u32 %v1060_v11, 16  ;;  %v1040_v11 = vld [vmem:[%s1233_s7 + $0x38] sm:$0xf] }
  0x2f   : > { %v272_v36 = vrot.slane %v271_v24, 4  ;;  %v276_v37 = vrot.slane %v274_v17, 5  ;;  %v609_v38 = vor.u32 %v608_v31, %v605_v30  ;;  %v626_v39 = vshll.u32 %v1061_v25, 16  ;;  %v1089_v16 = vld [vmem:[%s1233_s7 + $0x34] sm:$0xf0] }
  0x30   : > { %v670_v40 = vpack.c.b16 %v664_v27, %v663_v22  ;;  %v1003_v41 = vor.u32 %v1088_v28, %v1002_v23  ;;  %v622_v42 = vrot.slane %v620_v35, 5  ;;  %v263_v45 = vsel %vm1255_vm4, %v258_v32, %v262_v29  ;;  %v1065_v25 = vld [vmem:[%s1233_s7 + $0x44] sm:$0x1] }
  0x31   : > { %989 = vmatmul.msk.bf16.gmra.mxu0 %vm326_vm1, %v318_v12  ;;  %v614_v46 = vrot.slane %v612_v33, 5  ;;  %v277_v49 = vsel %vm1255_vm4, %v272_v36, %v276_v37  ;;  %v610_v50 = vrot.slane %v609_v38, 4  ;;  %v628_v51 = vrot.slane %v626_v39, 5  ;;  %v1095_v12 = vld [vmem:[%s1233_s7 + $0x3c] sm:$0xf0] }
  0x32   : > { %v623_v48 = vor.u32 %v622_v42, %v619_v34  ;;  %v279_v52 = vshrl.u32 %v179_v43, 16  ;;  %v282_v54 = vshll.u32 %v179_v43, 16  ;;  %v293_v55 = vshrl.u32 %v180_v44, 16 }
  0x33   : > { %v296_v56 = vshll.u32 %v180_v44, 16  ;;  %v313_v59 = vunpack.c.l.b16 %v263_v45  ;;  %v314_v60 = vunpack.c.l.b16 %v277_v49  ;;  %v615_v61 = vsel %vm1255_vm4, %v610_v50, %v614_v46 }
  0x34   : > { %1048 = vmatmul.msk.bf16.gmra.mxu2 %vm326_vm1, %v1037_v14  ;;  %v624_v53 = vrot.slane %v623_v48, 4  ;;  %v281_v62 = vrot.slane %v279_v52, 4  ;;  %v284_v1 = vrot.slane %v282_v54, 5  ;;  %v295_v2 = vrot.slane %v293_v55, 4 }
  0x35   : > { %1073 = vmatmul.msk.bf16.gmra.mxu3 %vm326_vm1, %v670_v40  ;;  %1014 = vmatmul.msk.bf16.gmra.mxu1 %vm326_vm1, %v1003_v41  ;;  %v298_v3 = vrot.slane %v296_v56, 5  ;;  %v631_v5 = vshrl.u32 %v1062_v57, 16  ;;  %v634_v6 = vshll.u32 %v1062_v57, 16  ;;  %v645_v7 = vshrl.u32 %v1064_v58, 16 }
  0x36   : > { %v629_v63 = vsel %vm1255_vm4, %v624_v53, %v628_v51  ;;  %v648_v8 = vshll.u32 %v1064_v58, 16  ;;  %v319_v9 = vpack.c.b16 %v314_v60, %v313_v59  ;;  %v665_v10 = vunpack.c.l.b16 %v615_v61 }
  0x37   : > { %v288_v13 = vshll.u32 %v189_v0, 16  ;;  %v666_v14 = vunpack.c.l.b16 %v629_v63  ;;  %v285_v17 = vor.u32 %v284_v1, %v281_v62  ;;  %v299_v18 = vor.u32 %v298_v3, %v295_v2 }
  0x38   : > { %v302_v19 = vshll.u32 %v190_v4, 16  ;;  %v633_v21 = vrot.slane %v631_v5, 4  ;;  %v636_v22 = vrot.slane %v634_v6, 5  ;;  %v647_v23 = vrot.slane %v645_v7, 4 }
  0x39   : > { %v650_v24 = vrot.slane %v648_v8, 5  ;;  %v1041_v26 = vor.u32 %v1095_v12, %v1040_v11  ;;  %v1007_v27 = vor.u32 %v1089_v16, %v1006_v15  ;;  %v290_v28 = vrot.slane %v288_v13, 5 }
  0x3a   : > { %v671_v29 = vpack.c.b16 %v666_v14, %v665_v10  ;;  %v286_v30 = vrot.slane %v285_v17, 4  ;;  %v304_v31 = vrot.slane %v302_v19, 5  ;;  %v640_v32 = vshll.u32 %v1063_v20, 16 }
  0x3b   : > { %v300_v33 = vrot.slane %v299_v18, 4  ;;  %v637_v34 = vor.u32 %v636_v22, %v633_v21  ;;  %v651_v35 = vor.u32 %v650_v24, %v647_v23  ;;  %v654_v36 = vshll.u32 %v1065_v25, 16 }
  0x3c   : > { %v291_v37 = vsel %vm1255_vm4, %v286_v30, %v290_v28  ;;  %v642_v38 = vrot.slane %v640_v32, 5 }
  0x3d   : > { %v305_v39 = vsel %vm1255_vm4, %v300_v33, %v304_v31  ;;  %v638_v40 = vrot.slane %v637_v34, 4  ;;  %v652_v41 = vrot.slane %v651_v35, 4  ;;  %v656_v42 = vrot.slane %v654_v36, 5 }
  0x3e   : > { %v315_v43 = vunpack.c.l.b16 %v291_v37  ;;  %v316_v44 = vunpack.c.l.b16 %v305_v39 }
  0x3f   : > { %v643_v45 = vsel %vm1255_vm4, %v638_v40, %v642_v38  ;;  %v657_v46 = vsel %vm1255_vm4, %v652_v41, %v656_v42 }
  0x40   : > { %v320_v48 = vpack.c.b16 %v316_v44, %v315_v43  ;;  %v667_v49 = vunpack.c.l.b16 %v643_v45  ;;  %v668_v50 = vunpack.c.l.b16 %v657_v46 }
  0x41   : > { %990 = vmatmul.msk.bf16.gmra.mxu0 %vm326_vm1, %v319_v9 }
  0x42   : > { %v672_v51 = vpack.c.b16 %v668_v50, %v667_v49 }
  0x44   : > { %1049 = vmatmul.msk.bf16.gmra.mxu2 %vm326_vm1, %v1041_v26 }
  0x45   : > { %1074 = vmatmul.msk.bf16.gmra.mxu3 %vm326_vm1, %v671_v29  ;;  %1015 = vmatmul.msk.bf16.gmra.mxu1 %vm326_vm1, %v1007_v27 }
  0x51   : > { %991 = vmatmul.msk.bf16.gmra.mxu0 %vm326_vm1, %v320_v48 }
  0x55   : > { %1075 = vmatmul.msk.bf16.gmra.mxu3 %vm326_vm1, %v672_v51 }
  0x92   : > { %v421_v52 = vpop.f32.mrf.mxu1 }
  0x97   : > { %v502_v53 = vpop.f32.mrf.mxu2 }
  0x9a   : > { %v423_v55 = vpop.f32.mrf.mxu1 }
  0x9e   : > { %v352_v54 = vpop.f32.mrf.mxu0 }
  0x9f   : > { %v422_v56 = vadd.f32 %v421_v52, %v352_v54  ;;  %v504_v57 = vpop.f32.mrf.mxu2 }
  0xa1   : > { %v522_v58 = vadd.f32 %v502_v53, %v422_v56 }
  0xa2   : > { %v426_v61 = vpop.f32.mrf.mxu1 }
  0xa6   : > { %v354_v59 = vpop.f32.mrf.mxu0 }
  0xa7   : > { %v424_v0 = vadd.f32 %v423_v55, %v354_v59  ;;  %v507_v1 = vpop.f32.mrf.mxu2 }
  0xa8   : > { %v702_v60 = vpop.f32.mrf.mxu3 }
  0xa9   : > { %v722_v62 = vadd.f32 %v702_v60, %v522_v58  ;;  %v523_v4 = vadd.f32 %v504_v57, %v424_v0 }
  0xaa   : > { %v428_v8 = vpop.f32.mrf.mxu1 }
  0xab   : > { %v1347_v63 = vadd.f32 %v1344_v47, %v722_v62 }
  0xad   : > { %v1076_v2 = vmul.f32 -1.442695, %v1347_v63 }
  0xae   : > { %v357_v3 = vpop.f32.mrf.mxu0 }
  0xaf   : > { %1131 = vpow2.f32 %v1076_v2  ;;  %v427_v7 = vadd.f32 %v426_v61, %v357_v3  ;;  %v509_v14 = vpop.f32.mrf.mxu2 }
  0xb0   : > { %v704_v5 = vpop.f32.mrf.mxu3 }
  0xb1   : > { %v723_v6 = vadd.f32 %v704_v5, %v523_v4  ;;  %v524_v12 = vadd.f32 %v507_v1, %v427_v7 }
  0xb2   : > { %v431_v20 = vpop.f32.mrf.mxu1 }
  0xb3   : > { %v1351_v9 = vadd.f32 %v1344_v47, %v723_v6 }
  0xb5   : > { %v1132_v10 = vpop.eup %1131  ;;  %v1077_v11 = vmul.f32 -1.442695, %v1351_v9 }
  0xb6   : > { %v766_v13 = vadd.f32 1.0, %v1132_v10  ;;  %v359_v15 = vpop.f32.mrf.mxu0 }
  0xb7   : > { %1133 = vpow2.f32 %v1077_v11  ;;  %v429_v19 = vadd.f32 %v428_v8, %v359_v15  ;;  %v512_v28 = vpop.f32.mrf.mxu2 }
  0xb8   : > { %1135 = vrcp.f32 %v766_v13  ;;  %v707_v16 = vpop.f32.mrf.mxu3  ;;  %vm779_vm6 = vweird.f32 %v766_v13  ;;  %v785_v44 = vand.u32 2147483648, %v766_v13  ;;  %v783_v48 = vand.u32 2147483647, %v766_v13 }
  0xb9   : > { %v724_v17 = vadd.f32 %v707_v16, %v524_v12  ;;  %v525_v27 = vadd.f32 %v509_v14, %v429_v19 }
  0xba   : > { %v433_v41 = vpop.f32.mrf.mxu1  ;;  %v786_v58 = vor.u32 1.1754944e-38, %v785_v44  ;;  %vm784_vm9 = vcmp.eq.f32.partialorder %v783_v48, 8.507059e+37 }
  0xbb   : > { %v1355_v18 = vadd.f32 %v1344_v47, %v724_v17 }
  0xbd   : > { %v1134_v21 = vpop.eup %1133  ;;  %v1078_v22 = vmul.f32 -1.442695, %v1355_v18 }
  0xbe   : > { %v1136_v23 = vpop.eup %1135  ;;  %v767_v24 = vadd.f32 1.0, %v1134_v21  ;;  %v362_v25 = vpop.f32.mrf.mxu0 }
  0xbf   : > { %v775_v26 = vmul.f32 %v1136_v23, %v766_v13  ;;  %1137 = vpow2.f32 %v1078_v22  ;;  %v432_v32 = vadd.f32 %v431_v20, %v362_v25  ;;  %vm780_vm5 = vweird.f32 %v1136_v23  ;;  %v514_v54 = vpop.f32.mrf.mxu2 }
  0xc0   : > { %1139 = vrcp.f32 %v767_v24  ;;  %v709_v29 = vpop.f32.mrf.mxu3  ;;  %vm1370_vm7 = vmor %vm779_vm6, %vm780_vm5  ;;  %v798_v52 = vand.u32 2147483647, %v767_v24  ;;  %v800_v53 = vand.u32 2147483648, %v767_v24  ;;  %vm794_vm10 = vweird.f32 %v767_v24 }
  0xc1   : > { %v776_v30 = vsub.f32 1.0, %v775_v26  ;;  %v725_v31 = vadd.f32 %v709_v29, %v525_v27  ;;  %v526_v37 = vadd.f32 %v512_v28, %v432_v32 }
  0xc2   : > { %vm799_vm12 = vcmp.eq.f32.partialorder %v798_v52, 8.507059e+37  ;;  %v801_v1 = vor.u32 1.1754944e-38, %v800_v53  ;;  %v436_v8 = vpop.f32.mrf.mxu1 }
  0xc3   : > { %v777_v33 = vmul.f32 %v1136_v23, %v776_v30  ;;  %v1359_v34 = vadd.f32 %v1344_v47, %v725_v31 }
  0xc5   : > { %v1138_v35 = vpop.eup %1137  ;;  %v1079_v36 = vmul.f32 -1.442695, %v1359_v34  ;;  %v778_v39 = vadd.f32 %v1136_v23, %v777_v33 }
  0xc6   : > { %v1140_v38 = vpop.eup %1139  ;;  %v1363_v40 = vadd.f32 1.0, %v1138_v35  ;;  %v364_v42 = vpop.f32.mrf.mxu0 }
  0xc7   : > { %v790_v43 = vmul.f32 %v1140_v38, %v767_v24  ;;  %1141 = vpow2.f32 %v1079_v36  ;;  %v782_v51 = vsel %vm1370_vm7, %v1136_v23, %v778_v39  ;;  %vm795_vm8 = vweird.f32 %v1140_v38  ;;  %v517_v20 = vpop.f32.mrf.mxu2 }
  0xc8   : > { %1143 = vrcp.f32 %v1363_v40  ;;  %v712_v45 = vpop.f32.mrf.mxu3  ;;  %v434_v57 = vadd.f32 %v433_v41, %v364_v42  ;;  %v787_v0 = vsel %vm784_vm9, %v786_v58, %v782_v51  ;;  %vm796_vm11 = vmor %vm794_vm10, %vm795_vm8  ;;  %vm809_vm14 = vweird.f32 %v1363_v40 }
  0xc9   : > { %v791_v49 = vsub.f32 1.0, %v790_v43  ;;  %v726_v50 = vadd.f32 %v712_v45, %v526_v37  ;;  %v894_v11 = vmul.f32 %v787_v0, %v1347_v63  ;;  %v815_v26 = vand.u32 2147483648, %v1363_v40 }
  0xca   : > { %v527_v6 = vadd.f32 %v514_v54, %v434_v57  ;;  %v813_v30 = vand.u32 2147483647, %v1363_v40  ;;  %v438_v37 = vpop.f32.mrf.mxu1 }
  0xcb   : > { %v792_v55 = vmul.f32 %v1140_v38, %v791_v49  ;;  %v1381_v56 = vadd.f32 %v1344_v47, %v726_v50  ;;  %v816_v42 = vor.u32 1.1754944e-38, %v815_v26 }
  0xcc   : > { %vm814_vm1 = vcmp.eq.f32.partialorder %v813_v30, 8.507059e+37 }
  0xcd   : > { %v1142_v59 = vpop.eup %1141  ;;  %v793_v60 = vadd.f32 %v1140_v38, %v792_v55  ;;  %v1080_v61 = vmul.f32 -1.442695, %v1381_v56 }
  0xce   : > { %v1144_v62 = vpop.eup %1143  ;;  %v769_v2 = vadd.f32 1.0, %v1142_v59  ;;  %v367_v3 = vpop.f32.mrf.mxu0 }
  0xcf   : > { %v797_v4 = vsel %vm796_vm11, %v1140_v38, %v793_v60  ;;  %v805_v5 = vmul.f32 %v1144_v62, %v1363_v40  ;;  %1145 = vpow2.f32 %v1080_v61  ;;  %v437_v15 = vadd.f32 %v436_v8, %v367_v3  ;;  %v519_v50 = vpop.f32.mrf.mxu2 }
  0xd0   : > { %v802_v7 = vsel %vm799_vm12, %v801_v1, %v797_v4  ;;  %1147 = vrcp.f32 %v769_v2  ;;  %v714_v10 = vpop.f32.mrf.mxu3  ;;  %vm810_vm13 = vweird.f32 %v1144_v62  ;;  %v828_v35 = vand.u32 2147483647, %v769_v2 }
  0xd1   : > { %v895_v12 = vmul.f32 %v802_v7, %v1351_v9  ;;  %v806_v13 = vsub.f32 1.0, %v805_v5  ;;  %v727_v14 = vadd.f32 %v714_v10, %v527_v6  ;;  %v528_v9 = vadd.f32 %v517_v20, %v437_v15  ;;  %vm1403_vm15 = vmor %vm809_vm14, %vm810_vm13 }
  0xd2   : > { %v830_v36 = vand.u32 2147483648, %v769_v2  ;;  %vm824_vm2 = vweird.f32 %v769_v2  ;;  %vm829_vm4 = vcmp.eq.f32.partialorder %v828_v35, 8.507059e+37 }
  0xd3   : > { %v1101_v16 = vpack.c.bf16 %v895_v12, %v894_v11  ;;  %v807_v17 = vmul.f32 %v1144_v62, %v806_v13  ;;  %v1394_v19 = vadd.f32 %v1344_v47, %v727_v14 }
  0xd4   : > { %v831_v48 = vor.u32 1.1754944e-38, %v830_v36 }
  0xd5   : > { %v1146_v21 = vpop.eup %1145  ;;  %1102 = vst [vmem:[%s1391_s16] sm:$0xff] %v1101_v16   ;;  %v1081_v63 = vmul.f32 -1.442695, %v1394_v19  ;;  %v808_v23 = vadd.f32 %v1144_v62, %v807_v17 }
  0xd6   : > { %v1148_v22 = vpop.eup %1147  ;;  %v1398_v24 = vadd.f32 1.0, %v1146_v21  ;;  %v369_v28 = vpop.f32.mrf.mxu0 }
  0xd7   : > { %v820_v25 = vmul.f32 %v1148_v22, %v769_v2  ;;  %1149 = vpow2.f32 %v1081_v63  ;;  %v812_v33 = vsel %vm1403_vm15, %v1144_v62, %v808_v23  ;;  %vm825_vm0 = vweird.f32 %v1148_v22 }
  0xd8   : > { %1151 = vrcp.f32 %v1398_v24  ;;  %v717_v27 = vpop.f32.mrf.mxu3  ;;  %v439_v41 = vadd.f32 %v438_v37, %v369_v28  ;;  %v817_v46 = vsel %vm814_vm1, %v816_v42, %v812_v33  ;;  %vm826_vm3 = vmor %vm824_vm2, %vm825_vm0  ;;  %vm839_vm6 = vweird.f32 %v1398_v24 }
  0xd9   : > { %v821_v31 = vsub.f32 1.0, %v820_v25  ;;  %v728_v32 = vadd.f32 %v717_v27, %v528_v9  ;;  %v896_v57 = vmul.f32 %v817_v46, %v1355_v18  ;;  %v845_v18 = vand.u32 2147483648, %v1398_v24 }
  0xda   : > { %v529_v53 = vadd.f32 %v519_v50, %v439_v41 }
  0xdb   : > { %v822_v38 = vmul.f32 %v1148_v22, %v821_v31  ;;  %v1411_v39 = vadd.f32 %v1344_v47, %v728_v32  ;;  %v846_v12 = vor.u32 1.1754944e-38, %v845_v18 }
  0xdd   : > { %v1150_v43 = vpop.eup %1149  ;;  %v823_v44 = vadd.f32 %v1148_v22, %v822_v38  ;;  %v1082_v40 = vmul.f32 -1.442695, %v1411_v39 }
  0xde   : > { %v1152_v45 = vpop.eup %1151  ;;  %v771_v49 = vadd.f32 1.0, %v1150_v43 }
  0xdf   : > { %v827_v51 = vsel %vm826_vm3, %v1148_v22, %v823_v44  ;;  %v835_v52 = vmul.f32 %v1152_v45, %v1398_v24  ;;  %1153 = vpow2.f32 %v1082_v40  ;;  %vm840_vm5 = vweird.f32 %v1152_v45 }
  0xe0   : > { %v832_v54 = vsel %vm829_vm4, %v831_v48, %v827_v51  ;;  %1155 = vrcp.f32 %v771_v49  ;;  %v719_v55 = vpop.f32.mrf.mxu3  ;;  %vm841_vm7 = vmor %vm839_vm6, %vm840_vm5  ;;  %v858_v11 = vand.u32 2147483647, %v771_v49  ;;  %vm854_vm10 = vweird.f32 %v771_v49 }
  0xe1   : > { %v897_v58 = vmul.f32 %v832_v54, %v1359_v34  ;;  %v836_v59 = vsub.f32 1.0, %v835_v52  ;;  %v729_v60 = vadd.f32 %v719_v55, %v529_v53  ;;  %v843_v34 = vand.u32 2147483647, %v1398_v24 }
  0xe2   : > { %vm859_vm12 = vcmp.eq.f32.partialorder %v858_v11, 8.507059e+37 }
  0xe3   : > { %v1106_v61 = vpack.c.bf16 %v897_v58, %v896_v57  ;;  %v837_v62 = vmul.f32 %v1152_v45, %v836_v59  ;;  %v1418_v0 = vadd.f32 %v1344_v47, %v729_v60  ;;  %v860_v47 = vand.u32 2147483648, %v771_v49 }
  0xe4   : > { %vm844_vm9 = vcmp.eq.f32.partialorder %v843_v34, 8.507059e+37 }
  0xe5   : > { %v1154_v1 = vpop.eup %1153  ;;  %1118 = vst [vmem:[%s1391_s16 + $0x8] sm:$0xff] %v1106_v61   ;;  %v1083_v2 = vmul.f32 -1.442695, %v1418_v0  ;;  %v838_v5 = vadd.f32 %v1152_v45, %v837_v62  ;;  %v861_v17 = vor.u32 1.1754944e-38, %v860_v47 }
  0xe6   : > { %v1156_v3 = vpop.eup %1155  ;;  %v772_v4 = vadd.f32 1.0, %v1154_v1 }
  0xe7   : > { %v850_v6 = vmul.f32 %v1156_v3, %v771_v49  ;;  %1157 = vpow2.f32 %v1083_v2  ;;  %v842_v8 = vsel %vm841_vm7, %v1152_v45, %v838_v5  ;;  %vm855_vm8 = vweird.f32 %v1156_v3 }
  0xe8   : > { %1159 = vrcp.f32 %v772_v4  ;;  %v847_v16 = vsel %vm844_vm9, %v846_v12, %v842_v8  ;;  %vm856_vm11 = vmor %vm854_vm10, %vm855_vm8  ;;  %v875_v30 = vand.u32 2147483648, %v772_v4  ;;  %vm869_vm14 = vweird.f32 %v772_v4 }
  0xe9   : > { %v851_v7 = vsub.f32 1.0, %v850_v6  ;;  %v898_v22 = vmul.f32 %v847_v16, %v1381_v56  ;;  %v873_v31 = vand.u32 2147483647, %v772_v4 }
  0xeb   : > { %v852_v10 = vmul.f32 %v1156_v3, %v851_v7  ;;  %vm874_vm1 = vcmp.eq.f32.partialorder %v873_v31, 8.507059e+37 }
  0xed   : > { %v1158_v13 = vpop.eup %1157  ;;  %v853_v14 = vadd.f32 %v1156_v3, %v852_v10 }
  0xee   : > { %v1160_v15 = vpop.eup %1159  ;;  %v773_v20 = vadd.f32 1.0, %v1158_v13 }
  0xef   : > { %v857_v21 = vsel %vm856_vm11, %v1156_v3, %v853_v14  ;;  %v865_v63 = vmul.f32 %v1160_v15, %v772_v4  ;;  %vm870_vm13 = vweird.f32 %v1160_v15 }
  0xf0   : > { %v862_v9 = vsel %vm859_vm12, %v861_v17, %v857_v21  ;;  %1161 = vrcp.f32 %v773_v20  ;;  %vm871_vm15 = vmor %vm869_vm14, %vm870_vm13  ;;  %v890_v33 = vand.u32 2147483648, %v773_v20  ;;  %v888_v56 = vand.u32 2147483647, %v773_v20 }
  0xf1   : > { %v899_v23 = vmul.f32 %v862_v9, %v1394_v19  ;;  %v866_v24 = vsub.f32 1.0, %v865_v63  ;;  %v876_v19 = vor.u32 1.1754944e-38, %v875_v30  ;;  %vm884_vm2 = vweird.f32 %v773_v20 }
  0xf2   : > { %v891_v41 = vor.u32 1.1754944e-38, %v890_v33  ;;  %vm889_vm4 = vcmp.eq.f32.partialorder %v888_v56, 8.507059e+37 }
  0xf3   : > { %v1111_v25 = vpack.c.bf16 %v899_v23, %v898_v22  ;;  %v867_v26 = vmul.f32 %v1160_v15, %v866_v24 }
  0xf5   : > { %1119 = vst [vmem:[%s1391_s16 + $0x10] sm:$0xff] %v1111_v25   ;;  %v868_v28 = vadd.f32 %v1160_v15, %v867_v26 }
  0xf6   : > { %v1162_v27 = vpop.eup %1161 }
  0xf7   : > { %v880_v29 = vmul.f32 %v1162_v27, %v773_v20  ;;  %v872_v35 = vsel %vm871_vm15, %v1160_v15, %v868_v28  ;;  %vm885_vm0 = vweird.f32 %v1162_v27 }
  0xf8   : > { %v877_v38 = vsel %vm874_vm1, %v876_v19, %v872_v35  ;;  %vm886_vm3 = vmor %vm884_vm2, %vm885_vm0 }
  0xf9   : > { %v881_v32 = vsub.f32 1.0, %v880_v29  ;;  %v900_v44 = vmul.f32 %v877_v38, %v1411_v39 }
  0xfb   : > { %v882_v36 = vmul.f32 %v1162_v27, %v881_v32 }
  0xfd   : > { %v883_v37 = vadd.f32 %v1162_v27, %v882_v36 }
  0xff   : > { %v887_v42 = vsel %vm886_vm3, %v1162_v27, %v883_v37 }
 0x100   : > { %v892_v43 = vsel %vm889_vm4, %v891_v41, %v887_v42 }
 0x101   : > { %v901_v40 = vmul.f32 %v892_v43, %v1418_v0 }
 0x103   : > { %v1116_v45 = vpack.c.bf16 %v901_v40, %v900_v44 }
 0x105   : > { %1120 = vst [vmem:[%s1391_s16 + $0x18] sm:$0xff] %v1116_v45  }
 0x106 PF: > { %s13_s12 = sadd.s32 1, %s1169_s12  }
 0x107   : > { %p10_p5 = scmp.ge.s32.totalorder %s13_s12, 4  }
 0x109   :  { %12 = sbr.rel (!%p10_p5) target bundleno = 1 (0x1), region = 66 }

// kernel: emotion_efficientnet_forward.5
= control target key start
LH: loop header
LB: loop body
LE: loop exit
PB: predicated region body
PF: predicated region fallthrough
CT: control target
= control target key end

     0   :  { %10 = vsyncpa [#allocation3], 0  ;;  %s2137_s0 = inlined_call_operand.vmem [shape: bf16[128,128], index: 0, kind: input, shape index: {}]   ;;  %s2138_s1 = inlined_call_operand.vmem [shape: bf16[128,256], index: 1, kind: input, shape index: {}]   ;;  %s2139_s2 = inlined_call_operand.vmem [shape: f32[1,256], index: 2, kind: input, shape index: {}]   ;;  %s2140_s3 = inlined_call_operand.vmem [shape: bf16[256,128], index: 3, kind: input, shape index: {}]   ;;  %s2141_s4 = inlined_call_operand.vmem [shape: f32[1,128], index: 4, kind: input, shape index: {}]   ;;  %s2142_s5 = inlined_call_operand.hbm [shape: f32[2,1,128], index: 5, kind: output, shape index: {}]  }
   0x1   :  { %12 = vsyncpa [#allocation3 + $0x1], 0  ;;  %s1402_s18 = smov 0   ;;  %s1404_s19 = smov 0  }
   0x2   :  { %s1406_s20 = smov 0   ;;  %s1408_s21 = smov 0  }
   0x3 LB: > { %s1423_s22 = sadd.s32 4294967295, %s1369_s21   ;;  %s997_s23 = sadd.s32 4294967294, %s1369_s21   ;;  %s1369_s21 = sphi %s1408_s21, %s2198_s21   ;;  %s1365_s20 = sphi %s1406_s20, %s2197_s20   ;;  %s1361_s19 = sphi %s1404_s19, %s2196_s19   ;;  %s1357_s18 = sphi %s1402_s18, %s2195_s18  }
   0x4   : > { %s1427_s24 = sadd.s32 1, %s1369_s21   ;;  %s135_s25 = sadd.s32 1, %s1365_s20 }
   0x5   : > { %s132_s26 = ssub.s32 %s1369_s21, %s1427_s24  ;;  %p145_p0 = scmp.ne.s32.totalorder %s1365_s20, %s1361_s19 }
   0x6   : > { %p133_p1 = scmp.eq.s32.totalorder %s132_s26, 0  ;;  %p146_p2 = scmp.eq.s32.totalorder %s1423_s22, 1 }
   0x7   : > { %p151_p3 = scmp.ne.s32.totalorder %s1361_s19, %s1357_s18  ;;  %p152_p4 = scmp.eq.s32.totalorder %s997_s23, 1 }
   0x8   : > { %s1438_s27 = scalar_select %p133_p1, %s1365_s20, %s135_s25  }
   0x9   : > { %p1440_p5 = por %p146_p2, %p145_p0  ;;  %p1444_p6 = por %p152_p4, %p151_p3 }
   0xa   : > { %p1000_p7 = scmp.ge.s32.totalorder %s1369_s21, 1  ;;  %p191_p8 = scmp.lt.s32.totalorder %s1369_s21, 3 }
   0xc   : > { %p192_p9 = pnand %p1000_p7, %p191_p8 }
   0xd   : > { %s1001_s13 = sshll.u32 (!%p192_p9), %s1423_s22, 3  ;;  %s216_s12 = sand.u32 (!%p192_p9), 1, %s1361_s19  }
   0xe   : > { %195 = sbr.rel (%p192_p9) target bundleno = 429 (0x1ad), region = 40  ;;  %p219_p10 = scmp.lt.s32.totalorder (!%p192_p9), %s1001_s13, 15 }
   0xf   : > { %s938_s23 = scalar_lea.hbm (!%p192_p9), %s2142_s5, %s1423_s22  ;;  %s930_s6 = scalar_lea.sflag (!%p192_p9), [#allocation3], %s216_s12 }
  0x10   : > { %s942_s30 = sshll.u32 (!%p192_p9), %s938_s23, 4  ;;  %s943_s30 = int_to_ptr.hbm [resolvable:$true] %s942_s30 }
  0x11   : > { %s1321_s7 = sshra.s32 (!%p192_p9), %s943_s30, 4  ;;  %s1322_s7 = int_to_ptr.hbm [resolvable:$true] %s1321_s7 }
  0x12   : > { %s1323_s8 = scalar_lea.hbm (!%p192_p9), %s1322_s7, 1  ;;  %p1328_p0 = scmp.lt.s32.totalorder (!%p192_p9), %s1322_s7, %s2142_s5 }
  0x13   : > { %v1077_v0 = vld [vmem:[%s2138_s1 + $0x70] sm:$0xf]  ;;  %v1184_v1 = vld [vmem:[%s2138_s1 + $0x74] sm:$0xf0]  ;;  %v1183_v2 = vld [vmem:[%s2138_s1 + $0x74] sm:$0xf]  ;;  %p1324_p11 = scmp.ne.s32.totalorder %s1322_s7, %s1323_s8 }
  0x14   : > { %v1078_v3 = vor.u32 %v1184_v1, %v1077_v0  ;;  %v1079_v4 = vld [vmem:[%s2138_s1 + $0x78] sm:$0xf0]  ;;  %v1069_v5 = vld [vmem:[%s2138_s1 + $0x60] sm:$0xf]  ;;  %v1182_v6 = vld [vmem:[%s2138_s1 + $0x64] sm:$0xf0] }
  0x15   : > { %v1082_v7 = vor.u32 %v1183_v2, %v1079_v4  ;;  %v1181_v8 = vld [vmem:[%s2138_s1 + $0x64] sm:$0xf]  ;;  %v1071_v9 = vld [vmem:[%s2138_s1 + $0x68] sm:$0xf0]  ;;  %v1070_v10 = vor.u32 %v1182_v6, %v1069_v5  ;;  %v1061_v12 = vld [vmem:[%s2138_s1 + $0x50] sm:$0xf]  ;;  %p1325_p12 = pnand %p1324_p11, %p1440_p5 }
  0x16   : > { %358 = vmatpush.bf16.msra.mxu0 %v1078_v3  ;;  %v1074_v11 = vor.u32 %v1181_v8, %v1071_v9  ;;  %v1180_v13 = vld [vmem:[%s2138_s1 + $0x54] sm:$0xf0]  ;;  %v1179_v14 = vld [vmem:[%s2138_s1 + $0x54] sm:$0xf]  ;;  %v1063_v15 = vld [vmem:[%s2138_s1 + $0x58] sm:$0xf0] }
  0x17   : > { %387 = vmatpush.bf16.msra.mxu1 %v1082_v7  ;;  %v1062_v16 = vor.u32 %v1180_v13, %v1061_v12  ;;  %v1066_v17 = vor.u32 %v1179_v14, %v1063_v15  ;;  %v1053_v18 = vld [vmem:[%s2138_s1 + $0x40] sm:$0xf]  ;;  %v1178_v19 = vld [vmem:[%s2138_s1 + $0x44] sm:$0xf0]  ;;  %v1177_v20 = vld [vmem:[%s2138_s1 + $0x44] sm:$0xf]  ;;  %p1326_p13 = pneg %p1325_p12 }
  0x18   : > { %v1055_v21 = vld [vmem:[%s2138_s1 + $0x48] sm:$0xf0]  ;;  %v1054_v22 = vor.u32 %v1178_v19, %v1053_v18  ;;  %v1045_v24 = vld [vmem:[%s2138_s1 + $0x30] sm:$0xf]  ;;  %v1176_v25 = vld [vmem:[%s2138_s1 + $0x34] sm:$0xf0] }
  0x19   : > { %v1058_v23 = vor.u32 %v1177_v20, %v1055_v21  ;;  %v1175_v26 = vld [vmem:[%s2138_s1 + $0x34] sm:$0xf]  ;;  %v1047_v27 = vld [vmem:[%s2138_s1 + $0x38] sm:$0xf0]  ;;  %v1046_v28 = vor.u32 %v1176_v25, %v1045_v24  ;;  %v1037_v30 = vld [vmem:[%s2138_s1 + $0x20] sm:$0xf] }
  0x1a   : > { %359 = vmatpush.bf16.msra.mxu0 %v1070_v10  ;;  %v1050_v29 = vor.u32 %v1175_v26, %v1047_v27  ;;  %v1174_v31 = vld [vmem:[%s2138_s1 + $0x24] sm:$0xf0]  ;;  %v1173_v32 = vld [vmem:[%s2138_s1 + $0x24] sm:$0xf]  ;;  %v1039_v33 = vld [vmem:[%s2138_s1 + $0x28] sm:$0xf0] }
  0x1b   : > { %388 = vmatpush.bf16.msra.mxu1 %v1074_v11  ;;  %v1038_v34 = vor.u32 %v1174_v31, %v1037_v30  ;;  %v1042_v35 = vor.u32 %v1173_v32, %v1039_v33  ;;  %v1029_v36 = vld [vmem:[%s2138_s1 + $0x10] sm:$0xf]  ;;  %v1172_v37 = vld [vmem:[%s2138_s1 + $0x14] sm:$0xf0]  ;;  %s2200_s13 = smov (!%p219_p10, %s1001_s13), 15 }
  0x1c   : > { %v1171_v38 = vld [vmem:[%s2138_s1 + $0x14] sm:$0xf]  ;;  %v1031_v39 = vld [vmem:[%s2138_s1 + $0x18] sm:$0xf0]  ;;  %v1030_v40 = vor.u32 %v1172_v37, %v1029_v36  ;;  %v1021_v42 = vld [vmem:[%s2138_s1] sm:$0xf] }
  0x1d   : > { %v1034_v41 = vor.u32 %v1171_v38, %v1031_v39  ;;  %v1170_v43 = vld [vmem:[%s2138_s1 + $0x4] sm:$0xf0]  ;;  %s1002_s25 = sshll.u32 %s2200_s13, 2  ;;  %v1169_v44 = vld [vmem:[%s2138_s1 + $0x4] sm:$0xf] }
  0x1e   : > { %360 = vmatpush.bf16.msra.mxu0 %v1062_v16  ;;  %v1023_v45 = vld [vmem:[%s2138_s1 + $0x8] sm:$0xf0]  ;;  %v1022_v46 = vor.u32 %v1170_v43, %v1021_v42  ;;  %s222_s10 = scalar_lea.vmem %s2137_s0, %s1002_s25  ;;  %v248_v52 = vld [vmem:[%s2139_s2] sm:$0x3]  ;;  %s217_s25 = scalar_lea.vmem [#allocation2], %s216_s12 }
  0x1f   : > { %389 = vmatpush.bf16.msra.mxu1 %v1066_v17  ;;  %v1026_v47 = vor.u32 %v1169_v44, %v1023_v45  ;;  %v1165_v48 = vld [vmem:[%s222_s10] sm:$0xff]  ;;  %v1166_v49 = vld [vmem:[%s222_s10 + $0x8] sm:$0xff]  ;;  %v1167_v50 = vld [vmem:[%s222_s10 + $0x10] sm:$0xff]  ;;  %v1553_v53 = vperm.slane %v248_v52, 0  ;;  %v1555_v54 = vperm.slane %v248_v52, 1  ;;  %s940_s26 = sshll.u32 %s217_s25, 4  ;;  %s941_s26 = int_to_ptr.vmem [resolvable:$true] %s940_s26 }
  0x20   : > { %v1168_v51 = vld [vmem:[%s222_s10 + $0x18] sm:$0xff]  ;;  %s1327_s10 = scalar_lea.hbm %s2142_s5, 2 }
  0x21   : > { %p1329_p1 = scmp.lt.s32.totalorder %s1327_s10, %s1323_s8 }
  0x22   : > { %361 = vmatpush.bf16.msra.mxu0 %v1054_v22 }
  0x23   : > { %390 = vmatpush.bf16.msra.mxu1 %v1058_v23  ;;  %p1330_p2 = por %p1329_p1, %p1328_p0 }
  0x25   : > { %p1331_p3 = pnand %p1330_p2, %p1326_p13 }
  0x26   : > { %362 = vmatpush.bf16.msra.mxu0 %v1046_v28 }
  0x27   : > { %391 = vmatpush.bf16.msra.mxu1 %v1050_v29 }
  0x2a   : > { %363 = vmatpush.bf16.msra.mxu0 %v1038_v34 }
  0x2b   : > { %392 = vmatpush.bf16.msra.mxu1 %v1042_v35 }
  0x2e   : > { %364 = vmatpush.bf16.msra.mxu0 %v1030_v40 }
  0x2f   : > { %393 = vmatpush.bf16.msra.mxu1 %v1034_v41 }
  0x32   : > { %365 = vmatpush.bf16.msra.mxu0 %v1022_v46 }
  0x33   : > { %394 = vmatpush.bf16.msra.mxu1 %v1026_v47 }
  0x35   : > { %366 = vmatmul.bf16.vlgmr.msra.gmra.mxu0 %v1165_v48 }
  0x36   : > { %395 = vmatmul.bf16.vlgmr.msra.gmra.mxu1 %v1165_v48 }
  0x45   : > { %371 = vmatmul.bf16.gmra.mxu0 %v1166_v49 }
  0x46   : > { %400 = vmatmul.bf16.gmra.mxu1 %v1166_v49 }
  0x55   : > { %376 = vmatmul.bf16.gmra.mxu0 %v1167_v50 }
  0x56   : > { %405 = vmatmul.bf16.gmra.mxu1 %v1167_v50 }
  0x65   : > { %381 = vmatmul.bf16.gmra.mxu0 %v1168_v51 }
  0x66   : > { %410 = vmatmul.bf16.gmra.mxu1 %v1168_v51 }
  0xb2   : > { %v367_v55 = vpop.f32.mrf.mxu0 }
  0xb3   : > { %v1558_v56 = vadd.f32 %v367_v55, %v1553_v53  ;;  %v396_v57 = vpop.f32.mrf.mxu1 }
  0xb4   : > { %v1561_v58 = vadd.f32 %v396_v57, %v1555_v54 }
  0xb5   : > { %v1083_v59 = vmul.f32 -1.442695, %v1558_v56 }
  0xb6   : > { %v1084_v60 = vmul.f32 -1.442695, %v1561_v58 }
  0xb7   : > { %1241 = vpow2.f32 %v1083_v59 }
  0xb8   : > { %1243 = vpow2.f32 %v1084_v60 }
  0xba   : > { %v369_v61 = vpop.f32.mrf.mxu0 }
  0xbb   : > { %v1566_v62 = vadd.f32 %v369_v61, %v1553_v53  ;;  %v398_v63 = vpop.f32.mrf.mxu1 }
  0xbc   : > { %v1569_v0 = vadd.f32 %v398_v63, %v1555_v54 }
  0xbd   : > { %v1242_v1 = vpop.eup %1241  ;;  %v1085_v2 = vmul.f32 -1.442695, %v1566_v62 }
  0xbe   : > { %v1244_v3 = vpop.eup %1243  ;;  %v1572_v4 = vadd.f32 1.0, %v1242_v1  ;;  %v1086_v5 = vmul.f32 -1.442695, %v1569_v0 }
  0xbf   : > { %v1575_v6 = vadd.f32 1.0, %v1244_v3  ;;  %1245 = vpow2.f32 %v1085_v2 }
  0xc0   : > { %1247 = vrcp.f32 %v1572_v4  ;;  %vm485_vm0 = vweird.f32 %v1572_v4  ;;  %v489_v34 = vand.u32 2147483647, %v1572_v4  ;;  %v491_v35 = vand.u32 2147483648, %v1572_v4 }
  0xc1   : > { %1249 = vpow2.f32 %v1086_v5  ;;  %vm500_vm1 = vweird.f32 %v1575_v6  ;;  %v504_v37 = vand.u32 2147483647, %v1575_v6  ;;  %v506_v38 = vand.u32 2147483648, %v1575_v6 }
  0xc2   : > { %v372_v7 = vpop.f32.mrf.mxu0  ;;  %1251 = vrcp.f32 %v1575_v6  ;;  %v492_v49 = vor.u32 1.1754944e-38, %v491_v35  ;;  %vm1639_vm3 = vcmp.eq.f32.partialorder %v489_v34, 8.507059e+37 }
  0xc3   : > { %v1580_v8 = vadd.f32 %v372_v7, %v1553_v53  ;;  %v401_v9 = vpop.f32.mrf.mxu1  ;;  %vm1643_vm4 = vcmp.eq.f32.partialorder %v504_v37, 8.507059e+37  ;;  %v507_v5 = vor.u32 1.1754944e-38, %v506_v38 }
  0xc4   : > { %v1583_v10 = vadd.f32 %v401_v9, %v1555_v54 }
  0xc5   : > { %v1246_v11 = vpop.eup %1245  ;;  %v1087_v12 = vmul.f32 -1.442695, %v1580_v8 }
  0xc6   : > { %v1586_v13 = vadd.f32 1.0, %v1246_v11  ;;  %v1088_v14 = vmul.f32 -1.442695, %v1583_v10  ;;  %v1589_v15 = vpop.eup %1247 }
  0xc7   : > { %1253 = vpow2.f32 %v1087_v12  ;;  %v1250_v16 = vpop.eup %1249  ;;  %v481_v20 = vmul.f32 %v1589_v15, %v1572_v4  ;;  %vm486_vm2 = vweird.f32 %v1589_v15 }
  0xc8   : > { %1255 = vrcp.f32 %v1586_v13  ;;  %v1592_v17 = vpop.eup %1251  ;;  %v1594_v18 = vadd.f32 1.0, %v1250_v16  ;;  %v519_v50 = vand.u32 2147483647, %v1586_v13  ;;  %v521_v61 = vand.u32 2147483648, %v1586_v13  ;;  %vm1670_vm9 = vmor %vm485_vm0, %vm486_vm2 }
  0xc9   : > { %1257 = vpow2.f32 %v1088_v14  ;;  %v496_v22 = vmul.f32 %v1592_v17, %v1575_v6  ;;  %v482_v27 = vsub.f32 1.0, %v481_v20  ;;  %vm501_vm6 = vweird.f32 %v1592_v17 }
  0xca   : > { %v374_v19 = vpop.f32.mrf.mxu0  ;;  %1259 = vrcp.f32 %v1594_v18  ;;  %vm515_vm7 = vweird.f32 %v1586_v13  ;;  %v534_v9 = vand.u32 2147483647, %v1594_v18  ;;  %vm1677_vm10 = vcmp.eq.f32.partialorder %v519_v50, 8.507059e+37  ;;  %vm1693_vm11 = vmor %vm500_vm1, %vm501_vm6 }
  0xcb   : > { %v403_v21 = vpop.f32.mrf.mxu1  ;;  %v1602_v24 = vadd.f32 %v374_v19, %v1553_v53  ;;  %v497_v31 = vsub.f32 1.0, %v496_v22  ;;  %v483_v41 = vmul.f32 %v1589_v15, %v482_v27  ;;  %v536_v19 = vand.u32 2147483648, %v1594_v18 }
  0xcc   : > { %v1613_v32 = vadd.f32 %v403_v21, %v1555_v54  ;;  %vm530_vm12 = vweird.f32 %v1594_v18  ;;  %vm1707_vm14 = vcmp.eq.f32.partialorder %v534_v9, 8.507059e+37 }
  0xcd   : > { %v1254_v23 = vpop.eup %1253  ;;  %v1089_v29 = vmul.f32 -1.442695, %v1602_v24  ;;  %v498_v45 = vmul.f32 %v1592_v17, %v497_v31  ;;  %v484_v60 = vadd.f32 %v1589_v15, %v483_v41  ;;  %v1200_v41 = vld [vmem:[%s2140_s3 + $0x78] sm:$0xff] }
  0xce   : > { %v1604_v25 = vpop.eup %1255  ;;  %v1606_v26 = vadd.f32 1.0, %v1254_v23  ;;  %v1090_v47 = vmul.f32 -1.442695, %v1613_v32  ;;  %915 = vmatpush.bf16.msra.mxu3 %v1200_v41 }
  0xcf   : > { %v511_v28 = vmul.f32 %v1604_v25, %v1586_v13  ;;  %v1258_v30 = vpop.eup %1257  ;;  %vm516_vm5 = vweird.f32 %v1604_v25  ;;  %v499_v1 = vadd.f32 %v1592_v17, %v498_v45  ;;  %v488_v4 = vsel %vm1670_vm9, %v1589_v15, %v484_v60 }
  0xd0   : > { %1261 = vrcp.f32 %v1606_v26  ;;  %v1615_v33 = vpop.eup %1259  ;;  %v1627_v43 = vadd.f32 1.0, %v1258_v30  ;;  %vm1658_vm8 = vmor %vm515_vm7, %vm516_vm5  ;;  %v549_v37 = vand.u32 2147483647, %v1606_v26  ;;  %vm545_vm1 = vweird.f32 %v1606_v26 }
  0xd1   : > { %v512_v36 = vsub.f32 1.0, %v511_v28  ;;  %v526_v39 = vmul.f32 %v1615_v33, %v1594_v18  ;;  %1263 = vpow2.f32 %v1089_v29  ;;  %v503_v30 = vsel %vm1693_vm11, %v1592_v17, %v499_v1 }
  0xd2   : > { %v377_v40 = vpop.f32.mrf.mxu0  ;;  %1265 = vrcp.f32 %v1627_v43  ;;  %vm531_vm13 = vweird.f32 %v1615_v33  ;;  %v537_v17 = vor.u32 1.1754944e-38, %v536_v19  ;;  %vm1746_vm2 = vcmp.eq.f32.partialorder %v549_v37, 8.507059e+37 }
  0xd3   : > { %v513_v42 = vmul.f32 %v1604_v25, %v512_v36  ;;  %v406_v44 = vpop.f32.mrf.mxu1  ;;  %v527_v46 = vsub.f32 1.0, %v526_v39  ;;  %v1632_v48 = vadd.f32 %v377_v40, %v1553_v53  ;;  %1267 = vpow2.f32 %v1090_v47  ;;  %vm1723_vm15 = vmor %vm530_vm12, %vm531_vm13 }
  0xd4   : > { %v1664_v12 = vadd.f32 %v406_v44, %v1555_v54  ;;  %v493_v39 = vsel %vm1639_vm3, %v492_v49, %v488_v4  ;;  %v508_v40 = vsel %vm1643_vm4, %v507_v5, %v503_v30  ;;  %v566_v47 = vand.u32 2147483648, %v1627_v43 }
  0xd5   : > { %v514_v57 = vadd.f32 %v1604_v25, %v513_v42  ;;  %v1091_v59 = vmul.f32 -1.442695, %v1632_v48  ;;  %v528_v2 = vmul.f32 %v1615_v33, %v527_v46  ;;  %v551_v42 = vand.u32 2147483648, %v1606_v26 }
  0xd6   : > { %v1637_v51 = vpop.eup %1261  ;;  %v1092_v27 = vmul.f32 -1.442695, %v1664_v12  ;;  %v720_v52 = vmul.f32 %v493_v39, %v1558_v56  ;;  %vm560_vm3 = vweird.f32 %v1627_v43  ;;  %v1764_v1 = vor.u32 1.1754944e-38, %v566_v47 }
  0xd7   : > { %v541_v63 = vmul.f32 %v1637_v51, %v1606_v26  ;;  %1269 = vpow2.f32 %v1091_v59  ;;  %v1264_v3 = vpop.eup %1263  ;;  %v518_v14 = vsel %vm1658_vm8, %v1604_v25, %v514_v57  ;;  %v522_v25 = vor.u32 1.1754944e-38, %v521_v61 }
  0xd8   : > { %v1682_v20 = vadd.f32 1.0, %v1264_v3  ;;  %v1684_v22 = vpop.eup %1265  ;;  %v529_v15 = vadd.f32 %v1615_v33, %v528_v2  ;;  %vm546_vm0 = vweird.f32 %v1637_v51  ;;  %v552_v59 = vor.u32 1.1754944e-38, %v551_v42 }
  0xd9   : > { %v542_v11 = vsub.f32 1.0, %v541_v63  ;;  %v1268_v29 = vpop.eup %1267  ;;  %v523_v6 = vsel %vm1677_vm10, %v522_v25, %v518_v14  ;;  %v556_v35 = vmul.f32 %v1684_v22, %v1627_v43  ;;  %vm1759_vm4 = vmor %vm545_vm1, %vm546_vm0  ;;  %v564_v63 = vand.u32 2147483647, %v1627_v43 }
  0xda   : > { %v379_v21 = vpop.f32.mrf.mxu0  ;;  %1271 = vrcp.f32 %v1682_v20  ;;  %v1715_v38 = vadd.f32 1.0, %v1268_v29  ;;  %v722_v45 = vmul.f32 %v523_v6, %v1566_v62  ;;  %v533_v46 = vsel %vm1723_vm15, %v1615_v33, %v529_v15 }
  0xdb   : > { %v408_v28 = vpop.f32.mrf.mxu1  ;;  %v543_v34 = vmul.f32 %v1637_v51, %v542_v11  ;;  %1273 = vpow2.f32 %v1092_v27  ;;  %v557_v49 = vsub.f32 1.0, %v556_v35  ;;  %v1743_v62 = vmul.f32 %v508_v40, %v1561_v58  ;;  %v1192_v40 = vld [vmem:[%s2140_s3 + $0x38] sm:$0xff] }
  0xdc   : > { %1275 = vrcp.f32 %v1715_v38  ;;  %v538_v57 = vsel %vm1707_vm14, %v537_v17, %v533_v46  ;;  %v1755_v58 = vadd.f32 %v722_v45, %v720_v52  ;;  %v581_v2 = vand.u32 2147483648, %v1682_v20  ;;  %902 = vmatpush.bf16.msra.mxu2 %v1192_v40  ;;  %v1197_v40 = vld [vmem:[%s2140_s3 + $0x60] sm:$0xff] }
  0xdd   : > { %v1270_v36 = vpop.eup %1269  ;;  %v544_v18 = vadd.f32 %v1637_v51, %v543_v34  ;;  %v558_v5 = vmul.f32 %v1684_v22, %v557_v49  ;;  %v1776_v13 = vmul.f32 %v538_v57, %v1569_v0  ;;  %vm561_vm5 = vweird.f32 %v1684_v22 }
  0xde   : > { %v1728_v44 = vadd.f32 1.0, %v1270_v36  ;;  %v1780_v14 = vadd.f32 %v379_v21, %v1553_v53  ;;  %v1783_v16 = vadd.f32 %v408_v28, %v1555_v54  ;;  %vm575_vm6 = vweird.f32 %v1682_v20  ;;  %vm1833_vm10 = vmor %vm560_vm3, %vm561_vm5 }
  0xdf   : > { %v548_v3 = vsel %vm1759_vm4, %v1637_v51, %v544_v18  ;;  %v579_v51 = vand.u32 2147483647, %v1682_v20  ;;  %v1794_v23 = vor.u32 1.1754944e-38, %v581_v2  ;;  %v559_v27 = vadd.f32 %v1684_v22, %v558_v5 }
  0xe0   : > { %1277 = vrcp.f32 %v1728_v44  ;;  %v1739_v50 = vpop.eup %1271  ;;  %v553_v0 = vsel %vm1746_vm2, %v552_v59, %v548_v3  ;;  %vm1802_vm7 = vcmp.eq.f32.partialorder %v564_v63, 8.507059e+37  ;;  %vm590_vm8 = vweird.f32 %v1715_v38  ;;  %v1191_v59 = vld [vmem:[%s2140_s3 + $0x30] sm:$0xff] }
  0xe1   : > { %v571_v60 = vmul.f32 %v1739_v50, %v1682_v20  ;;  %v1274_v61 = vpop.eup %1273  ;;  %v1093_v31 = vmul.f32 -1.442695, %v1780_v14  ;;  %v1094_v34 = vmul.f32 -1.442695, %v1783_v16  ;;  %v1814_v35 = vmul.f32 %v553_v0, %v1580_v8  ;;  %903 = vmatpush.bf16.msra.mxu2 %v1191_v59 }
  0xe2   : > { %v382_v55 = vpop.f32.mrf.mxu0  ;;  %v1771_v9 = vadd.f32 1.0, %v1274_v61  ;;  %v1773_v11 = vpop.eup %1275  ;;  %vm1816_vm9 = vcmp.eq.f32.partialorder %v579_v51, 8.507059e+37  ;;  %v594_v37 = vand.u32 2147483647, %v1715_v38  ;;  %v596_v39 = vand.u32 2147483648, %v1715_v38 }
  0xe3   : > { %v411_v56 = vpop.f32.mrf.mxu1  ;;  %v572_v7 = vsub.f32 1.0, %v571_v60  ;;  %v586_v4 = vmul.f32 %v1773_v11, %v1715_v38  ;;  %v1799_v25 = vadd.f32 %v382_v55, %v1553_v53  ;;  %vm576_vm11 = vweird.f32 %v1739_v50  ;;  %v1199_v60 = vld [vmem:[%s2140_s3 + $0x70] sm:$0xff] }
  0xe4   : > { %1279 = vrcp.f32 %v1771_v9  ;;  %v1808_v15 = vadd.f32 %v411_v56, %v1555_v54  ;;  %v563_v18 = vsel %vm1833_vm10, %v1684_v22, %v559_v27  ;;  %vm591_vm12 = vweird.f32 %v1773_v11  ;;  %vm1866_vm14 = vmor %vm575_vm6, %vm576_vm11  ;;  %916 = vmatpush.bf16.msra.mxu3 %v1199_v60  ;;  %v1198_v27 = vld [vmem:[%s2140_s3 + $0x68] sm:$0xff] }
  0xe5   : > { %v573_v29 = vmul.f32 %v1739_v50, %v572_v7  ;;  %v587_v30 = vsub.f32 1.0, %v586_v4  ;;  %1281 = vpow2.f32 %v1093_v31  ;;  %v1095_v45 = vmul.f32 -1.442695, %v1799_v25  ;;  %vm1882_vm0 = vmor %vm590_vm8, %vm591_vm12 }
  0xe6   : > { %v1785_v19 = vpop.eup %1277  ;;  %1283 = vpow2.f32 %v1094_v34  ;;  %v1096_v49 = vmul.f32 -1.442695, %v1808_v15  ;;  %vm605_vm15 = vweird.f32 %v1728_v44  ;;  %vm1886_vm1 = vcmp.eq.f32.partialorder %v594_v37, 8.507059e+37 }
  0xe7   : > { %v601_v21 = vmul.f32 %v1785_v19, %v1728_v44  ;;  %v588_v17 = vmul.f32 %v1773_v11, %v587_v30  ;;  %v574_v43 = vadd.f32 %v1739_v50, %v573_v29  ;;  %1285 = vpow2.f32 %v1095_v45 }
  0xe8   : > { %vm606_vm13 = vweird.f32 %v1785_v19  ;;  %1287 = vpow2.f32 %v1096_v49  ;;  %v609_v3 = vand.u32 2147483647, %v1728_v44  ;;  %v597_v0 = vor.u32 1.1754944e-38, %v596_v39  ;;  %917 = vmatpush.bf16.msra.mxu3 %v1198_v27  ;;  %v1189_v39 = vld [vmem:[%s2140_s3 + $0x20] sm:$0xff]  ;;  %v1194_v27 = vld [vmem:[%s2140_s3 + $0x48] sm:$0xff] }
  0xe9   : > { %v602_v6 = vsub.f32 1.0, %v601_v21  ;;  %v589_v33 = vadd.f32 %v1773_v11, %v588_v17  ;;  %v578_v63 = vsel %vm1866_vm14, %v1739_v50, %v574_v43  ;;  %v568_v50 = vsel %vm1802_vm7, %v1764_v1, %v563_v18  ;;  %vm1900_vm2 = vmor %vm605_vm15, %vm606_vm13 }
  0xea   : > { %v384_v46 = vpop.f32.mrf.mxu0  ;;  %v1840_v47 = vpop.eup %1279  ;;  %v583_v29 = vsel %vm1816_vm9, %v1794_v23, %v578_v63  ;;  %v725_v31 = vmul.f32 %v568_v50, %v1583_v10  ;;  %vm610_vm3 = vcmp.eq.f32.partialorder %v609_v3, 8.507059e+37  ;;  %v749_v23 = vadd.f32 %v1776_v13, %v1743_v62  ;;  %v1195_v63 = vld [vmem:[%s2140_s3 + $0x50] sm:$0xff] }
  0xeb   : > { %v603_v42 = vmul.f32 %v1785_v19, %v602_v6  ;;  %v413_v52 = vpop.f32.mrf.mxu1  ;;  %v616_v55 = vmul.f32 %v1840_v47, %v1771_v9  ;;  %v1854_v22 = vadd.f32 %v384_v46, %v1553_v53  ;;  %v611_v53 = vand.u32 2147483648, %v1728_v44  ;;  %v1282_v5 = vpop.eup %1281 }
  0xec   : > { %v1873_v26 = vadd.f32 %v413_v52, %v1555_v54  ;;  %v593_v38 = vsel %vm1882_vm0, %v1773_v11, %v589_v33  ;;  %v1284_v4 = vpop.eup %1283  ;;  %v1909_v21 = vadd.f32 1.0, %v1282_v5  ;;  %v1190_v11 = vld [vmem:[%s2140_s3 + $0x28] sm:$0xff]  ;;  %vm621_vm4 = vweird.f32 %v1840_v47  ;;  %918 = vmatpush.bf16.msra.mxu3 %v1197_v40 }
  0xed   : > { %v604_v57 = vadd.f32 %v1785_v19, %v603_v42  ;;  %v617_v61 = vsub.f32 1.0, %v616_v55  ;;  %v1097_v54 = vmul.f32 -1.442695, %v1854_v22  ;;  %v1286_v28 = vpop.eup %1285  ;;  %v612_v30 = vor.u32 1.1754944e-38, %v611_v53  ;;  %904 = vmatpush.bf16.msra.mxu2 %v1190_v11 }
  0xee   : > { %v1098_v51 = vmul.f32 -1.442695, %v1873_v26  ;;  %v1920_v6 = vadd.f32 1.0, %v1284_v4  ;;  %v598_v34 = vsel %vm1886_vm1, %v597_v0, %v593_v38  ;;  %v726_v10 = vmul.f32 %v583_v29, %v1602_v24 }
  0xef   : > { %v618_v44 = vmul.f32 %v1840_v47, %v617_v61  ;;  %v608_v1 = vsel %vm1900_vm2, %v1785_v19, %v604_v57  ;;  %1289 = vpow2.f32 %v1097_v54  ;;  %v1288_v19 = vpop.eup %1287  ;;  %vm620_vm5 = vweird.f32 %v1771_v9  ;;  %v1187_v61 = vld [vmem:[%s2140_s3 + $0x10] sm:$0xff] }
  0xf0   : > { %1291 = vpow2.f32 %v1098_v51  ;;  %v613_v17 = vsel %vm610_vm3, %v612_v30, %v608_v1  ;;  %v626_v36 = vand.u32 2147483648, %v1771_v9  ;;  %v727_v41 = vmul.f32 %v598_v34, %v1613_v32  ;;  %vm1951_vm6 = vmor %vm620_vm5, %vm621_vm4 }
  0xf1   : > { %1293 = vrcp.f32 %v1909_v21  ;;  %v619_v37 = vadd.f32 %v1840_v47, %v618_v44  ;;  %v624_v8 = vand.u32 2147483647, %v1771_v9  ;;  %v1942_v42 = vadd.f32 1.0, %v1286_v28  ;;  %905 = vmatpush.bf16.msra.mxu2 %v1189_v39 }
  0xf2   : > { %1295 = vrcp.f32 %v1920_v6  ;;  %v1944_v62 = vadd.f32 1.0, %v1288_v19  ;;  %v737_v13 = vadd.f32 %v1755_v58, %v1814_v35  ;;  %v728_v45 = vmul.f32 %v613_v17, %v1632_v48  ;;  %v1188_v48 = vld [vmem:[%s2140_s3 + $0x18] sm:$0xff] }
  0xf3   : > { %v750_v9 = vadd.f32 %v749_v23, %v725_v31  ;;  %v623_v18 = vsel %vm1951_vm6, %v1840_v47, %v619_v37  ;;  %1297 = vrcp.f32 %v1942_v42  ;;  %v1196_v58 = vld [vmem:[%s2140_s3 + $0x58] sm:$0xff]  ;;  %v627_v49 = vor.u32 1.1754944e-38, %v626_v36 }
  0xf4   : > { %v738_v43 = vadd.f32 %v737_v13, %v726_v10  ;;  %v639_v52 = vand.u32 2147483647, %v1909_v21  ;;  %1299 = vrcp.f32 %v1944_v62  ;;  %vm625_vm7 = vcmp.eq.f32.partialorder %v624_v8, 8.507059e+37  ;;  %919 = vmatpush.bf16.msra.mxu3 %v1196_v58 }
  0xf5   : > { %v1290_v24 = vpop.eup %1289  ;;  %v1971_v47 = vadd.f32 %v750_v9, %v727_v41  ;;  %v641_v57 = vand.u32 2147483648, %v1909_v21  ;;  %v628_v60 = vsel %vm625_vm7, %v627_v49, %v623_v18  ;;  %v656_v53 = vand.u32 2147483648, %v1920_v6  ;;  %906 = vmatpush.bf16.msra.mxu2 %v1188_v48  ;;  %v1193_v41 = vld [vmem:[%s2140_s3 + $0x40] sm:$0xff] }
  0xf6   : > { %v1292_v32 = vpop.eup %1291  ;;  %v1976_v59 = vadd.f32 %v738_v43, %v728_v45  ;;  %vm635_vm8 = vweird.f32 %v1909_v21  ;;  %v654_v2 = vand.u32 2147483647, %v1920_v6  ;;  %v1989_v3 = vadd.f32 1.0, %v1290_v24 }
  0xf7   : > { %v1965_v35 = vpop.eup %1293  ;;  %vm1991_vm9 = vcmp.eq.f32.partialorder %v639_v52, 8.507059e+37  ;;  %vm650_vm10 = vweird.f32 %v1920_v6  ;;  %v1996_v50 = vadd.f32 1.0, %v1292_v32  ;;  %v1999_v7 = vmul.f32 %v628_v60, %v1664_v12  ;;  %v1186_v12 = vld [vmem:[%s2140_s3 + $0x8] sm:$0xff] }
  0xf8   : > { %v1969_v33 = vpop.eup %1295  ;;  %v631_v55 = vmul.f32 %v1965_v35, %v1909_v21  ;;  %v642_v51 = vor.u32 1.1754944e-38, %v641_v57  ;;  %1301 = vrcp.f32 %v1989_v3  ;;  %vm636_vm11 = vweird.f32 %v1965_v35  ;;  %920 = vmatpush.bf16.msra.mxu3 %v1195_v63  ;;  %v1185_v21 = vld [vmem:[%s2140_s3] sm:$0xff] }
  0xf9   : > { %v646_v56 = vmul.f32 %v1969_v33, %v1920_v6  ;;  %v1298_v38 = vpop.eup %1297  ;;  %v657_v1 = vor.u32 1.1754944e-38, %v656_v53  ;;  %907 = vmatpush.bf16.msra.mxu2 %v1187_v61  ;;  %vm2015_vm12 = vcmp.eq.f32.partialorder %v654_v2, 8.507059e+37  ;;  %v669_v30 = vand.u32 2147483647, %v1942_v42  ;;  %vm2029_vm13 = vmor %vm635_vm8, %vm636_vm11 }
  0xfa   : > { %v632_v20 = vsub.f32 1.0, %v631_v55  ;;  %v2003_v4 = vpop.eup %1299  ;;  %v661_v11 = vmul.f32 %v1298_v38, %v1942_v42  ;;  %v671_v34 = vand.u32 2147483648, %v1942_v42  ;;  %v684_v17 = vand.u32 2147483647, %v1944_v62 }
  0xfb   : > { %v647_v5 = vsub.f32 1.0, %v646_v56  ;;  %v676_v19 = vmul.f32 %v2003_v4, %v1944_v62  ;;  %1303 = vrcp.f32 %v1996_v50  ;;  %vm651_vm14 = vweird.f32 %v1969_v33 }
  0xfc   : > { %v633_v44 = vmul.f32 %v1965_v35, %v632_v20  ;;  %v662_v31 = vsub.f32 1.0, %v661_v11  ;;  %v686_v36 = vand.u32 2147483648, %v1944_v62  ;;  %vm666_vm15 = vweird.f32 %v1298_v38  ;;  %921 = vmatpush.bf16.msra.mxu3 %v1194_v27  ;;  %vm2053_vm3 = vmor %vm650_vm10, %vm651_vm14 }
  0xfd   : > { %v648_v0 = vmul.f32 %v1969_v33, %v647_v5  ;;  %v677_v10 = vsub.f32 1.0, %v676_v19  ;;  %908 = vmatpush.bf16.msra.mxu2 %v1186_v12  ;;  %v1371_v8 = vmov 64.0   ;;  %vm665_vm0 = vweird.f32 %v1942_v42 }
  0xfe   : > { %v634_v28 = vadd.f32 %v1965_v35, %v633_v44  ;;  %v663_v40 = vmul.f32 %v1298_v38, %v662_v31  ;;  %1305 = vrcp.f32 %v1371_v8  ;;  %v1302_v24 = vpop.eup %1301  ;;  %vm680_vm1 = vweird.f32 %v1944_v62  ;;  %vm667_vm5 = vmor %vm665_vm0, %vm666_vm15 }
  0xff   : > { %v649_v23 = vadd.f32 %v1969_v33, %v648_v0  ;;  %v678_v13 = vmul.f32 %v2003_v4, %v677_v10  ;;  %vm681_vm2 = vweird.f32 %v2003_v4  ;;  %vm2057_vm4 = vcmp.eq.f32.partialorder %v669_v30, 8.507059e+37 }
 0x100   : > { %v638_v39 = vsel %vm2029_vm13, %v1965_v35, %v634_v28  ;;  %v664_v46 = vadd.f32 %v1298_v38, %v663_v40  ;;  %v672_v42 = vor.u32 1.1754944e-38, %v671_v34  ;;  %v691_v9 = vmul.f32 %v1302_v24, %v1989_v3  ;;  %vm2070_vm6 = vmor %vm680_vm1, %vm681_vm2  ;;  %922 = vmatpush.bf16.msra.mxu3 %v1193_v41 }
 0x101   : > { %v643_v62 = vsel %vm1991_vm9, %v642_v51, %v638_v39  ;;  %v653_v18 = vsel %vm2053_vm3, %v1969_v33, %v649_v23  ;;  %v679_v6 = vadd.f32 %v2003_v4, %v678_v13  ;;  %v701_v48 = vand.u32 2147483648, %v1989_v3  ;;  %v1304_v58 = vpop.eup %1303  ;;  %909 = vmatpush.bf16.msra.mxu2 %v1185_v21 }
 0x102   : > { %v668_v35 = vsel %vm667_vm5, %v1298_v38, %v664_v46  ;;  %vm2074_vm7 = vcmp.eq.f32.partialorder %v684_v17, 8.507059e+37  ;;  %v687_v52 = vor.u32 1.1754944e-38, %v686_v36  ;;  %v692_v55 = vsub.f32 1.0, %v691_v9 }
 0x103   : > { %v673_v33 = vsel %vm2057_vm4, %v672_v42, %v668_v35  ;;  %v683_v57 = vsel %vm2070_vm6, %v2003_v4, %v679_v6  ;;  %v699_v60 = vand.u32 2147483647, %v1989_v3  ;;  %v706_v56 = vmul.f32 %v1304_v58, %v1996_v50 }
 0x104   : > { %v1306_v53 = vpop.eup %1305  ;;  %v730_v61 = vmul.f32 %v643_v62, %v1780_v14  ;;  %v658_v63 = vsel %vm2015_vm12, %v657_v1, %v653_v18  ;;  %v693_v20 = vmul.f32 %v1302_v24, %v692_v55  ;;  %vm696_vm8 = vweird.f32 %v1302_v24  ;;  %v805_v62 = vld [vmem:[%s2141_s4] sm:$0x1] }
 0x105   : > { %vm695_vm9 = vweird.f32 %v1989_v3  ;;  %v702_v2 = vor.u32 1.1754944e-38, %v701_v48  ;;  %v707_v54 = vsub.f32 1.0, %v706_v56  ;;  %v714_v5 = vand.u32 2147483647, %v1996_v50 }
 0x106   : > { %v732_v38 = vmul.f32 %v673_v33, %v1799_v25  ;;  %v688_v44 = vsel %vm2074_vm7, %v687_v52, %v683_v57  ;;  %v694_v51 = vadd.f32 %v1302_v24, %v693_v20  ;;  %v716_v4 = vand.u32 2147483648, %v1996_v50  ;;  %vm697_vm10 = vmor %vm695_vm9, %vm696_vm8 }
 0x107   : > { %v731_v14 = vmul.f32 %v658_v63, %v1783_v16  ;;  %v708_v0 = vmul.f32 %v1304_v58, %v707_v54  ;;  %vm711_vm11 = vweird.f32 %v1304_v58  ;;  %v763_v1 = vmul.f32 64.0, %v1306_v53 }
 0x108   : > { %v752_v3 = vadd.f32 %v1971_v47, %v1999_v7  ;;  %v740_v11 = vadd.f32 %v1976_v59, %v730_v61  ;;  %v698_v12 = vsel %vm697_vm10, %v1302_v24, %v694_v51  ;;  %vm700_vm12 = vcmp.eq.f32.partialorder %v699_v60, 8.507059e+37 }
 0x109   : > { %v733_v25 = vmul.f32 %v688_v44, %v1808_v15  ;;  %v703_v27 = vsel %vm700_vm12, %v702_v2, %v698_v12  ;;  %v709_v28 = vadd.f32 %v1304_v58, %v708_v0  ;;  %vm710_vm13 = vweird.f32 %v1996_v50 }
 0x10a   : > { %v741_v29 = vadd.f32 %v740_v11, %v732_v38  ;;  %v734_v16 = vmul.f32 %v703_v27, %v1854_v22  ;;  %vm712_vm14 = vmor %vm710_vm13, %vm711_vm11  ;;  %v717_v30 = vor.u32 1.1754944e-38, %v716_v4  ;;  %v753_v19 = vadd.f32 %v752_v3, %v731_v14 }
 0x10b   : > { %v713_v31 = vsel %vm712_vm14, %v1304_v58, %v709_v28  ;;  %vm715_vm15 = vcmp.eq.f32.partialorder %v714_v5, 8.507059e+37  ;;  %v764_v34 = vsub.f32 1.0, %v763_v1  ;;  %vm767_vm0 = vweird.f32 %v1306_v53 }
 0x10c   : > { %v742_v47 = vadd.f32 %v741_v29, %v734_v16  ;;  %v718_v7 = vsel %vm715_vm15, %v717_v30, %v713_v31  ;;  %v754_v59 = vadd.f32 %v753_v19, %v733_v25 }
 0x10d   : > { %v735_v17 = vmul.f32 %v718_v7, %v1873_v26  ;;  %v765_v23 = vmul.f32 %v1306_v53, %v764_v34 }
 0x10e   : > { %v743_v37 = vrot.slane %v742_v47, 4 }
 0x10f   : > { %v755_v15 = vadd.f32 %v754_v59, %v735_v17  ;;  %v766_v40 = vadd.f32 %v1306_v53, %v765_v23 }
 0x110   : > { %v744_v10 = vadd.f32 %v743_v37, %v742_v47 }
 0x111   : > { %v756_v36 = vrot.slane %v755_v15, 4  ;;  %v768_v8 = vsel %vm767_vm0, %v1306_v53, %v766_v40 }
 0x112   : > { %v745_v50 = vrot.slane %v744_v10, 2 }
 0x113   : > { %v757_v39 = vadd.f32 %v756_v36, %v755_v15 }
 0x114   : > { %v746_v22 = vadd.f32 %v745_v50, %v744_v10 }
 0x115   : > { %v758_v21 = vrot.slane %v757_v39, 2 }
 0x116   : > { %v747_v41 = vrot.slane %v746_v22, 1 }
 0x117   : > { %v759_v24 = vadd.f32 %v758_v21, %v757_v39 }
 0x118   : > { %v748_v13 = vadd.f32 %v747_v41, %v746_v22 }
 0x119   : > { %v760_v45 = vrot.slane %v759_v24, 1 }
 0x11a   : > { %v769_v46 = vmul.f32 %v768_v8, %v748_v13 }
 0x11b   : > { %v761_v26 = vadd.f32 %v760_v45, %v759_v24 }
 0x11c   : > { %v771_v32 = vpack.c.bf16 %v769_v46, %v769_v46 }
 0x11d   : > { %v770_v42 = vmul.f32 %v768_v8, %v761_v26 }
 0x11e   : > { %910 = vmatmul.bf16.vlgmr.msra.gmra.mxu2 %v771_v32 }
 0x11f   : > { %v772_v9 = vpack.c.bf16 %v770_v42, %v770_v42 }
 0x121   : > { %923 = vmatmul.bf16.vlgmr.msra.gmra.mxu3 %v772_v9 }
 0x1a1   : > { %v911_v18 = vpop.f32.mrf.mxu2 }
 0x1a2   : > { %v912_v6 = vadd.f32 %v911_v18, %v805_v62 }
 0x1a4   : > { %v924_v48 = vpop.f32.mrf.mxu3 }
 0x1a5   : > { %v925_v58 = vadd.f32 %v924_v48, %v912_v6 }
 0x1a7   : > { %928 = vst [vmem:[%s217_s25] sm:$0x1] %v925_v58 }
 0x1a8   : > { %1334 = shalt.err (!%p1331_p3)
}
 0x1a9   : > { %1201 = dma.vmem_to_hbm [thread:$0]  (%p1440_p5), %s941_s26, 16, %s943_s30, %s930_s6   ;;  %v913_v35 = vpop.f32.mrf.mxu2 }
 0x1ac   : > { %v926_v43 = vpop.f32.mrf.mxu3 }
 0x1ad PF: > { %p1207_p4 = scmp.ge.s32.totalorder %s1369_s21, 2  ;;  %s954_s12 = sand.u32 1, %s1357_s18  }
 0x1ae   : > { %s955_s14 = scalar_lea.sflag [#allocation3], %s954_s12 }
 0x1af   : > { %p1204_p7 = pnand %p1207_p4, %p1444_p6 }
 0x1b1   : > { %p1205_p8 = pneg %p1204_p7 }
 0x1b3   : > { %1352 = dma.done.wait (%p1205_p8), %s955_s14, 16  }
 0x1b4   : > { %1354 = vsyncadd (%p1205_p8), %s955_s14, 4294967280  ;;  %p15_p5 = scmp.ge.s32.totalorder %s1427_s24, 4   ;;  %s2195_s18 = smov %s1361_s19 }
 0x1b5   : > { %s2196_s19 = smov %s1365_s20  ;;  %s2197_s20 = smov %s1438_s27 }
 0x1b6   : > { %s2198_s21 = smov %s1427_s24  ;;  %17 = sbr.rel (!%p15_p5) target bundleno = 3 (0x3), region = 75 }
 0x1bb   :  { %960 = vsyncpa [#allocation3], 1 }
 0x1bc   :  { %962 = vsyncpa [#allocation3 + $0x1], 1 }

// kernel: emotion_efficientnet_forward.4
= control target key start
LH: loop header
LB: loop body
LE: loop exit
PB: predicated region body
PF: predicated region fallthrough
CT: control target
= control target key end

     0   :  { %s3921_s13 = smov 0   ;;  %s6127_s0 = inlined_call_operand.vmem [shape: bf16[128,128], index: 0, kind: input, shape index: {}]   ;;  %s6128_s1 = inlined_call_operand.vmem [shape: bf16[128,256], index: 1, kind: input, shape index: {}]   ;;  %s6129_s2 = inlined_call_operand.vmem [shape: f32[1,256], index: 2, kind: input, shape index: {}]   ;;  %s6130_s3 = inlined_call_operand.vmem [shape: f32[9,256], index: 3, kind: input, shape index: {}]   ;;  %s6131_s4 = inlined_call_operand.vmem [shape: bf16[256,128], index: 4, kind: input, shape index: {}]   ;;  %s6132_s5 = inlined_call_operand.vmem [shape: f32[1,128], index: 5, kind: input, shape index: {}]   ;;  %s6133_s6 = inlined_call_operand.vmem [shape: bf16[128,256], index: 6, kind: input, shape index: {}]   ;;  %s6134_s7 = inlined_call_operand.vmem [shape: f32[1,256], index: 7, kind: input, shape index: {}]   ;;  %s6135_s8 = inlined_call_operand.vmem [shape: bf16[256,128], index: 8, kind: input, shape index: {}]   ;;  %s6136_s9 = inlined_call_operand.vmem [shape: f32[1,128], index: 9, kind: input, shape index: {}]   ;;  %s6137_s10 = inlined_call_operand.vmem [shape: bf16[128,128], index: 10, kind: output, shape index: {}]  }
   0x1 LB: > { %s3264_s14 = sadd.s32 4294967295, %s3862_s13   ;;  %p3268_p0 = scmp.ge.s32.totalorder %s3862_s13, 1  ;;  %s3862_s13 = sphi %s3921_s13, %s20_s13  }
   0x2   : > { %p313_p1 = scmp.lt.s32.totalorder %s3862_s13, 3 }
   0x4   : > { %p314_p2 = pnand %p3268_p0, %p313_p1 }
   0x6   : > { %317 = sbr.rel (%p314_p2) target bundleno = 1062 (0x426), region = 60 }
   0xb   : > { %v3347_v0 = vld [vmem:[%s6128_s1 + $0x70] sm:$0xf]  ;;  %v3609_v1 = vld [vmem:[%s6128_s1 + $0x74] sm:$0xf0]  ;;  %v3608_v2 = vld [vmem:[%s6128_s1 + $0x74] sm:$0xf] }
   0xc   : > { %v3348_v3 = vor.u32 %v3609_v1, %v3347_v0  ;;  %v3349_v4 = vld [vmem:[%s6128_s1 + $0x78] sm:$0xf0]  ;;  %v3339_v5 = vld [vmem:[%s6128_s1 + $0x60] sm:$0xf]  ;;  %v3607_v6 = vld [vmem:[%s6128_s1 + $0x64] sm:$0xf0] }
   0xd   : > { %v3352_v7 = vor.u32 %v3608_v2, %v3349_v4  ;;  %v3606_v8 = vld [vmem:[%s6128_s1 + $0x64] sm:$0xf]  ;;  %v3341_v9 = vld [vmem:[%s6128_s1 + $0x68] sm:$0xf0]  ;;  %v3340_v10 = vor.u32 %v3607_v6, %v3339_v5  ;;  %v3331_v12 = vld [vmem:[%s6128_s1 + $0x50] sm:$0xf] }
   0xe   : > { %497 = vmatpush.bf16.msra.mxu0 %v3348_v3  ;;  %3681 = vmatpush.bf16.msra.mxu2 %v3348_v3  ;;  %v3344_v11 = vor.u32 %v3606_v8, %v3341_v9  ;;  %v3605_v13 = vld [vmem:[%s6128_s1 + $0x54] sm:$0xf0]  ;;  %v3604_v14 = vld [vmem:[%s6128_s1 + $0x54] sm:$0xf]  ;;  %v3333_v15 = vld [vmem:[%s6128_s1 + $0x58] sm:$0xf0] }
   0xf   : > { %526 = vmatpush.bf16.msra.mxu1 %v3352_v7  ;;  %3689 = vmatpush.bf16.msra.mxu3 %v3352_v7  ;;  %v3332_v16 = vor.u32 %v3605_v13, %v3331_v12  ;;  %v3336_v17 = vor.u32 %v3604_v14, %v3333_v15  ;;  %v3323_v18 = vld [vmem:[%s6128_s1 + $0x40] sm:$0xf]  ;;  %v3603_v19 = vld [vmem:[%s6128_s1 + $0x44] sm:$0xf0]  ;;  %v3602_v20 = vld [vmem:[%s6128_s1 + $0x44] sm:$0xf] }
  0x10   : > { %v3325_v21 = vld [vmem:[%s6128_s1 + $0x48] sm:$0xf0]  ;;  %v3324_v22 = vor.u32 %v3603_v19, %v3323_v18  ;;  %v3315_v24 = vld [vmem:[%s6128_s1 + $0x30] sm:$0xf]  ;;  %v3601_v25 = vld [vmem:[%s6128_s1 + $0x34] sm:$0xf0] }
  0x11   : > { %v3328_v23 = vor.u32 %v3602_v20, %v3325_v21  ;;  %v3600_v26 = vld [vmem:[%s6128_s1 + $0x34] sm:$0xf]  ;;  %v3317_v27 = vld [vmem:[%s6128_s1 + $0x38] sm:$0xf0]  ;;  %s3269_s19 = sshll.u32 %s3264_s14, 3  ;;  %v3316_v28 = vor.u32 %v3601_v25, %v3315_v24  ;;  %v3864_v54 = vmov 0.0  }
  0x12   : > { %498 = vmatpush.bf16.msra.mxu0 %v3340_v10  ;;  %3682 = vmatpush.bf16.msra.mxu2 %v3340_v10  ;;  %v3320_v29 = vor.u32 %v3600_v26, %v3317_v27  ;;  %v3307_v30 = vld [vmem:[%s6128_s1 + $0x20] sm:$0xf]  ;;  %v3599_v31 = vld [vmem:[%s6128_s1 + $0x24] sm:$0xf0]  ;;  %p352_p3 = scmp.lt.s32.totalorder %s3269_s19, 15  ;;  %879 = vst [vmem:[#allocation2 + $0x120] sm:$0xff] %v3864_v54 }
  0x13   : > { %527 = vmatpush.bf16.msra.mxu1 %v3344_v11  ;;  %3690 = vmatpush.bf16.msra.mxu3 %v3344_v11  ;;  %v3598_v32 = vld [vmem:[%s6128_s1 + $0x24] sm:$0xf]  ;;  %v3309_v33 = vld [vmem:[%s6128_s1 + $0x28] sm:$0xf0]  ;;  %v3308_v34 = vor.u32 %v3599_v31, %v3307_v30  ;;  %v3299_v36 = vld [vmem:[%s6128_s1 + $0x10] sm:$0xf] }
  0x14   : > { %v3312_v35 = vor.u32 %v3598_v32, %v3309_v33  ;;  %v3597_v37 = vld [vmem:[%s6128_s1 + $0x14] sm:$0xf0]  ;;  %s6415_s19 = smov (!%p352_p3, %s3269_s19), 15  ;;  %v3596_v38 = vld [vmem:[%s6128_s1 + $0x14] sm:$0xf]  ;;  %875 = vst [vmem:[#allocation2 + $0xb0] sm:$0xff] %v3864_v54 }
  0x15   : > { %v3301_v39 = vld [vmem:[%s6128_s1 + $0x18] sm:$0xf0]  ;;  %v3300_v40 = vor.u32 %v3597_v37, %v3299_v36  ;;  %v3291_v42 = vld [vmem:[%s6128_s1] sm:$0xf]  ;;  %v3595_v43 = vld [vmem:[%s6128_s1 + $0x4] sm:$0xf0] }
  0x16   : > { %499 = vmatpush.bf16.msra.mxu0 %v3332_v16  ;;  %3683 = vmatpush.bf16.msra.mxu2 %v3332_v16  ;;  %v3304_v41 = vor.u32 %v3596_v38, %v3301_v39  ;;  %s3270_s22 = sshll.u32 %s6415_s19, 2  ;;  %v3594_v44 = vld [vmem:[%s6128_s1 + $0x4] sm:$0xf]  ;;  %v3293_v45 = vld [vmem:[%s6128_s1 + $0x8] sm:$0xf0]  ;;  %v3292_v46 = vor.u32 %v3595_v43, %v3291_v42  ;;  %876 = vst [vmem:[#allocation2 + $0xd0] sm:$0xff] %v3864_v54 }
  0x17   : > { %528 = vmatpush.bf16.msra.mxu1 %v3336_v17  ;;  %3691 = vmatpush.bf16.msra.mxu3 %v3336_v17  ;;  %s4035_s28 = scalar_lea.vmem %s6127_s0, %s3270_s22  ;;  %v3296_v47 = vor.u32 %v3594_v44, %v3293_v45  ;;  %v387_v52 = vld [vmem:[%s6129_s2] sm:$0x3]  ;;  %881 = vst [vmem:[#allocation2 + $0xf8] sm:$0x3] %v3864_v54  ;;  %s6115_s11 = scalar_lea.vmem %s6137_s10, %s3270_s22 }
  0x18   : > { %v3590_v48 = vld [vmem:[%s4035_s28] sm:$0xff]  ;;  %v3592_v49 = vld [vmem:[%s4035_s28 + $0x10] sm:$0xff]  ;;  %v3591_v50 = vld [vmem:[%s4035_s28 + $0x8] sm:$0xff]  ;;  %v4044_v53 = vperm.slane %v387_v52, 0  ;;  %v4048_v55 = vperm.slane %v387_v52, 1  ;;  %880 = vst [vmem:[#allocation2 + $0x38] sm:$0xff] %v3864_v54 }
  0x19   : > { %v3593_v51 = vld [vmem:[%s4035_s28 + $0x18] sm:$0xff]  ;;  %877 = vst [vmem:[#allocation2 + $0x10] sm:$0x3] %v3864_v54  ;;  %v3369_v8 = vld [vmem:[%s6130_s3 + $0x1] ss:$8 sm:$0x3] }
  0x1a   : > { %500 = vmatpush.bf16.msra.mxu0 %v3324_v22  ;;  %3684 = vmatpush.bf16.msra.mxu2 %v3324_v22  ;;  %878 = vst [vmem:[#allocation2 + $0x48] sm:$0x3] %v3864_v54  ;;  %v4097_v13 = vld [vmem:[%s6130_s3 + $0x2] ss:$8 sm:$0x3]  ;;  %v4120_v21 = vperm.slane %v3369_v8, 0 }
  0x1b   : > { %529 = vmatpush.bf16.msra.mxu1 %v3328_v23  ;;  %3692 = vmatpush.bf16.msra.mxu3 %v3328_v23  ;;  %882 = vst [vmem:[#allocation2 + $0x100] sm:$0x3] %v3864_v54  ;;  %v1012_v14 = vld [vmem:[%s6130_s3] ss:$8 sm:$0x3]  ;;  %v4123_v22 = vperm.slane %v4097_v13, 0 }
  0x1c   : > { %883 = vst [vmem:[#allocation2 + $0x80] sm:$0xff] %v3864_v54  ;;  %v4109_v17 = vld [vmem:[%s6130_s3 + $0x3] ss:$8 sm:$0x3]  ;;  %v4131_v25 = vperm.slane %v1012_v14, 0  ;;  %v4137_v27 = vperm.slane %v1012_v14, 1 }
  0x1d   : > { %884 = vst [vmem:[#allocation2 + $0x108] sm:$0xff] %v3864_v54  ;;  %v4115_v19 = vld [vmem:[%s6130_s3 + $0x4] ss:$8 sm:$0x3]  ;;  %v4134_v26 = vperm.slane %v4109_v17, 0 }
  0x1e   : > { %501 = vmatpush.bf16.msra.mxu0 %v3316_v28  ;;  %3685 = vmatpush.bf16.msra.mxu2 %v3316_v28  ;;  %885 = vst [vmem:[#allocation2 + $0x138] sm:$0x3] %v3864_v54  ;;  %v4139_v28 = vperm.slane %v3369_v8, 1  ;;  %v4142_v30 = vperm.slane %v4115_v19, 0 }
  0x1f   : > { %530 = vmatpush.bf16.msra.mxu1 %v3320_v29  ;;  %3693 = vmatpush.bf16.msra.mxu3 %v3320_v29  ;;  %886 = vst [vmem:[#allocation2 + $0xf0] sm:$0x3] %v3864_v54  ;;  %v4147_v31 = vld [vmem:[%s6130_s3 + $0x5] ss:$8 sm:$0x3] }
  0x20   : > { %887 = vst [vmem:[#allocation2 + $0x18] sm:$0xff] %v3864_v54  ;;  %v4163_v43 = vperm.slane %v4147_v31, 0 }
  0x21   : > { %888 = vst [vmem:[#allocation2 + $0xc8] sm:$0xff] %v3864_v54 }
  0x22   : > { %502 = vmatpush.bf16.msra.mxu0 %v3308_v34  ;;  %3686 = vmatpush.bf16.msra.mxu2 %v3308_v34  ;;  %889 = vst [vmem:[#allocation2 + $0x70] sm:$0x3] %v3864_v54 }
  0x23   : > { %531 = vmatpush.bf16.msra.mxu1 %v3312_v35  ;;  %3694 = vmatpush.bf16.msra.mxu3 %v3312_v35  ;;  %890 = vst [vmem:[#allocation2 + $0x20] sm:$0x3] %v3864_v54 }
  0x24   : > { %891 = vst [vmem:[#allocation2 + $0x128] sm:$0xff] %v3864_v54 }
  0x25   : > { %892 = vst [vmem:[#allocation2 + $0x110] sm:$0xff] %v3864_v54 }
  0x26   : > { %503 = vmatpush.bf16.msra.mxu0 %v3300_v40  ;;  %3687 = vmatpush.bf16.msra.mxu2 %v3300_v40  ;;  %893 = vst [vmem:[#allocation2 + $0x8] sm:$0x3] %v3864_v54 }
  0x27   : > { %532 = vmatpush.bf16.msra.mxu1 %v3304_v41  ;;  %3695 = vmatpush.bf16.msra.mxu3 %v3304_v41  ;;  %894 = vst [vmem:[#allocation2 + $0x98] sm:$0x3] %v3864_v54 }
  0x28   : > { %895 = vst [vmem:[#allocation2 + $0xa8] sm:$0xff] %v3864_v54 }
  0x29   : > { %896 = vst [vmem:[#allocation2 + $0x90] sm:$0xff] %v3864_v54 }
  0x2a   : > { %504 = vmatpush.bf16.msra.mxu0 %v3292_v46  ;;  %3688 = vmatpush.bf16.msra.mxu2 %v3292_v46  ;;  %6171 = vst [vmem:[#allocation3_spill] sm:$0xff] %v4134_v26 }
  0x2b   : > { %533 = vmatpush.bf16.msra.mxu1 %v3296_v47  ;;  %3696 = vmatpush.bf16.msra.mxu3 %v3296_v47  ;;  %897 = vst [vmem:[#allocation2 + $0xe0] sm:$0x3] %v3864_v54 }
  0x2c   : > { %898 = vst [vmem:[#allocation2 + $0x88] sm:$0x3] %v3864_v54 }
  0x2d   : > { %505 = vmatmul.bf16.vlgmr.msra.gmra.mxu0 %v3590_v48  ;;  %515 = vmatmul.bf16.vlgmr.msra.gmra.mxu2 %v3592_v49  ;;  %899 = vst [vmem:[#allocation2 + $0xc0] sm:$0xff] %v3864_v54 }
  0x2e   : > { %534 = vmatmul.bf16.vlgmr.msra.gmra.mxu1 %v3590_v48  ;;  %544 = vmatmul.bf16.vlgmr.msra.gmra.mxu3 %v3592_v49  ;;  %900 = vst [vmem:[#allocation2 + $0x118] sm:$0xff] %v3864_v54 }
  0x2f   : > { %901 = vst [vmem:[#allocation2 + $0xd8] sm:$0x3] %v3864_v54 }
  0x30   : > { %902 = vst [vmem:[#allocation2 + $0xa0] sm:$0x3] %v3864_v54 }
  0x31   : > { %903 = vst [vmem:[#allocation2 + $0x68] sm:$0xff] %v3864_v54 }
  0x32   : > { %904 = vst [vmem:[#allocation2 + $0x130] sm:$0xff] %v3864_v54 }
  0x33   : > { %905 = vst [vmem:[#allocation2 + $0x50] sm:$0x3] %v3864_v54 }
  0x34   : > { %906 = vst [vmem:[#allocation2 + $0xe8] sm:$0x3] %v3864_v54 }
  0x35   : > { %907 = vst [vmem:[#allocation2 + $0x58] sm:$0xff] %v3864_v54 }
  0x36   : > { %908 = vst [vmem:[#allocation2 + $0x78] sm:$0xff] %v3864_v54 }
  0x37   : > { %909 = vst [vmem:[#allocation2 + $0x30] sm:$0x3] %v3864_v54 }
  0x38   : > { %910 = vst [vmem:[#allocation2 + $0x40] sm:$0x3] %v3864_v54 }
  0x39   : > { %911 = vst [vmem:[#allocation2 + $0x28] sm:$0xff] %v3864_v54 }
  0x3a   : > { %912 = vst [vmem:[#allocation2] sm:$0xff] %v3864_v54 }
  0x3b   : > { %913 = vst [vmem:[#allocation2 + $0xb8] sm:$0x3] %v3864_v54 }
  0x3c   : > { %914 = vst [vmem:[#allocation2 + $0x60] sm:$0x3] %v3864_v54 }
  0x3d   : > { %510 = vmatmul.bf16.gmra.mxu0 %v3591_v50  ;;  %520 = vmatmul.bf16.gmra.mxu2 %v3593_v51 }
  0x3e   : > { %539 = vmatmul.bf16.gmra.mxu1 %v3591_v50  ;;  %549 = vmatmul.bf16.gmra.mxu3 %v3593_v51 }
  0xaa   : > { %v506_v56 = vpop.f32.mrf.mxu0 }
  0xab   : > { %v4053_v57 = vadd.f32 %v506_v56, %v4044_v53  ;;  %v535_v58 = vpop.f32.mrf.mxu1 }
  0xac   : > { %v4058_v59 = vadd.f32 %v535_v58, %v4048_v55 }
  0xad   : > { %v3353_v60 = vmul.f32 -1.442695, %v4053_v57 }
  0xae   : > { %v3354_v61 = vmul.f32 -1.442695, %v4058_v59 }
  0xaf   : > { %3708 = vpow2.f32 %v3353_v60 }
  0xb0   : > { %v516_v62 = vpop.f32.mrf.mxu2  ;;  %3710 = vpow2.f32 %v3354_v61 }
  0xb1   : > { %v4068_v63 = vadd.f32 %v516_v62, %v4044_v53  ;;  %v545_v0 = vpop.f32.mrf.mxu3 }
  0xb2   : > { %v508_v1 = vpop.f32.mrf.mxu0  ;;  %v4074_v3 = vadd.f32 %v545_v0, %v4048_v55 }
  0xb3   : > { %v3361_v2 = vmul.f32 -1.442695, %v4068_v63  ;;  %v4077_v4 = vadd.f32 %v508_v1, %v4044_v53  ;;  %v537_v5 = vpop.f32.mrf.mxu1 }
  0xb4   : > { %v3362_v9 = vmul.f32 -1.442695, %v4074_v3  ;;  %v4091_v11 = vadd.f32 %v537_v5, %v4048_v55 }
  0xb5   : > { %v3709_v6 = vpop.eup %3708  ;;  %3712 = vpow2.f32 %v3361_v2  ;;  %v3355_v10 = vmul.f32 -1.442695, %v4077_v4 }
  0xb6   : > { %v4081_v7 = vadd.f32 1.0, %v3709_v6  ;;  %v3711_v12 = vpop.eup %3710  ;;  %v3356_v20 = vmul.f32 -1.442695, %v4091_v11 }
  0xb7   : > { %v4104_v15 = vadd.f32 1.0, %v3711_v12 }
  0xb8   : > { %3714 = vrcp.f32 %v4081_v7  ;;  %v518_v16 = vpop.f32.mrf.mxu2  ;;  %v628_v34 = vand.u32 2147483647, %v4081_v7  ;;  %v630_v35 = vand.u32 2147483648, %v4081_v7  ;;  %vm624_vm0 = vweird.f32 %v4081_v7 }
  0xb9   : > { %3716 = vpow2.f32 %v3362_v9  ;;  %v4129_v24 = vadd.f32 %v518_v16, %v4044_v53  ;;  %v547_v36 = vpop.f32.mrf.mxu3  ;;  %v643_v38 = vand.u32 2147483647, %v4104_v15  ;;  %v645_v44 = vand.u32 2147483648, %v4104_v15 }
  0xba   : > { %3718 = vpow2.f32 %v3355_v10  ;;  %v4175_v47 = vadd.f32 %v547_v36, %v4048_v55  ;;  %vm4177_vm2 = vcmp.eq.f32.partialorder %v628_v34, 8.507059e+37  ;;  %v631_v51 = vor.u32 1.1754944e-38, %v630_v35  ;;  %v511_v56 = vpop.f32.mrf.mxu0 }
  0xbb   : > { %v3713_v18 = vpop.eup %3712  ;;  %3720 = vrcp.f32 %v4104_v15  ;;  %v3363_v40 = vmul.f32 -1.442695, %v4129_v24  ;;  %vm639_vm3 = vweird.f32 %v4104_v15  ;;  %vm4188_vm4 = vcmp.eq.f32.partialorder %v643_v38, 8.507059e+37 }
  0xbc   : > { %v4126_v23 = vadd.f32 1.0, %v3713_v18  ;;  %v646_v62 = vor.u32 1.1754944e-38, %v645_v44  ;;  %v3364_v5 = vmul.f32 -1.442695, %v4175_v47  ;;  %v4205_v9 = vadd.f32 %v511_v56, %v4044_v53 }
  0xbe   : > { %v3715_v29 = vpop.eup %3714  ;;  %3722 = vrcp.f32 %v4126_v23  ;;  %v748_v2 = vand.u32 2147483647, %v4126_v23  ;;  %vm744_vm7 = vweird.f32 %v4126_v23  ;;  %v750_v14 = vand.u32 2147483648, %v4126_v23 }
  0xbf   : > { %v3717_v32 = vpop.eup %3716  ;;  %v620_v33 = vmul.f32 %v3715_v29, %v4081_v7  ;;  %3724 = vpow2.f32 %v3356_v20  ;;  %vm625_vm1 = vweird.f32 %v3715_v29 }
  0xc0   : > { %v3719_v37 = vpop.eup %3718  ;;  %v4157_v39 = vadd.f32 1.0, %v3717_v32  ;;  %vm626_vm5 = vmor %vm624_vm0, %vm625_vm1  ;;  %vm4230_vm10 = vcmp.eq.f32.partialorder %v748_v2, 8.507059e+37  ;;  %v4280_v2 = vperm.slane %v4097_v13, 1 }
  0xc1   : > { %v4160_v41 = vpop.eup %3720  ;;  %v621_v42 = vsub.f32 1.0, %v620_v33  ;;  %v4167_v45 = vadd.f32 1.0, %v3719_v37 }
  0xc2   : > { %v635_v46 = vmul.f32 %v4160_v41, %v4104_v15  ;;  %3726 = vrcp.f32 %v4157_v39  ;;  %vm640_vm6 = vweird.f32 %v4160_v41  ;;  %vm759_vm12 = vweird.f32 %v4157_v39 }
  0xc3   : > { %v622_v48 = vmul.f32 %v3715_v29, %v621_v42  ;;  %3728 = vrcp.f32 %v4167_v45  ;;  %vm641_vm8 = vmor %vm639_vm3, %vm640_vm6  ;;  %vm654_vm15 = vweird.f32 %v4167_v45  ;;  %v660_v61 = vand.u32 2147483648, %v4167_v45 }
  0xc4   : > { %v4183_v50 = vpop.eup %3722  ;;  %v636_v52 = vsub.f32 1.0, %v635_v46  ;;  %3730 = vpow2.f32 %v3363_v40  ;;  %v658_v54 = vand.u32 2147483647, %v4167_v45  ;;  %vm6170_vm3 = vcmask 1046528  }
  0xc5   : > { %v3725_v58 = vpop.eup %3724  ;;  %v623_v60 = vadd.f32 %v3715_v29, %v622_v48  ;;  %v740_v0 = vmul.f32 %v4183_v50, %v4126_v23  ;;  %vm745_vm9 = vweird.f32 %v4183_v50  ;;  %3732 = vpow2.f32 %v3364_v5 }
  0xc6   : > { %v637_v1 = vmul.f32 %v4160_v41, %v636_v52  ;;  %v4214_v16 = vadd.f32 1.0, %v3725_v58  ;;  %vm746_vm11 = vmor %vm744_vm7, %vm745_vm9  ;;  %v763_v52 = vand.u32 2147483647, %v4157_v39  ;;  %v765_v58 = vand.u32 2147483648, %v4157_v39 }
  0xc7   : > { %v627_v6 = vsel %vm626_vm5, %v3715_v29, %v623_v60  ;;  %v741_v8 = vsub.f32 1.0, %v740_v0  ;;  %v4283_v5 = vperm.slane %v4109_v17, 1 }
  0xc8   : > { %v4207_v7 = vpop.eup %3726  ;;  %v632_v10 = vsel %vm4177_vm2, %v631_v51, %v627_v6  ;;  %v638_v12 = vadd.f32 %v4160_v41, %v637_v1  ;;  %3734 = vrcp.f32 %v4214_v16  ;;  %v675_v0 = vand.u32 2147483648, %v4214_v16 }
  0xc9   : > { %v4216_v18 = vpop.eup %3728  ;;  %v859_v20 = vmul.f32 %v632_v10, %v4053_v57  ;;  %v742_v29 = vmul.f32 %v4183_v50, %v741_v8  ;;  %v755_v32 = vmul.f32 %v4207_v7, %v4157_v39  ;;  %vm760_vm13 = vweird.f32 %v4207_v7  ;;  %6180 = vst [vmem:[#allocation4_spill] sm:$0xff] %v4283_v5 }
  0xca   : > { %v3731_v33 = vpop.eup %3730  ;;  %v642_v34 = vsel %vm641_vm8, %v4160_v41, %v638_v12  ;;  %v650_v15 = vmul.f32 %v4216_v18, %v4167_v45  ;;  %v751_v41 = vor.u32 1.1754944e-38, %v750_v14  ;;  %vm655_vm14 = vweird.f32 %v4216_v18  ;;  %vm4270_vm0 = vmor %vm759_vm12, %vm760_vm13 }
  0xcb   : > { %v931_v35 = vrot.slane %v859_v20, 7  ;;  %v647_v36 = vsel %vm4188_vm4, %v646_v62, %v642_v34  ;;  %v743_v37 = vadd.f32 %v4183_v50, %v742_v29  ;;  %v756_v38 = vsub.f32 1.0, %v755_v32  ;;  %v3733_v56 = vpop.eup %3732  ;;  %vm4290_vm1 = vmor %vm654_vm15, %vm655_vm14 }
  0xcc   : > { %v860_v40 = vmul.f32 %v647_v36, %v4058_v59  ;;  %v651_v42 = vsub.f32 1.0, %v650_v15  ;;  %v4250_v48 = vadd.f32 1.0, %v3731_v33  ;;  %v4286_v39 = vperm.slane %v4115_v19, 1 }
  0xcd   : > { %964 = vst [vmem:[#allocation2 + $0x120] sm:$0xfe] %v931_v35  ;;  %v747_v44 = vsel %vm746_vm11, %v4183_v50, %v743_v37  ;;  %v757_v46 = vmul.f32 %v4207_v7, %v756_v38  ;;  %v4296_v8 = vperm.slane %v4147_v31, 1  ;;  %v3357_v19 = vmul.f32 -1.442695, %v4205_v9 }
  0xce   : > { %966 = vst [vmem:[#allocation2 + $0xf8] sm:$0x1] %v931_v35  ;;  %v932_v59 = vrot.slane %v860_v40, 7  ;;  %v752_v49 = vsel %vm4230_vm10, %v751_v41, %v747_v44  ;;  %v652_v23 = vmul.f32 %v4216_v18, %v651_v42  ;;  %3736 = vrcp.f32 %v4250_v48  ;;  %v4277_v1 = vpop.eup %3734 }
  0xcf   : > { %v867_v51 = vmul.f32 %v752_v49, %v4068_v63  ;;  %v758_v50 = vadd.f32 %v4207_v7, %v757_v46  ;;  %6181 = vst [vmem:[#allocation5_spill] sm:$0xff] %v4286_v39  ;;  %v780_v6 = vand.u32 2147483648, %v4250_v48  ;;  %vm764_vm2 = vcmp.eq.f32.partialorder %v763_v52, 8.507059e+37 }
  0xd0   : > { %v653_v60 = vadd.f32 %v4216_v18, %v652_v23  ;;  %965 = vst [vmem:[#allocation2 + $0x38] sm:$0xfe] %v932_v59  ;;  %v766_v10 = vor.u32 1.1754944e-38, %v765_v58  ;;  %v661_v12 = vor.u32 1.1754944e-38, %v660_v61  ;;  %v4305_v14 = vadd.f32 1.0, %v3733_v56 }
  0xd1   : > { %v939_v62 = vrot.slane %v867_v51, 7  ;;  %967 = vst [vmem:[#allocation2 + $0x100] sm:$0x1] %v932_v59  ;;  %v762_v13 = vsel %vm4270_vm0, %v4207_v7, %v758_v50  ;;  %vm659_vm4 = vcmp.eq.f32.partialorder %v658_v54, 8.507059e+37  ;;  %v665_v31 = vmul.f32 %v4277_v1, %v4214_v16 }
  0xd2   : > { %v657_v17 = vsel %vm4290_vm1, %v4216_v18, %v653_v60  ;;  %v673_v20 = vand.u32 2147483647, %v4214_v16  ;;  %v4310_v29 = vor.u32 1.1754944e-38, %v675_v0  ;;  %v767_v32 = vsel %vm764_vm2, %v766_v10, %v762_v13 }
  0xd3   : > { %980 = vst [vmem:[#allocation2 + $0xa8] sm:$0xfe] %v939_v62  ;;  %v662_v33 = vsel %vm659_vm4, %v661_v12, %v657_v17  ;;  %v778_v18 = vand.u32 2147483647, %v4250_v48  ;;  %v4313_v34 = vor.u32 1.1754944e-38, %v780_v6  ;;  %3738 = vpow2.f32 %v3357_v19 }
  0xd4   : > { %v1054_v7 = vld [vmem:[#allocation2 + $0x120] sm:$0xfe]  ;;  %v4315_v57 = vpop.eup %3736  ;;  %982 = vst [vmem:[#allocation2 + $0xe0] sm:$0x1] %v939_v62  ;;  %vm670_vm5 = vweird.f32 %v4277_v1  ;;  %3740 = vrcp.f32 %v4305_v14  ;;  %v868_v46 = vmul.f32 %v767_v32, %v4074_v3  ;;  %v4322_v59 = vmul.f32 %v662_v33, %v4077_v4 }
  0xd5   : > { %v1056_v15 = vld [vmem:[#allocation2 + $0xf8] sm:$0x1]  ;;  %v1238_v35 = vld [vmem:[#allocation2 + $0x120] sm:$0xfc]  ;;  %v666_v49 = vsub.f32 1.0, %v665_v31  ;;  %vm669_vm6 = vweird.f32 %v4214_v16  ;;  %v1093_v23 = vmul.f32 %v4120_v21, %v1054_v7  ;;  %v770_v58 = vmul.f32 %v4315_v57, %v4250_v48 }
  0xd6   : > { %v1240_v36 = vld [vmem:[#allocation2 + $0xf8] sm:$0x3]  ;;  %v1473_v37 = vld [vmem:[#allocation2 + $0x120] sm:$0xfe]  ;;  %v1095_v51 = vmul.f32 %v4120_v21, %v1056_v15  ;;  %v4333_v3 = vmul.f32 %v4123_v22, %v1238_v35  ;;  %vm4347_vm7 = vcmp.eq.f32.partialorder %v673_v20, 8.507059e+37  ;;  %vm775_vm8 = vweird.f32 %v4315_v57  ;;  %vm4396_vm12 = vmor %vm669_vm6, %vm670_vm5 }
  0xd7   : > { %v1055_v38 = vld [vmem:[#allocation2 + $0x38] sm:$0xfe]  ;;  %v998_v40 = vld [vmem:[#allocation2 + $0x120] sm:$0xff]  ;;  %v1475_v41 = vld [vmem:[#allocation2 + $0xf8] sm:$0x1]  ;;  %v4336_v4 = vmul.f32 %v4123_v22, %v1240_v36  ;;  %v4339_v60 = vmul.f32 %v4142_v30, %v1473_v37  ;;  %v667_v12 = vmul.f32 %v4277_v1, %v666_v49  ;;  %vm774_vm9 = vweird.f32 %v4250_v48 }
  0xd8   : > { %v1057_v42 = vld [vmem:[#allocation2 + $0x100] sm:$0x1]  ;;  %v1094_v44 = vmul.f32 %v4139_v28, %v1055_v38  ;;  %v1656_v50 = vld [vmem:[#allocation2 + $0x120] sm:$0xfc]  ;;  %v4327_v52 = vld [vmem:[#allocation2 + $0x38] sm:$0xff]  ;;  %v4342_v63 = vmul.f32 %v4131_v25, %v998_v40  ;;  %v4345_v54 = vmul.f32 %v4142_v30, %v1475_v41  ;;  %v4353_v13 = vmul.f32 %v4134_v26, %v998_v40 }
  0xd9   : > { %v1096_v56 = vmul.f32 %v4139_v28, %v1057_v42  ;;  %6184 = vst [vmem:[#allocation6_spill] sm:$0xff] %v4339_v60  ;;  %v1658_v61 = vld [vmem:[#allocation2 + $0xf8] sm:$0x3]  ;;  %v3739_v6 = vpop.eup %3738  ;;  %v4356_v17 = vmul.f32 %v4163_v43, %v1656_v50  ;;  %v1021_v19 = vmul.f32 %v4137_v27, %v4327_v52  ;;  %v1239_v10 = vld [vmem:[#allocation2 + $0x38] sm:$0xfc]  ;;  %v1160_v20 = vrot.slane %v1093_v23, 1  ;;  %v540_v23 = vpop.f32.mrf.mxu1  ;;  %vm776_vm14 = vmor %vm774_vm9, %vm775_vm8 }
  0xda   : > { %v1163_v62 = vrot.slane %v1094_v44, 1  ;;  %6185 = vst [vmem:[#allocation7_spill] sm:$0xff] %v4345_v54  ;;  %v4362_v31 = vpop.eup %3740  ;;  %v1161_v7 = vrot.slane %v1095_v51, 1  ;;  %v4365_v32 = vmul.f32 %v4163_v43, %v1658_v61  ;;  %v1241_v38 = vld [vmem:[#allocation2 + $0x100] sm:$0x3]  ;;  %vm4373_vm10 = vcmp.eq.f32.partialorder %v778_v18, 8.507059e+37 }
  0xdb   : > { %v1164_v0 = vrot.slane %v1096_v56, 1  ;;  %6188 = vst [vmem:[#allocation8_spill] sm:$0xff] %v4353_v13  ;;  %vm789_vm11 = vweird.f32 %v4305_v14  ;;  %v4380_v42 = vmul.f32 %v4280_v2, %v1239_v10  ;;  %v940_v44 = vrot.slane %v868_v46, 7  ;;  %v1474_v50 = vld [vmem:[#allocation2 + $0x38] sm:$0xfe] }
  0xdc   : > { %6189 = vst [vmem:[#allocation9_spill] sm:$0xff] %v4356_v17  ;;  %v933_v49 = vrot.slane %v4322_v59, 7  ;;  %v1476_v56 = vld [vmem:[#allocation2 + $0x100] sm:$0x1]  ;;  %v668_v18 = vadd.f32 %v4277_v1, %v667_v12  ;;  %v771_v61 = vsub.f32 1.0, %v770_v58  ;;  %v4390_v10 = vmul.f32 %v4280_v2, %v1241_v38 }
  0xdd   : > { %6190 = vst [vmem:[#allocation10_spill] sm:$0xff] %v4365_v32  ;;  %v1165_v33 = vsel %vm6170_vm3, %v1163_v62, %v1164_v0  ;;  %v785_v62 = vmul.f32 %v4362_v31, %v4305_v14  ;;  %v1162_v0 = vsel %vm6170_vm3, %v1160_v20, %v1161_v7  ;;  %v1657_v46 = vld [vmem:[#allocation2 + $0x38] sm:$0xfc]  ;;  %v4400_v58 = vadd.f32 1.0, %v3739_v6  ;;  %v1659_v12 = vld [vmem:[#allocation2 + $0x100] sm:$0x3] }
  0xde   : > { %v4371_v37 = vadd.f32 %v1165_v33, %v1021_v19  ;;  %6194 = vst [vmem:[#allocation12_spill] sm:$0xff] %v4380_v42  ;;  %v672_v20 = vsel %vm4396_vm12, %v4277_v1, %v668_v18  ;;  %v772_v7 = vmul.f32 %v4315_v57, %v771_v61  ;;  %v4407_v38 = vadd.f32 %v540_v23, %v4048_v55  ;;  %v1072_v16 = vld [vmem:[#allocation2 + $0xe0] sm:$0x1]  ;;  %v1052_v32 = vld [vmem:[#allocation2 + $0x10] sm:$0x1] }
  0xdf   : > { %6195 = vst [vmem:[#allocation13_spill] sm:$0xff] %v4390_v10  ;;  %v786_v33 = vsub.f32 1.0, %v785_v62  ;;  %vm790_vm13 = vweird.f32 %v4362_v31  ;;  %v793_v6 = vand.u32 2147483647, %v4305_v14  ;;  %v795_v51 = vand.u32 2147483648, %v4305_v14 }
  0xe0   : > { %6191 = vst [vmem:[#allocation11_spill] sm:$0xff] %v4371_v37  ;;  %v677_v1 = vsel %vm4347_vm7, %v4310_v29, %v672_v20  ;;  %v773_v18 = vadd.f32 %v4315_v57, %v772_v7  ;;  %3742 = vrcp.f32 %v4400_v58  ;;  %v4421_v62 = vmul.f32 %v4286_v39, %v1474_v50  ;;  %vm791_vm15 = vmor %vm789_vm11, %vm790_vm13 }
  0xe1   : > { %981 = vst [vmem:[#allocation2 + $0x90] sm:$0xfe] %v940_v44  ;;  %v787_v23 = vmul.f32 %v4362_v31, %v786_v33  ;;  %v4424_v59 = vmul.f32 %v4286_v39, %v1476_v56  ;;  %v3358_v29 = vmul.f32 -1.442695, %v4407_v38  ;;  %v4432_v45 = vmul.f32 %v4296_v8, %v1657_v46  ;;  %v513_v33 = vpop.f32.mrf.mxu0 }
  0xe2   : > { %983 = vst [vmem:[#allocation2 + $0x88] sm:$0x1] %v940_v44  ;;  %v1070_v44 = vld [vmem:[#allocation2 + $0xa8] sm:$0xfe]  ;;  %v777_v50 = vsel %vm776_vm14, %v4315_v57, %v773_v18  ;;  %v862_v7 = vmul.f32 %v677_v1, %v4091_v11  ;;  %v796_v46 = vor.u32 1.1754944e-38, %v795_v51  ;;  %vm794_vm0 = vcmp.eq.f32.partialorder %v793_v6, 8.507059e+37  ;;  %v521_v18 = vpop.f32.mrf.mxu2 }
  0xe3   : > { %968 = vst [vmem:[#allocation2 + $0x80] sm:$0xfe] %v933_v49  ;;  %v788_v20 = vadd.f32 %v4362_v31, %v787_v23  ;;  %v4440_v56 = vmul.f32 %v4120_v21, %v1070_v44  ;;  %v782_v48 = vsel %vm4373_vm10, %v4313_v34, %v777_v50  ;;  %3744 = vpow2.f32 %v3358_v29  ;;  %v1254_v11 = vld [vmem:[#allocation2 + $0xa8] sm:$0xfc]  ;;  %v1256_v23 = vld [vmem:[#allocation2 + $0xe0] sm:$0x3] }
  0xe4   : > { %970 = vst [vmem:[#allocation2 + $0x138] sm:$0x1] %v933_v49  ;;  %v4435_v49 = vmul.f32 %v4296_v8, %v1659_v12  ;;  %v4451_v12 = vmul.f32 %v4120_v21, %v1072_v16  ;;  %v869_v40 = vmul.f32 %v782_v48, %v4129_v24  ;;  %v690_v1 = vand.u32 2147483648, %v4400_v58  ;;  %v542_v16 = vpop.f32.mrf.mxu1 }
  0xe5   : > { %6198 = vst [vmem:[#allocation14_spill] sm:$0xff] %v4421_v62  ;;  %v792_v57 = vsel %vm791_vm15, %v4362_v31, %v788_v20  ;;  %v4460_v51 = vadd.f32 %v1162_v0, %v4342_v63  ;;  %v4464_v31 = vmul.f32 %v4283_v5, %v4327_v52  ;;  %v934_v20 = vrot.slane %v862_v7, 7  ;;  %v550_v63 = vpop.f32.mrf.mxu3 }
  0xe6   : > { %6199 = vst [vmem:[#allocation15_spill] sm:$0xff] %v4424_v59  ;;  %v797_v34 = vsel %vm794_vm0, %v796_v46, %v792_v57  ;;  %v4457_v14 = vpop.eup %3742  ;;  %v688_v46 = vand.u32 2147483647, %v4400_v58  ;;  %v4477_v6 = vadd.f32 %v521_v18, %v4044_v53  ;;  %v4482_v19 = vor.u32 1.1754944e-38, %v690_v1 }
  0xe7   : > { %6200 = vst [vmem:[#allocation16_spill] sm:$0xff] %v4432_v45  ;;  %v870_v48 = vmul.f32 %v797_v34, %v4175_v47  ;;  %v941_v47 = vrot.slane %v869_v40, 7  ;;  %v680_v34 = vmul.f32 %v4457_v14, %v4400_v58  ;;  %v4485_v41 = vmul.f32 %v4123_v22, %v1254_v11 }
  0xe8   : > { %6201 = vst [vmem:[#allocation17_spill] sm:$0xff] %v4435_v49  ;;  %v1071_v44 = vld [vmem:[#allocation2 + $0x90] sm:$0xfe]  ;;  %vm684_vm1 = vweird.f32 %v4400_v58  ;;  %vm4497_vm2 = vcmp.eq.f32.partialorder %v688_v46, 8.507059e+37  ;;  %vm685_vm4 = vweird.f32 %v4457_v14 }
  0xe9   : > { %6202 = vst [vmem:[#allocation18_spill] sm:$0xff] %v4460_v51  ;;  %v4474_v57 = vmul.f32 %v4139_v28, %v1071_v44  ;;  %v1073_v24 = vld [vmem:[#allocation2 + $0x88] sm:$0x1]  ;;  %v3745_v36 = vpop.eup %3744  ;;  %v4488_v44 = vmul.f32 %v4123_v22, %v1256_v23  ;;  %v1255_v18 = vld [vmem:[#allocation2 + $0x90] sm:$0xfc]  ;;  %v942_v1 = vrot.slane %v870_v48, 7  ;;  %v4502_v23 = vadd.f32 %v513_v33, %v4044_v53  ;;  %vm4549_vm5 = vmor %vm684_vm1, %vm685_vm4 }
  0xea   : > { %6203 = vst [vmem:[#allocation19_spill] sm:$0xff] %v4464_v31  ;;  %v1058_v29 = vld [vmem:[#allocation2 + $0x80] sm:$0xfe]  ;;  %v1257_v15 = vld [vmem:[#allocation2 + $0x88] sm:$0x3]  ;;  %v681_v46 = vsub.f32 1.0, %v680_v34 }
  0xeb   : > { %v1060_v50 = vld [vmem:[#allocation2 + $0x138] sm:$0x1]  ;;  %6204 = vst [vmem:[#allocation20_spill] sm:$0xff] %v4474_v57  ;;  %v1097_v7 = vmul.f32 %v4120_v21, %v1058_v29  ;;  %v1242_v61 = vld [vmem:[#allocation2 + $0x80] sm:$0xfc]  ;;  %v4492_v29 = vadd.f32 %v550_v63, %v4048_v55  ;;  %v4508_v63 = vmul.f32 %v4139_v28, %v1073_v24  ;;  %v4517_v33 = vadd.f32 1.0, %v3745_v36 }
  0xec   : > { %6205 = vst [vmem:[#allocation21_spill] sm:$0xff] %v4485_v41  ;;  %v1099_v35 = vmul.f32 %v4120_v21, %v1060_v50  ;;  %v1244_v0 = vld [vmem:[#allocation2 + $0x138] sm:$0x3]  ;;  %v4494_v40 = vld [vmem:[#allocation2 + $0x80] sm:$0xff]  ;;  %v4505_v50 = vadd.f32 %v542_v16, %v4048_v55  ;;  %v4512_v49 = vmul.f32 %v4123_v22, %v1242_v61  ;;  %v3365_v16 = vmul.f32 -1.442695, %v4477_v6 }
  0xed   : > { %6206 = vst [vmem:[#allocation22_spill] sm:$0xff] %v4488_v44  ;;  %v1477_v52 = vld [vmem:[#allocation2 + $0x80] sm:$0xfe]  ;;  %v1479_v48 = vld [vmem:[#allocation2 + $0x138] sm:$0x1]  ;;  %v1166_v59 = vrot.slane %v1097_v7, 1  ;;  %v4515_v31 = vmul.f32 %v4123_v22, %v1244_v0  ;;  %v682_v45 = vmul.f32 %v4457_v14, %v681_v46  ;;  %v4527_v7 = vmul.f32 %v4280_v2, %v1257_v15  ;;  %v523_v46 = vpop.f32.mrf.mxu2  ;;  %v552_v57 = vpop.f32.mrf.mxu3 }
  0xee   : > { %969 = vst [vmem:[#allocation2 + $0x108] sm:$0xfe] %v934_v20  ;;  %v1660_v62 = vld [vmem:[#allocation2 + $0x80] sm:$0xfc]  ;;  %v1167_v24 = vrot.slane %v1099_v35, 1  ;;  %3746 = vrcp.f32 %v4517_v33  ;;  %v4535_v34 = vmul.f32 %v4142_v30, %v1477_v52  ;;  %v4540_v37 = vmul.f32 %v4142_v30, %v1479_v48 }
  0xef   : > { %6209 = vst [vmem:[#allocation23_spill] sm:$0xff] %v4508_v63  ;;  %v3366_v61 = vmul.f32 -1.442695, %v4492_v29  ;;  %v1662_v0 = vld [vmem:[#allocation2 + $0x138] sm:$0x3]  ;;  %3748 = vpow2.f32 %v3365_v16  ;;  %vm699_vm6 = vweird.f32 %v4517_v33  ;;  %v705_v10 = vand.u32 2147483648, %v4517_v33 }
  0xf0   : > { %6210 = vst [vmem:[#allocation24_spill] sm:$0xff] %v4512_v49  ;;  %v3359_v36 = vmul.f32 -1.442695, %v4502_v23  ;;  %v4555_v52 = vmul.f32 %v4163_v43, %v1662_v0  ;;  %v1168_v48 = vsel %vm6170_vm3, %v1166_v59, %v1167_v24 }
  0xf1   : > { %971 = vst [vmem:[#allocation2 + $0xf0] sm:$0x1] %v934_v20  ;;  %v4524_v20 = vmul.f32 %v4280_v2, %v1255_v18  ;;  %v683_v18 = vadd.f32 %v4457_v14, %v682_v45  ;;  %3750 = vpow2.f32 %v3366_v61 }
  0xf2   : > { %984 = vst [vmem:[#allocation2 + $0xc0] sm:$0xfe] %v941_v47  ;;  %3752 = vpow2.f32 %v3359_v36 }
  0xf3   : > { %986 = vst [vmem:[#allocation2 + $0xd8] sm:$0x1] %v941_v47  ;;  %v1022_v47 = vmul.f32 %v4131_v25, %v4494_v40 }
  0xf4   : > { %6211 = vst [vmem:[#allocation25_spill] sm:$0xff] %v4524_v20  ;;  %v4563_v20 = vadd.f32 %v523_v46, %v4044_v53  ;;  %v4571_v61 = vpop.eup %3746  ;;  %v3360_v53 = vmul.f32 -1.442695, %v4505_v50  ;;  %v4580_v46 = vmul.f32 %v4134_v26, %v4494_v40 }
  0xf5   : > { %6212 = vst [vmem:[#allocation26_spill] sm:$0xff] %v4527_v7  ;;  %v4543_v7 = vmul.f32 %v4163_v43, %v1660_v62  ;;  %v687_v62 = vsel %vm4549_vm5, %v4457_v14, %v683_v18  ;;  %v1001_v45 = vld [vmem:[#allocation2 + $0x108] sm:$0xff]  ;;  %v703_v14 = vand.u32 2147483647, %v4517_v33  ;;  %v4576_v18 = vadd.f32 %v1168_v48, %v1022_v47 }
  0xf6   : > { %985 = vst [vmem:[#allocation2 + $0x118] sm:$0xfe] %v942_v1  ;;  %v692_v35 = vsel %vm4497_vm2, %v4482_v19, %v687_v62  ;;  %v3749_v62 = vpop.eup %3748  ;;  %v1023_v16 = vmul.f32 %v4137_v27, %v1001_v45  ;;  %v1478_v59 = vld [vmem:[#allocation2 + $0x108] sm:$0xfe]  ;;  %v3367_v47 = vmul.f32 -1.442695, %v4563_v20  ;;  %3754 = vpow2.f32 %v3360_v53 }
  0xf7   : > { %6213 = vst [vmem:[#allocation27_spill] sm:$0xff] %v4535_v34  ;;  %v863_v24 = vmul.f32 %v692_v35, %v4205_v9  ;;  %v3751_v48 = vpop.eup %3750  ;;  %v1661_v42 = vld [vmem:[#allocation2 + $0x108] sm:$0xfc]  ;;  %vm4590_vm7 = vcmp.eq.f32.partialorder %v703_v14, 8.507059e+37  ;;  %v4606_v17 = vadd.f32 1.0, %v3749_v62  ;;  %vm700_vm8 = vweird.f32 %v4571_v61 }
  0xf8   : > { %987 = vst [vmem:[#allocation2 + $0xa0] sm:$0x1] %v942_v1  ;;  %v1059_v1 = vld [vmem:[#allocation2 + $0x108] sm:$0xfe]  ;;  %v1061_v15 = vld [vmem:[#allocation2 + $0xf0] sm:$0x1]  ;;  %v3753_v9 = vpop.eup %3752  ;;  %vm701_vm9 = vmor %vm699_vm6, %vm700_vm8 }
  0xf9   : > { %6214 = vst [vmem:[#allocation28_spill] sm:$0xff] %v4540_v37  ;;  %v1098_v58 = vmul.f32 %v4139_v28, %v1059_v1  ;;  %v1100_v0 = vmul.f32 %v4139_v28, %v1061_v15  ;;  %v1243_v15 = vld [vmem:[#allocation2 + $0x108] sm:$0xfc]  ;;  %v1245_v1 = vld [vmem:[#allocation2 + $0xf0] sm:$0x3]  ;;  %v935_v14 = vrot.slane %v863_v24, 7  ;;  %3756 = vrcp.f32 %v4606_v17 }
  0xfa   : > { %6215 = vst [vmem:[#allocation29_spill] sm:$0xff] %v4543_v7  ;;  %v1480_v40 = vld [vmem:[#allocation2 + $0xf0] sm:$0x1]  ;;  %v4598_v63 = vmul.f32 %v4280_v2, %v1243_v15  ;;  %v4604_v7 = vmul.f32 %v4286_v39, %v1478_v59  ;;  %v4614_v15 = vadd.f32 1.0, %v3751_v48  ;;  %v4622_v24 = vadd.f32 1.0, %v3753_v9 }
  0xfb   : > { %6218 = vst [vmem:[#allocation30_spill] sm:$0xff] %v4555_v52  ;;  %v1169_v36 = vrot.slane %v1098_v58, 1  ;;  %v1170_v19 = vrot.slane %v1100_v0, 1  ;;  %v695_v0 = vmul.f32 %v4571_v61, %v4517_v33  ;;  %v4609_v34 = vmul.f32 %v4286_v39, %v1480_v40  ;;  %v1663_v53 = vld [vmem:[#allocation2 + $0xf0] sm:$0x3] }
  0xfc   : > { %6219 = vst [vmem:[#allocation31_spill] sm:$0xff] %v4576_v18  ;;  %v706_v62 = vor.u32 1.1754944e-38, %v705_v10  ;;  %3758 = vrcp.f32 %v4614_v15  ;;  %v3755_v40 = vpop.eup %3754  ;;  %v4640_v9 = vmul.f32 %v4296_v8, %v1663_v53  ;;  %vm804_vm10 = vweird.f32 %v4606_v17 }
  0xfd   : > { %6220 = vst [vmem:[#allocation32_spill] sm:$0xff] %v4580_v46  ;;  %v1171_v58 = vsel %vm6170_vm3, %v1169_v36, %v1170_v19  ;;  %v4601_v36 = vmul.f32 %v4280_v2, %v1245_v1  ;;  %v1050_v19 = vld [vmem:[#allocation2 + $0xb0] sm:$0xfe]  ;;  %v696_v52 = vsub.f32 1.0, %v695_v0  ;;  %v4617_v1 = vadd.f32 %v552_v57, %v4048_v55  ;;  %v1075_v48 = vld [vmem:[#allocation2 + $0x118] sm:$0xfe] }
  0xfe   : > { %v4595_v35 = vadd.f32 %v1171_v58, %v1023_v16  ;;  %6224 = vst [vmem:[#allocation34_spill] sm:$0xff] %v4598_v63  ;;  %v4612_v16 = vmul.f32 %v4296_v8, %v1661_v42  ;;  %v4626_v42 = vmul.f32 %v4120_v21, %v1050_v19  ;;  %v4629_v55 = vmul.f32 %v4120_v21, %v1052_v32  ;;  %v1074_v19 = vld [vmem:[#allocation2 + $0xc0] sm:$0xfe] }
  0xff   : > { %6225 = vst [vmem:[#allocation35_spill] sm:$0xff] %v4601_v36  ;;  %v697_v59 = vmul.f32 %v4571_v61, %v696_v52  ;;  %v4636_v0 = vmul.f32 %v4283_v5, %v1001_v45  ;;  %3760 = vrcp.f32 %v4622_v24  ;;  %v4649_v45 = vadd.f32 1.0, %v3755_v40  ;;  %v1077_v53 = vld [vmem:[#allocation2 + $0xa0] sm:$0x1]  ;;  %v4656_v33 = vpop.eup %3756 }
 0x100   : > { %6223 = vst [vmem:[#allocation33_spill] sm:$0xff] %v4595_v35  ;;  %v3368_v10 = vmul.f32 -1.442695, %v4617_v1  ;;  %v808_v57 = vand.u32 2147483647, %v4606_v17  ;;  %v810_v52 = vand.u32 2147483648, %v4606_v17  ;;  %3762 = vpow2.f32 %v3367_v47 }
 0x101   : > { %6226 = vst [vmem:[#allocation36_spill] sm:$0xff] %v4604_v7  ;;  %v698_v58 = vadd.f32 %v4571_v61, %v697_v59  ;;  %3764 = vrcp.f32 %v4649_v45  ;;  %v4672_v47 = vmul.f32 %v4139_v28, %v1075_v48  ;;  %v1006_v7 = vld [vmem:[#allocation2 + $0xa8] sm:$0xff]  ;;  %v800_v11 = vmul.f32 %v4656_v33, %v4606_v17  ;;  %v3617_v17 = vld [vmem:[%s6131_s4 + $0x38] sm:$0xff] }
 0x102   : > { %6227 = vst [vmem:[#allocation37_spill] sm:$0xff] %v4609_v34  ;;  %v4662_v40 = vpop.eup %3758  ;;  %v4675_v34 = vmul.f32 %v4139_v28, %v1077_v53  ;;  %3766 = vpow2.f32 %v3368_v10  ;;  %vm819_vm11 = vweird.f32 %v4614_v15  ;;  %vm4688_vm12 = vcmp.eq.f32.partialorder %v808_v57, 8.507059e+37  ;;  %2747 = vmatpush.bf16.msrb.mxu2 %v3617_v17 }
 0x103   : > { %6228 = vst [vmem:[#allocation38_spill] sm:$0xff] %v4612_v16  ;;  %v702_v59 = vsel %vm701_vm9, %v4571_v61, %v698_v58  ;;  %v823_v16 = vand.u32 2147483647, %v4614_v15  ;;  %v825_v61 = vand.u32 2147483648, %v4614_v15  ;;  %v720_v58 = vand.u32 2147483648, %v4622_v24 }
 0x104   : > { %972 = vst [vmem:[#allocation2 + $0x18] sm:$0xfe] %v935_v14  ;;  %v707_v32 = vsel %vm4590_vm7, %v706_v62, %v702_v59  ;;  %v4666_v62 = vmul.f32 %v4120_v21, %v1074_v19  ;;  %v815_v48 = vmul.f32 %v4662_v40, %v4614_v15  ;;  %v4700_v36 = vmul.f32 0.0, %v4131_v25 }
 0x105   : > { %974 = vst [vmem:[#allocation2 + $0x70] sm:$0x1] %v935_v14  ;;  %v1076_v14 = vld [vmem:[#allocation2 + $0xd8] sm:$0x1]  ;;  %v864_v35 = vmul.f32 %v707_v32, %v4407_v38  ;;  %vm4692_vm13 = vcmp.eq.f32.partialorder %v823_v16, 8.507059e+37  ;;  %v826_v10 = vor.u32 1.1754944e-38, %v825_v61  ;;  %vm805_vm14 = vweird.f32 %v4656_v33 }
 0x106   : > { %6229 = vst [vmem:[#allocation39_spill] sm:$0xff] %v4636_v0  ;;  %v4669_v59 = vmul.f32 %v4120_v21, %v1076_v14  ;;  %v811_v14 = vor.u32 1.1754944e-38, %v810_v52  ;;  %v718_v32 = vand.u32 2147483647, %v4622_v24  ;;  %v4697_v52 = vor.u32 1.1754944e-38, %v720_v58  ;;  %vm806_vm4 = vmor %vm804_vm10, %vm805_vm14 }
 0x107   : > { %6230 = vst [vmem:[#allocation40_spill] sm:$0xff] %v4640_v9  ;;  %v4686_v9 = vpop.eup %3760  ;;  %vm714_vm15 = vweird.f32 %v4622_v24  ;;  %v4710_v61 = vmul.f32 %v4131_v25, %v1006_v7  ;;  %v936_v54 = vrot.slane %v864_v35, 7  ;;  %v801_v46 = vsub.f32 1.0, %v800_v11 }
 0x108   : > { %6231 = vst [vmem:[#allocation41_spill] sm:$0xff] %v4672_v47  ;;  %v816_v13 = vsub.f32 1.0, %v815_v48  ;;  %v710_v7 = vmul.f32 %v4686_v9, %v4622_v24  ;;  %vm820_vm0 = vweird.f32 %v4662_v40  ;;  %vm4734_vm1 = vcmp.eq.f32.partialorder %v718_v32, 8.507059e+37 }
 0x109   : > { %6232 = vst [vmem:[#allocation42_spill] sm:$0xff] %v4675_v34  ;;  %v3763_v34 = vpop.eup %3762  ;;  %v802_v35 = vmul.f32 %v4656_v33, %v801_v46  ;;  %vm729_vm2 = vweird.f32 %v4649_v45  ;;  %vm821_vm5 = vmor %vm819_vm11, %vm820_vm0  ;;  %vm715_vm6 = vweird.f32 %v4686_v9 }
 0x10a   : > { %v4712_v58 = vpop.eup %3764  ;;  %973 = vst [vmem:[#allocation2 + $0xc8] sm:$0xfe] %v936_v54  ;;  %v817_v11 = vmul.f32 %v4662_v40, %v816_v13  ;;  %vm4791_vm7 = vmor %vm714_vm15, %vm715_vm6 }
 0x10b   : > { %v4677_v0 = vld [vmem:[#allocation2 + $0x18] sm:$0xff]  ;;  %v725_v18 = vmul.f32 %v4712_v58, %v4649_v45  ;;  %975 = vst [vmem:[#allocation2 + $0x20] sm:$0x1] %v936_v54  ;;  %v803_v49 = vadd.f32 %v4656_v33, %v802_v35  ;;  %vm730_vm8 = vweird.f32 %v4712_v58 }
 0x10c   : > { %6233 = vst [vmem:[#allocation43_spill] sm:$0xff] %v4677_v0  ;;  %v1062_v19 = vld [vmem:[#allocation2 + $0x18] sm:$0xfe]  ;;  %v4704_v47 = vmul.f32 %v4131_v25, %v4677_v0  ;;  %v1064_v57 = vld [vmem:[#allocation2 + $0x70] sm:$0x1]  ;;  %v4722_v41 = vmul.f32 %v4134_v26, %v4677_v0  ;;  %v711_v0 = vsub.f32 1.0, %v710_v7  ;;  %vm4819_vm9 = vmor %vm729_vm2, %vm730_vm8 }
 0x10d   : > { %v1246_v53 = vld [vmem:[#allocation2 + $0x18] sm:$0xfc]  ;;  %v4715_v37 = vmul.f32 %v4120_v21, %v1062_v19  ;;  %v1248_v60 = vld [vmem:[#allocation2 + $0x70] sm:$0x3]  ;;  %v3767_v19 = vpop.eup %3766  ;;  %v4729_v51 = vmul.f32 %v4120_v21, %v1064_v57  ;;  %v726_v57 = vsub.f32 1.0, %v725_v18  ;;  %v807_v15 = vsel %vm806_vm4, %v4656_v33, %v803_v49 }
 0x10e   : > { %v4718_v44 = vmul.f32 %v4123_v22, %v1246_v53  ;;  %6238 = vst [vmem:[#allocation44_spill] sm:$0xff] %v4722_v41  ;;  %v1481_v16 = vld [vmem:[#allocation2 + $0x18] sm:$0xfe]  ;;  %v4740_v53 = vmul.f32 %v4123_v22, %v1248_v60  ;;  %v4742_v41 = vadd.f32 1.0, %v3763_v34  ;;  %v1483_v26 = vld [vmem:[#allocation2 + $0x70] sm:$0x1]  ;;  %v818_v60 = vadd.f32 %v4662_v40, %v817_v11 }
 0x10f   : > { %v4746_v13 = vmul.f32 %v4142_v30, %v1481_v16  ;;  %v1664_v32 = vld [vmem:[#allocation2 + $0x18] sm:$0xfc]  ;;  %v712_v54 = vmul.f32 %v4686_v9, %v711_v0  ;;  %v727_v34 = vmul.f32 %v4712_v58, %v726_v57  ;;  %v4761_v18 = vadd.f32 1.0, %v3767_v19  ;;  %v3616_v49 = vld [vmem:[%s6131_s4 + $0x30] sm:$0xff] }
 0x110   : > { %v3625_v16 = vld [vmem:[%s6131_s4 + $0x78] sm:$0xff]  ;;  %v822_v0 = vsel %vm821_vm5, %v4662_v40, %v818_v60  ;;  %3768 = vrcp.f32 %v4742_v41  ;;  %v4774_v35 = vmul.f32 %v4142_v30, %v1483_v26  ;;  %v812_v19 = vsel %vm4688_vm12, %v811_v14, %v807_v15  ;;  %v3624_v14 = vld [vmem:[%s6131_s4 + $0x70] sm:$0xff]  ;;  %2748 = vmatpush.bf16.msrb.mxu2 %v3616_v49 }
 0x111   : > { %v827_v11 = vsel %vm4692_vm13, %v826_v10, %v822_v0  ;;  %v713_v57 = vadd.f32 %v4686_v9, %v712_v54  ;;  %v4785_v33 = vmul.f32 %v4163_v43, %v1664_v32  ;;  %v728_v63 = vadd.f32 %v4712_v58, %v727_v34  ;;  %2760 = vmatpush.bf16.msrb.mxu3 %v3625_v16  ;;  %v1666_v10 = vld [vmem:[#allocation2 + $0x70] sm:$0x3]  ;;  %v1063_v32 = vld [vmem:[#allocation2 + $0xc8] sm:$0xfe] }
 0x112   : > { %v733_v40 = vand.u32 2147483647, %v4649_v45  ;;  %v840_v60 = vand.u32 2147483648, %v4742_v41  ;;  %3770 = vrcp.f32 %v4761_v18  ;;  %v1003_v17 = vld [vmem:[#allocation2 + $0xc8] sm:$0xff]  ;;  %v871_v15 = vmul.f32 %v812_v19, %v4477_v6  ;;  %v1065_v19 = vld [vmem:[#allocation2 + $0x20] sm:$0x1] }
 0x113   : > { %v717_v24 = vsel %vm4791_vm7, %v4686_v9, %v713_v57  ;;  %v1247_v16 = vld [vmem:[#allocation2 + $0xc8] sm:$0xfc]  ;;  %v872_v0 = vmul.f32 %v827_v11, %v4492_v29  ;;  %v6245_v26 = vand.u32 2147483648, %v4649_v45  ;;  %v838_v6 = vand.u32 2147483647, %v4742_v41 }
 0x114   : > { %v722_v9 = vsel %vm4734_vm1, %v4697_v52, %v717_v24  ;;  %v3615_v29 = vld [vmem:[%s6131_s4 + $0x28] sm:$0xff]  ;;  %v4832_v52 = vmul.f32 %v4163_v43, %v1666_v10  ;;  %v4835_v11 = vmul.f32 %v4139_v28, %v1063_v32  ;;  %v1249_v24 = vld [vmem:[#allocation2 + $0x20] sm:$0x3]  ;;  %v732_v45 = vsel %vm4819_vm9, %v4712_v58, %v728_v63 }
 0x115   : > { %v736_v34 = vor.u32 1.1754944e-38, %v6245_v26  ;;  %vm4840_vm10 = vcmp.eq.f32.partialorder %v733_v40, 8.507059e+37  ;;  %2761 = vmatpush.bf16.msrb.mxu3 %v3624_v14  ;;  %v3623_v26 = vld [vmem:[%s6131_s4 + $0x68] sm:$0xff]  ;;  %v4848_v10 = vmul.f32 %v4137_v27, %v1003_v17  ;;  %v4851_v32 = vmul.f32 %v4280_v2, %v1247_v16  ;;  %2749 = vmatpush.bf16.msrb.mxu2 %v3615_v29  ;;  %v1260_v29 = vld [vmem:[#allocation2 + $0xd8] sm:$0x3] }
 0x116   : > { %v4829_v48 = vpop.eup %3768  ;;  %vm834_vm11 = vweird.f32 %v4742_v41  ;;  %v4854_v7 = vor.u32 1.1754944e-38, %v840_v60  ;;  %v4857_v58 = vmul.f32 %v4283_v5, %v1003_v17  ;;  %v1482_v63 = vld [vmem:[#allocation2 + $0xc8] sm:$0xfe]  ;;  %v943_v40 = vrot.slane %v871_v15, 7  ;;  %v1484_v60 = vld [vmem:[#allocation2 + $0x20] sm:$0x1] }
 0x117   : > { %6248 = vst [vmem:[#allocation45_spill] sm:$0xff] %v4851_v32  ;;  %v944_v14 = vrot.slane %v872_v0, 7  ;;  %v865_v57 = vmul.f32 %v722_v9, %v4502_v23  ;;  %vm849_vm12 = vweird.f32 %v4761_v18  ;;  %v4864_v46 = vmul.f32 %v4139_v28, %v1065_v19  ;;  %v3614_v23 = vld [vmem:[%s6131_s4 + $0x20] sm:$0xff] }
 0x118   : > { %6249 = vst [vmem:[#allocation46_spill] sm:$0xff] %v4857_v58  ;;  %v4861_v54 = vpop.eup %3770  ;;  %v4867_v16 = vmul.f32 %v4280_v2, %v1249_v24  ;;  %v737_v17 = vsel %vm4840_vm10, %v736_v34, %v732_v45  ;;  %v830_v15 = vmul.f32 %v4829_v48, %v4742_v41  ;;  %vm4873_vm13 = vcmp.eq.f32.partialorder %v838_v6, 8.507059e+37  ;;  %v3622_v9 = vld [vmem:[%s6131_s4 + $0x60] sm:$0xff]  ;;  %v1665_v24 = vld [vmem:[#allocation2 + $0xc8] sm:$0xfc] }
 0x119   : > { %988 = vst [vmem:[#allocation2 + $0x68] sm:$0xfe] %v943_v40  ;;  %v937_v34 = vrot.slane %v865_v57, 7  ;;  %v866_v45 = vmul.f32 %v737_v17, %v4505_v50  ;;  %v845_v6 = vmul.f32 %v4861_v54, %v4761_v18  ;;  %2762 = vmatpush.bf16.msrb.mxu3 %v3623_v26  ;;  %v4889_v49 = vmul.f32 %v4286_v39, %v1482_v63 }
 0x11a   : > { %990 = vst [vmem:[#allocation2 + $0x50] sm:$0x1] %v943_v40  ;;  %v831_v38 = vsub.f32 1.0, %v830_v15  ;;  %v853_v58 = vand.u32 2147483647, %v4761_v18  ;;  %v1154_v57 = vrot.slane %v4626_v42, 1  ;;  %v4895_v17 = vmul.f32 %v4286_v39, %v1484_v60  ;;  %2750 = vmatpush.bf16.msrb.mxu2 %v3614_v23 }
 0x11b   : > { %989 = vst [vmem:[#allocation2 + $0x130] sm:$0xfe] %v944_v14  ;;  %v938_v19 = vrot.slane %v866_v45, 7  ;;  %v846_v5 = vsub.f32 1.0, %v845_v6  ;;  %v1155_v50 = vrot.slane %v4629_v55, 1  ;;  %vm835_vm14 = vweird.f32 %v4829_v48  ;;  %v3613_v40 = vld [vmem:[%s6131_s4 + $0x18] sm:$0xff] }
 0x11c   : > { %991 = vst [vmem:[#allocation2 + $0xe8] sm:$0x1] %v944_v14  ;;  %v832_v26 = vmul.f32 %v4829_v48, %v831_v38  ;;  %v855_v63 = vand.u32 2147483648, %v4761_v18  ;;  %vm850_vm15 = vweird.f32 %v4861_v54  ;;  %v3621_v55 = vld [vmem:[%s6131_s4 + $0x58] sm:$0xff]  ;;  %v4908_v38 = vld [vmem:[#allocation2 + $0xc0] sm:$0xff]  ;;  %v1190_v14 = vrot.slane %v4666_v62, 1  ;;  %vm4922_vm0 = vmor %vm834_vm11, %vm835_vm14 }
 0x11d   : > { %976 = vst [vmem:[#allocation2 + $0x128] sm:$0xfe] %v937_v34  ;;  %v847_v42 = vmul.f32 %v4861_v54, %v846_v5  ;;  %2763 = vmatpush.bf16.msrb.mxu3 %v3622_v9  ;;  %v1191_v60 = vrot.slane %v4669_v59, 1  ;;  %v4914_v23 = vmul.f32 %v4296_v8, %v1665_v24  ;;  %v1156_v9 = vsel %vm6170_vm3, %v1154_v57, %v1155_v50  ;;  %v1234_v45 = vld [vmem:[#allocation2 + $0xb0] sm:$0xfc]  ;;  %vm4948_vm2 = vmor %vm849_vm12, %vm850_vm15 }
 0x11e   : > { %978 = vst [vmem:[#allocation2 + $0x8] sm:$0x1] %v937_v34  ;;  %v833_v5 = vadd.f32 %v4829_v48, %v832_v26  ;;  %v1258_v6 = vld [vmem:[#allocation2 + $0xc0] sm:$0xfc]  ;;  %vm4927_vm1 = vcmp.eq.f32.partialorder %v853_v58, 8.507059e+37  ;;  %v6257_v34 = vrot.slane %v4729_v51, 1  ;;  %2751 = vmatpush.bf16.msrb.mxu2 %v3613_v40  ;;  %v1030_v51 = vmul.f32 %v4131_v25, %v4908_v38 }
 0x11f   : > { %6252 = vst [vmem:[#allocation47_spill] sm:$0xff] %v4914_v23  ;;  %v848_v59 = vadd.f32 %v4861_v54, %v847_v42  ;;  %v6258_v57 = vrot.slane %v4715_v37, 1  ;;  %v6259_v26 = vrot.slane %v4451_v12, 1  ;;  %v6260_v41 = vrot.slane %v4440_v56, 1  ;;  %v1236_v23 = vld [vmem:[#allocation2 + $0x10] sm:$0x3] }
 0x120   : > { %977 = vst [vmem:[#allocation2 + $0x110] sm:$0xfe] %v938_v19  ;;  %v1078_v32 = vld [vmem:[#allocation2 + $0x68] sm:$0xfe]  ;;  %v837_v58 = vsel %vm4922_vm0, %v4829_v48, %v833_v5  ;;  %v856_v12 = vor.u32 1.1754944e-38, %v855_v63  ;;  %v3612_v56 = vld [vmem:[%s6131_s4 + $0x10] sm:$0xff] }
 0x121   : > { %v1174_v50 = vsel %vm6170_vm3, %v6258_v57, %v6257_v34  ;;  %v1186_v15 = vsel %vm6170_vm3, %v6260_v41, %v6259_v26  ;;  %979 = vst [vmem:[#allocation2 + $0x98] sm:$0x1] %v938_v19  ;;  %v1192_v19 = vsel %vm6170_vm3, %v1190_v14, %v1191_v60  ;;  %v1080_v48 = vld [vmem:[#allocation2 + $0x50] sm:$0x1]  ;;  %v842_v18 = vsel %vm4873_vm13, %v4854_v7, %v837_v58  ;;  %v4967_v40 = vld [vmem:[#allocation2 + $0x68] sm:$0xff] }
 0x122   : > { %v852_v42 = vsel %vm4948_vm2, %v4861_v54, %v848_v59  ;;  %2764 = vmatpush.bf16.msrb.mxu3 %v3621_v55  ;;  %v3620_v63 = vld [vmem:[%s6131_s4 + $0x50] sm:$0xff]  ;;  %v4970_v5 = vmul.f32 %v4120_v21, %v1078_v32  ;;  %v4973_v14 = vadd.f32 %v1156_v9, %v4700_v36  ;;  %v873_v0 = vmul.f32 %v842_v18, %v4563_v20  ;;  %v3611_v60 = vld [vmem:[%s6131_s4 + $0x8] sm:$0xff] }
 0x123   : > { %v857_v7 = vsel %vm4927_vm1, %v856_v12, %v852_v42  ;;  %v4979_v54 = vadd.f32 %v1174_v50, %v4704_v47  ;;  %v4982_v55 = vadd.f32 %v1186_v15, %v4710_v61  ;;  %v3619_v36 = vld [vmem:[%s6131_s4 + $0x48] sm:$0xff]  ;;  %v4990_v32 = vadd.f32 %v1192_v19, %v1030_v51  ;;  %2752 = vmatpush.bf16.msrb.mxu2 %v3612_v56  ;;  %v1264_v24 = vld [vmem:[#allocation2 + $0x50] sm:$0x3] }
 0x124   : > { %v1262_v20 = vld [vmem:[#allocation2 + $0x68] sm:$0xfc]  ;;  %v4993_v9 = vmul.f32 %v4123_v22, %v1234_v45  ;;  %v4996_v47 = vmul.f32 %v4123_v22, %v1236_v23  ;;  %vm1337_vm4 = vcmask 1045504   ;;  %v1032_v62 = vmul.f32 %v4131_v25, %v4967_v40 }
 0x125   : > { %v1066_v61 = vld [vmem:[#allocation2 + $0x128] sm:$0xfe]  ;;  %v1119_v59 = vmul.f32 %v4120_v21, %v1080_v48  ;;  %v5002_v34 = vmul.f32 %v4123_v22, %v1258_v6  ;;  %v5005_v57 = vmul.f32 %v4123_v22, %v1260_v29  ;;  %v1068_v23 = vld [vmem:[#allocation2 + $0x8] sm:$0x1]  ;;  %v874_v58 = vmul.f32 %v857_v7, %v4617_v1 }
 0x126   : > { %v1250_v15 = vld [vmem:[#allocation2 + $0x128] sm:$0xfc]  ;;  %v1105_v50 = vmul.f32 %v4120_v21, %v1066_v61  ;;  %v1252_v26 = vld [vmem:[#allocation2 + $0x8] sm:$0x3]  ;;  %2765 = vmatpush.bf16.msrb.mxu3 %v3620_v63  ;;  %v1196_v37 = vrot.slane %v4970_v5, 1  ;;  %v1107_v6 = vmul.f32 %v4120_v21, %v1068_v23  ;;  %v945_v56 = vrot.slane %v873_v0, 7 }
 0x127   : > { %v5007_v45 = vld [vmem:[#allocation2 + $0x128] sm:$0xff]  ;;  %v5011_v41 = vmul.f32 %v4123_v22, %v1250_v15  ;;  %v1291_v12 = vmul.f32 %v4123_v22, %v1252_v26  ;;  %v1301_v51 = vmul.f32 %v4123_v22, %v1262_v20  ;;  %v1005_v18 = vld [vmem:[#allocation2 + $0x110] sm:$0xff]  ;;  %v1303_v61 = vmul.f32 %v4123_v22, %v1264_v24  ;;  %2753 = vmatpush.bf16.msrb.mxu2 %v3611_v60  ;;  %v3610_v22 = vld [vmem:[%s6131_s4] sm:$0xff] }
 0x128   : > { %v1485_v29 = vld [vmem:[#allocation2 + $0x128] sm:$0xfe]  ;;  %v1178_v19 = vrot.slane %v1105_v50, 1  ;;  %v1487_v48 = vld [vmem:[#allocation2 + $0x8] sm:$0x1]  ;;  %v6263_v15 = vrot.slane %v4336_v4, 2  ;;  %v1026_v20 = vmul.f32 %v4131_v25, %v5007_v45 }
 0x129   : > { %v1067_v42 = vld [vmem:[#allocation2 + $0x110] sm:$0xfe]  ;;  %v6264_v1 = vrot.slane %v4333_v3, 2  ;;  %v6265_v21 = vrot.slane %v4515_v31, 2  ;;  %v6266_v5 = vld [vmem:[#allocation24_spill] sm:$0xff]  ;;  %v1179_v23 = vrot.slane %v1107_v6, 1  ;;  %v5042_v25 = vmul.f32 %v4142_v30, %v1485_v29 }
 0x12a   : > { %v6267_v7 = vrot.slane %v6266_v5, 2  ;;  %v1069_v50 = vld [vmem:[#allocation2 + $0x98] sm:$0x1]  ;;  %v1251_v26 = vld [vmem:[#allocation2 + $0x110] sm:$0xfc]  ;;  %v6268_v3 = vrot.slane %v4740_v53, 2  ;;  %2766 = vmatpush.bf16.msrb.mxu3 %v3619_v36 }
 0x12b   : > { %v1346_v63 = vsel %vm1337_vm4, %v6264_v1, %v6263_v15  ;;  %v6269_v4 = vrot.slane %v4718_v44, 2  ;;  %v6270_v24 = vld [vmem:[#allocation18_spill] sm:$0xff]  ;;  %v1362_v1 = vrot.slane %v5011_v41, 2  ;;  %v946_v6 = vrot.slane %v874_v58, 7  ;;  %v3618_v60 = vld [vmem:[%s6131_s4 + $0x40] sm:$0xff]  ;;  %2754 = vmatpush.bf16.msrb.mxu2 %v3610_v22 }
 0x12c   : > { %v1352_v0 = vsel %vm1337_vm4, %v6267_v7, %v6265_v21  ;;  %v1404_v15 = vadd.f32 %v1346_v63, %v6270_v24  ;;  %v6271_v21 = vld [vmem:[#allocation31_spill] sm:$0xff]  ;;  %v1363_v53 = vrot.slane %v1291_v12, 2  ;;  %v5049_v44 = vmul.f32 %v4142_v30, %v1487_v48  ;;  %992 = vst [vmem:[#allocation2 + $0x58] sm:$0xfe] %v945_v56 }
 0x12d   : > { %v1358_v31 = vsel %vm1337_vm4, %v6269_v4, %v6268_v3  ;;  %v1406_v5 = vadd.f32 %v1352_v0, %v6271_v21  ;;  %v5052_v7 = vmul.f32 %v4137_v27, %v1005_v18  ;;  %v5055_v41 = vmul.f32 %v4139_v28, %v1067_v42  ;;  %994 = vst [vmem:[#allocation2 + $0x30] sm:$0x1] %v945_v56  ;;  %v6273_v42 = vld [vmem:[#allocation3_spill] sm:$0xff]  ;;  %v6274_v3 = vld [vmem:[#allocation21_spill] sm:$0xff] }
 0x12e   : > { %v5058_v29 = vmul.f32 %v4139_v28, %v1069_v50  ;;  %v5061_v36 = vmul.f32 %v4280_v2, %v1251_v26  ;;  %v1180_v58 = vsel %vm6170_vm3, %v1178_v19, %v1179_v23  ;;  %v1197_v63 = vrot.slane %v1119_v59, 1  ;;  %993 = vst [vmem:[#allocation2 + $0x78] sm:$0xfe] %v946_v6  ;;  %2767 = vmatpush.bf16.msrb.mxu3 %v3618_v60  ;;  %v6275_v19 = vld [vmem:[#allocation22_spill] sm:$0xff]  ;;  %v5075_v23 = vld [vmem:[#allocation2 + $0xa8] sm:$0xff] }
 0x12f   : > { %v1338_v12 = vrot.slane %v4993_v9, 2  ;;  %v1339_v48 = vrot.slane %v4996_v47, 2  ;;  %v1408_v18 = vadd.f32 %v1358_v31, %v4979_v54  ;;  %v1447_v0 = vmul.f32 %v6273_v42, %v5007_v45  ;;  %995 = vst [vmem:[#allocation2 + $0x40] sm:$0x1] %v946_v6  ;;  %v1668_v60 = vld [vmem:[#allocation2 + $0x128] sm:$0xfc] }
 0x130   : > { %6272 = vst [vmem:[#allocation24_spill] sm:$0xff] %v5061_v36  ;;  %v1198_v50 = vsel %vm6170_vm3, %v1196_v37, %v1197_v63  ;;  %v1226_v26 = vadd.f32 %v1180_v58, %v1026_v20  ;;  %v1368_v4 = vrot.slane %v6274_v3, 2  ;;  %v1369_v59 = vrot.slane %v6275_v19, 2  ;;  %v1489_v20 = vld [vmem:[#allocation2 + $0xa8] sm:$0xfe] }
 0x131   : > { %v1232_v56 = vadd.f32 %v1198_v50, %v1032_v62  ;;  %v1340_v9 = vsel %vm1337_vm4, %v1338_v12, %v1339_v48  ;;  %v1374_v47 = vrot.slane %v5002_v34, 2  ;;  %v1375_v54 = vrot.slane %v5005_v57, 2  ;;  %v1491_v34 = vld [vmem:[#allocation2 + $0xe0] sm:$0x1]  ;;  %v1497_v3 = vld [vmem:[#allocation2 + $0x68] sm:$0xfe] }
 0x132   : > { %v1380_v31 = vrot.slane %v1301_v51, 2  ;;  %v1381_v24 = vrot.slane %v1303_v61, 2  ;;  %v1402_v37 = vadd.f32 %v1340_v9, %v4973_v14  ;;  %v1364_v6 = vsel %vm1337_vm4, %v1362_v1, %v1363_v53  ;;  %v1493_v61 = vld [vmem:[#allocation2 + $0xc0] sm:$0xfe]  ;;  %v1495_v14 = vld [vmem:[#allocation2 + $0xd8] sm:$0x1] }
 0x133   : > { %v1370_v62 = vsel %vm1337_vm4, %v1368_v4, %v1369_v59  ;;  %v1376_v21 = vsel %vm1337_vm4, %v1374_v47, %v1375_v54  ;;  %v1410_v58 = vadd.f32 %v1364_v6, %v1226_v26  ;;  %v1449_v51 = vmul.f32 %v6273_v42, %v5075_v23  ;;  %v5088_v50 = vld [vmem:[#allocation2 + $0x58] sm:$0xff]  ;;  %v1499_v26 = vld [vmem:[#allocation2 + $0x50] sm:$0x1]  ;;  %v6276_v4 = vld [vmem:[#allocation8_spill] sm:$0xff] }
 0x134   : > { %v1382_v57 = vsel %vm1337_vm4, %v1380_v31, %v1381_v24  ;;  %v1412_v63 = vadd.f32 %v1370_v62, %v4982_v55  ;;  %v1414_v12 = vadd.f32 %v1376_v21, %v4990_v32  ;;  %v1451_v1 = vmul.f32 %v6273_v42, %v4908_v38  ;;  %v6277_v59 = vld [vmem:[#allocation32_spill] sm:$0xff]  ;;  %v1503_v54 = vld [vmem:[#allocation2 + $0x30] sm:$0x1] }
 0x135   : > { %v1416_v48 = vadd.f32 %v1382_v57, %v1232_v56  ;;  %v1453_v53 = vmul.f32 %v6273_v42, %v4967_v40  ;;  %v1455_v55 = vmul.f32 %v6273_v42, %v5088_v50  ;;  %v1457_v19 = vadd.f32 %v6276_v4, %v1402_v37  ;;  %v6278_v47 = vld [vmem:[#allocation44_spill] sm:$0xff]  ;;  %v1501_v56 = vld [vmem:[#allocation2 + $0x58] sm:$0xfe]  ;;  %v6279_v4 = vld [vmem:[#allocation7_spill] sm:$0xff] }
 0x136   : > { %v1459_v9 = vadd.f32 %v6277_v59, %v1404_v15  ;;  %v1461_v32 = vadd.f32 %v6278_v47, %v1406_v5  ;;  %v1463_v31 = vadd.f32 %v1447_v0, %v1408_v18  ;;  %v1528_v24 = vmul.f32 %v4142_v30, %v1489_v20  ;;  %v6281_v18 = vld [vmem:[#allocation6_spill] sm:$0xff] }
 0x137   : > { %v1530_v6 = vmul.f32 %v4142_v30, %v1491_v34  ;;  %v1532_v62 = vmul.f32 %v4142_v30, %v1493_v61  ;;  %v1465_v21 = vadd.f32 %v1449_v51, %v1410_v58  ;;  %v1534_v57 = vmul.f32 %v4142_v30, %v1495_v14  ;;  %v6283_v34 = vld [vmem:[#allocation28_spill] sm:$0xff]  ;;  %v6285_v61 = vld [vmem:[#allocation27_spill] sm:$0xff] }
 0x138   : > { %v1536_v42 = vmul.f32 %v4142_v30, %v1497_v3  ;;  %v1538_v37 = vmul.f32 %v4142_v30, %v1499_v26  ;;  %v1540_v15 = vmul.f32 %v4142_v30, %v1501_v56  ;;  %v1542_v5 = vmul.f32 %v4142_v30, %v1503_v54 }
 0x139   : > { %v6280_v59 = vrot.slane %v6279_v4, 1  ;;  %v6282_v0 = vrot.slane %v6281_v18, 1  ;;  %v6284_v47 = vrot.slane %v6283_v34, 1  ;;  %v6286_v58 = vrot.slane %v6285_v61, 1  ;;  %v1672_v34 = vld [vmem:[#allocation2 + $0xa8] sm:$0xfc] }
 0x13a   : > { %v6287_v14 = vrot.slane %v4774_v35, 1  ;;  %v6288_v3 = vrot.slane %v4746_v13, 1  ;;  %v1594_v30 = vrot.slane %v5042_v25, 1  ;;  %v1595_v56 = vrot.slane %v5049_v44, 1  ;;  %v1674_v35 = vld [vmem:[#allocation2 + $0xe0] sm:$0x3] }
 0x13b   : > { %v1578_v20 = vsel %vm6170_vm3, %v6282_v0, %v6280_v59  ;;  %v1584_v51 = vsel %vm6170_vm3, %v6286_v58, %v6284_v47  ;;  %v1600_v54 = vrot.slane %v1528_v24, 1  ;;  %v1601_v4 = vrot.slane %v1530_v6, 1  ;;  %v1670_v13 = vld [vmem:[#allocation2 + $0x8] sm:$0x3]  ;;  %v1676_v44 = vld [vmem:[#allocation2 + $0xc0] sm:$0xfc] }
 0x13c   : > { %v1590_v26 = vsel %vm6170_vm3, %v6288_v3, %v6287_v14  ;;  %v1606_v18 = vrot.slane %v1532_v62, 1  ;;  %v1607_v59 = vrot.slane %v1534_v57, 1  ;;  %v1612_v0 = vrot.slane %v1536_v42, 1  ;;  %v1678_v42 = vld [vmem:[#allocation2 + $0xd8] sm:$0x3] }
 0x13d   : > { %v1596_v61 = vsel %vm6170_vm3, %v1594_v30, %v1595_v56  ;;  %v1613_v22 = vrot.slane %v1538_v37, 1  ;;  %v1618_v47 = vrot.slane %v1540_v15, 1  ;;  %v1619_v58 = vrot.slane %v1542_v5, 1  ;;  %v1680_v30 = vld [vmem:[#allocation2 + $0x68] sm:$0xfc] }
 0x13e   : > { %v1467_v36 = vadd.f32 %v1451_v1, %v1412_v63  ;;  %v1469_v14 = vadd.f32 %v1453_v53, %v1414_v12  ;;  %v1471_v3 = vadd.f32 %v1455_v55, %v1416_v48  ;;  %v1602_v25 = vsel %vm6170_vm3, %v1600_v54, %v1601_v4  ;;  %v1682_v37 = vld [vmem:[#allocation2 + $0x50] sm:$0x3]  ;;  %v1684_v63 = vld [vmem:[#allocation2 + $0x58] sm:$0xfc] }
 0x13f   : > { %v1608_v24 = vsel %vm6170_vm3, %v1606_v18, %v1607_v59  ;;  %v1614_v6 = vsel %vm6170_vm3, %v1612_v0, %v1613_v22  ;;  %v1640_v62 = vadd.f32 %v1578_v20, %v1457_v19  ;;  %v1642_v57 = vadd.f32 %v1584_v51, %v1459_v9  ;;  %v1686_v12 = vld [vmem:[#allocation2 + $0x30] sm:$0x3] }
 0x140   : > { %v1620_v15 = vsel %vm6170_vm3, %v1618_v47, %v1619_v58  ;;  %v1644_v5 = vadd.f32 %v1590_v26, %v1461_v32  ;;  %v1646_v56 = vadd.f32 %v1596_v61, %v1463_v31  ;;  %v1648_v39 = vadd.f32 %v1602_v25, %v1465_v21  ;;  %v6289_v47 = vld [vmem:[#allocation10_spill] sm:$0xff] }
 0x141   : > { %v1707_v48 = vmul.f32 %v4163_v43, %v1668_v60  ;;  %v1709_v1 = vmul.f32 %v4163_v43, %v1670_v13  ;;  %v1711_v53 = vmul.f32 %v4163_v43, %v1672_v34  ;;  %v1713_v22 = vmul.f32 %v4163_v43, %v1674_v35  ;;  %v6291_v35 = vld [vmem:[#allocation9_spill] sm:$0xff] }
 0x142   : > { %v1715_v55 = vmul.f32 %v4163_v43, %v1676_v44  ;;  %v1717_v19 = vmul.f32 %v4163_v43, %v1678_v42  ;;  %v1719_v9 = vmul.f32 %v4163_v43, %v1680_v30  ;;  %v1721_v32 = vmul.f32 %v4163_v43, %v1682_v37 }
 0x143   : > { %v1650_v31 = vadd.f32 %v1608_v24, %v1467_v36  ;;  %v1652_v21 = vadd.f32 %v1614_v6, %v1469_v14  ;;  %v1723_v20 = vmul.f32 %v4163_v43, %v1684_v63  ;;  %v1725_v60 = vmul.f32 %v4163_v43, %v1686_v12  ;;  %v6293_v43 = vld [vmem:[#allocation30_spill] sm:$0xff] }
 0x144   : > { %v1771_v51 = vrot.slane %v4785_v33, 2  ;;  %v1772_v26 = vrot.slane %v4832_v52, 2  ;;  %v1777_v54 = vrot.slane %v1707_v48, 2  ;;  %v1778_v4 = vrot.slane %v1709_v1, 2  ;;  %v6295_v33 = vld [vmem:[#allocation29_spill] sm:$0xff] }
 0x145   : > { %v1783_v18 = vrot.slane %v1711_v53, 2  ;;  %v1784_v59 = vrot.slane %v1713_v22, 2  ;;  %v1789_v0 = vrot.slane %v1715_v55, 2  ;;  %v1790_v34 = vrot.slane %v1717_v19, 2 }
 0x146   : > { %v1654_v61 = vadd.f32 %v1620_v15, %v1471_v3  ;;  %v6290_v58 = vrot.slane %v6289_v47, 2  ;;  %v6292_v36 = vrot.slane %v6291_v35, 2  ;;  %v1795_v14 = vrot.slane %v1719_v9, 2  ;;  %v3374_v3 = vld [vmem:[%s6130_s3 + $0x6] ss:$8 sm:$0x3] }
 0x147   : > { %v1796_v25 = vrot.slane %v1721_v32, 2  ;;  %v6294_v44 = vrot.slane %v6293_v43, 2  ;;  %v6296_v24 = vrot.slane %v6295_v33, 2  ;;  %v1773_v6 = vsel %vm1337_vm4, %v1771_v51, %v1772_v26  ;;  %v3375_v48 = vld [vmem:[%s6130_s3 + $0x7] ss:$8 sm:$0x3] }
 0x148   : > { %v1761_v13 = vsel %vm1337_vm4, %v6292_v36, %v6290_v58  ;;  %v1801_v42 = vrot.slane %v1723_v20, 2  ;;  %v1802_v30 = vrot.slane %v1725_v60, 2  ;;  %v1779_v37 = vsel %vm1337_vm4, %v1777_v54, %v1778_v4  ;;  %v3376_v1 = vld [vmem:[%s6130_s3 + $0x10] ss:$8 sm:$0x3]  ;;  %v1840_v9 = vld [vmem:[#allocation2 + $0x80] sm:$0xff] }
 0x149   : > { %v1767_v52 = vsel %vm1337_vm4, %v6296_v24, %v6294_v44  ;;  %v1785_v15 = vsel %vm1337_vm4, %v1783_v18, %v1784_v59  ;;  %v1791_v63 = vsel %vm1337_vm4, %v1789_v0, %v1790_v34  ;;  %v1797_v12 = vsel %vm1337_vm4, %v1795_v14, %v1796_v25  ;;  %v1895_v26 = vld [vmem:[#allocation2 + $0x80] sm:$0xfe]  ;;  %v1897_v0 = vld [vmem:[#allocation2 + $0x138] sm:$0x1]  ;;  %v1899_v34 = vld [vmem:[#allocation2 + $0x18] sm:$0xfe] }
 0x14a   : > { %v1803_v53 = vsel %vm1337_vm4, %v1801_v42, %v1802_v30  ;;  %v1823_v22 = vadd.f32 %v1761_v13, %v1640_v62  ;;  %v1825_v55 = vadd.f32 %v1767_v52, %v1642_v57  ;;  %v1827_v19 = vadd.f32 %v1773_v6, %v1644_v5  ;;  %v1901_v47 = vld [vmem:[#allocation2 + $0x70] sm:$0x1]  ;;  %v6297_v35 = vld [vmem:[#allocation43_spill] sm:$0xff]  ;;  %v1905_v13 = vld [vmem:[#allocation2 + $0x8] sm:$0x1] }
 0x14b   : > { %v1829_v32 = vadd.f32 %v1779_v37, %v1646_v56  ;;  %v1831_v20 = vadd.f32 %v1785_v15, %v1648_v39  ;;  %v1833_v60 = vadd.f32 %v1791_v63, %v1650_v31  ;;  %v1859_v51 = vperm.slane %v3374_v3, 0  ;;  %v5174_v31 = vld [vmem:[#allocation2 + $0xb0] sm:$0xff]  ;;  %v1907_v14 = vld [vmem:[#allocation2 + $0xa8] sm:$0xfe]  ;;  %v1911_v33 = vld [vmem:[#allocation2 + $0xc0] sm:$0xfe] }
 0x14c   : > { %v1835_v54 = vadd.f32 %v1797_v12, %v1652_v21  ;;  %v1837_v4 = vadd.f32 %v1803_v53, %v1654_v61  ;;  %v1930_v18 = vperm.slane %v3375_v48, 0  ;;  %v5166_v59 = vperm.slane %v3376_v1, 0  ;;  %v1903_v61 = vld [vmem:[#allocation2 + $0x128] sm:$0xfe]  ;;  %v1917_v42 = vld [vmem:[#allocation2 + $0x50] sm:$0x1] }
 0x14d   : > { %v1863_v58 = vmul.f32 %v1859_v51, %v1840_v9  ;;  %v1865_v36 = vmul.f32 %v1859_v51, %v6297_v35  ;;  %v1867_v62 = vmul.f32 %v1859_v51, %v5007_v45  ;;  %v1869_v57 = vmul.f32 %v1859_v51, %v5075_v23  ;;  %v1909_v23 = vld [vmem:[#allocation2 + $0xe0] sm:$0x1]  ;;  %v1915_v6 = vld [vmem:[#allocation2 + $0x68] sm:$0xfe]  ;;  %v1919_v30 = vld [vmem:[#allocation2 + $0x58] sm:$0xfe] }
 0x14e   : > { %v1871_v39 = vmul.f32 %v1859_v51, %v4908_v38  ;;  %v1873_v5 = vmul.f32 %v1859_v51, %v4967_v40  ;;  %v1875_v56 = vmul.f32 %v1859_v51, %v5088_v50  ;;  %v1877_v21 = vmul.f32 %v5174_v31, %v1859_v51  ;;  %v1913_v38 = vld [vmem:[#allocation2 + $0xd8] sm:$0x1]  ;;  %v1921_v3 = vld [vmem:[#allocation2 + $0x30] sm:$0x1]  ;;  %v1923_v37 = vld [vmem:[#allocation2 + $0x28] sm:$0xfe] }
 0x14f   : > { %v1879_v25 = vadd.f32 %v1863_v58, %v1823_v22  ;;  %v1881_v43 = vadd.f32 %v1865_v36, %v1825_v55  ;;  %v5177_v44 = vadd.f32 %v1867_v62, %v1827_v19  ;;  %v5179_v45 = vadd.f32 %v1869_v57, %v1829_v32  ;;  %v1925_v15 = vld [vmem:[#allocation2 + $0xb8] sm:$0x1] }
 0x150   : > { %v1887_v24 = vadd.f32 %v1871_v39, %v1831_v20  ;;  %v5181_v40 = vadd.f32 %v1873_v5, %v1833_v60  ;;  %v5183_v50 = vadd.f32 %v1875_v56, %v1835_v54  ;;  %v5185_v52 = vadd.f32 %v1877_v21, %v1837_v4 }
 0x151   : > { %v1934_v63 = vmul.f32 %v1930_v18, %v1895_v26  ;;  %v1936_v12 = vmul.f32 %v1930_v18, %v1897_v0  ;;  %v1938_v48 = vmul.f32 %v1930_v18, %v1899_v34  ;;  %v1940_v1 = vmul.f32 %v1930_v18, %v1901_v47 }
 0x152   : > { %v1942_v53 = vmul.f32 %v1930_v18, %v1903_v61  ;;  %v1944_v22 = vmul.f32 %v1930_v18, %v1905_v13  ;;  %v1946_v55 = vmul.f32 %v1930_v18, %v1907_v14  ;;  %v1948_v19 = vmul.f32 %v1930_v18, %v1909_v23  ;;  %v2078_v23 = vld [vmem:[#allocation2 + $0x80] sm:$0xfc] }
 0x153   : > { %v1950_v9 = vmul.f32 %v1930_v18, %v1911_v33  ;;  %v1952_v32 = vmul.f32 %v1930_v18, %v1913_v38  ;;  %v1954_v20 = vmul.f32 %v1930_v18, %v1915_v6  ;;  %v1956_v60 = vmul.f32 %v1930_v18, %v1917_v42  ;;  %v2080_v33 = vld [vmem:[#allocation2 + $0x138] sm:$0x3] }
 0x154   : > { %v1958_v51 = vmul.f32 %v1930_v18, %v1919_v30  ;;  %v1960_v54 = vmul.f32 %v1930_v18, %v1921_v3  ;;  %v1962_v4 = vmul.f32 %v1930_v18, %v1923_v37  ;;  %v1964_v58 = vmul.f32 %v1930_v18, %v1925_v15  ;;  %v2082_v3 = vld [vmem:[#allocation2 + $0x18] sm:$0xfc]  ;;  %v2090_v37 = vld [vmem:[#allocation2 + $0xa8] sm:$0xfc]  ;;  %v2092_v15 = vld [vmem:[#allocation2 + $0xe0] sm:$0x3] }
 0x155   : > { %v1998_v35 = vrot.slane %v1934_v63, 1  ;;  %v1999_v36 = vrot.slane %v1936_v12, 1  ;;  %v2004_v62 = vrot.slane %v1938_v48, 1  ;;  %v2005_v57 = vrot.slane %v1940_v1, 1 }
 0x156   : > { %v2010_v26 = vrot.slane %v1942_v53, 1  ;;  %v2011_v0 = vrot.slane %v1944_v22, 1  ;;  %v2016_v34 = vrot.slane %v1946_v55, 1  ;;  %v2017_v47 = vrot.slane %v1948_v19, 1  ;;  %v2084_v53 = vld [vmem:[#allocation2 + $0x70] sm:$0x3] }
 0x157   : > { %v2000_v39 = vsel %vm6170_vm3, %v1998_v35, %v1999_v36  ;;  %v2006_v5 = vsel %vm6170_vm3, %v2004_v62, %v2005_v57  ;;  %v2022_v56 = vrot.slane %v1950_v9, 1  ;;  %v2023_v21 = vrot.slane %v1952_v32, 1  ;;  %v2086_v22 = vld [vmem:[#allocation2 + $0x128] sm:$0xfc]  ;;  %v2102_v35 = vld [vmem:[#allocation2 + $0x58] sm:$0xfc] }
 0x158   : > { %v2012_v61 = vsel %vm6170_vm3, %v2010_v26, %v2011_v0  ;;  %v2018_v13 = vsel %vm6170_vm3, %v2016_v34, %v2017_v47  ;;  %v2028_v14 = vrot.slane %v1954_v20, 1  ;;  %v2029_v18 = vrot.slane %v1956_v60, 1  ;;  %v2088_v20 = vld [vmem:[#allocation2 + $0x8] sm:$0x3]  ;;  %v2094_v60 = vld [vmem:[#allocation2 + $0xc0] sm:$0xfc] }
 0x159   : > { %v2024_v38 = vsel %vm6170_vm3, %v2022_v56, %v2023_v21  ;;  %v2034_v6 = vrot.slane %v1958_v51, 1  ;;  %v2035_v42 = vrot.slane %v1960_v54, 1  ;;  %v2040_v30 = vrot.slane %v1962_v4, 1  ;;  %v2096_v51 = vld [vmem:[#allocation2 + $0xd8] sm:$0x3] }
 0x15a   : > { %v2030_v63 = vsel %vm6170_vm3, %v2028_v14, %v2029_v18  ;;  %v2041_v12 = vrot.slane %v1964_v58, 1  ;;  %v2062_v48 = vadd.f32 %v2000_v39, %v1879_v25  ;;  %v2064_v1 = vadd.f32 %v2006_v5, %v1881_v43  ;;  %v2098_v25 = vld [vmem:[#allocation2 + $0x68] sm:$0xfc]  ;;  %v2100_v43 = vld [vmem:[#allocation2 + $0x50] sm:$0x3] }
 0x15b   : > { %v2036_v55 = vsel %vm6170_vm3, %v2034_v6, %v2035_v42  ;;  %v2066_v19 = vadd.f32 %v2012_v61, %v5177_v44  ;;  %v2068_v9 = vadd.f32 %v2018_v13, %v5179_v45  ;;  %v2070_v32 = vadd.f32 %v2024_v38, %v1887_v24  ;;  %v2104_v44 = vld [vmem:[#allocation2 + $0x30] sm:$0x3]  ;;  %v2106_v57 = vld [vmem:[#allocation2 + $0x28] sm:$0xfc]  ;;  %v2108_v45 = vld [vmem:[#allocation2 + $0xb8] sm:$0x3] }
 0x15c   : > { %v2042_v54 = vsel %vm6170_vm3, %v2040_v30, %v2041_v12  ;;  %v2072_v4 = vadd.f32 %v2030_v63, %v5181_v40  ;;  %v2074_v58 = vadd.f32 %v2036_v55, %v5183_v50  ;;  %v2117_v36 = vmul.f32 %v5166_v59, %v2078_v23 }
 0x15d   : > { %v2076_v62 = vadd.f32 %v2042_v54, %v5185_v52  ;;  %v2119_v24 = vmul.f32 %v5166_v59, %v2080_v33  ;;  %v2121_v26 = vmul.f32 %v5166_v59, %v2082_v3  ;;  %v2123_v0 = vmul.f32 %v5166_v59, %v2084_v53 }
 0x15e   : > { %v2125_v40 = vmul.f32 %v5166_v59, %v2086_v22  ;;  %v2127_v50 = vmul.f32 %v5166_v59, %v2088_v20  ;;  %v2129_v34 = vmul.f32 %v5166_v59, %v2090_v37  ;;  %v2131_v47 = vmul.f32 %v5166_v59, %v2092_v15 }
 0x15f   : > { %v2133_v39 = vmul.f32 %v5166_v59, %v2094_v60  ;;  %v2135_v52 = vmul.f32 %v5166_v59, %v2096_v51  ;;  %v2137_v5 = vmul.f32 %v5166_v59, %v2098_v25  ;;  %v2139_v56 = vmul.f32 %v5166_v59, %v2100_v43 }
 0x160   : > { %v2141_v21 = vmul.f32 %v5166_v59, %v2102_v35  ;;  %v2143_v61 = vmul.f32 %v5166_v59, %v2104_v44  ;;  %v2145_v13 = vmul.f32 %v5166_v59, %v2106_v57  ;;  %v2147_v14 = vmul.f32 %v5166_v59, %v2108_v45  ;;  %v1007_v44 = vld [vmem:[#allocation2 + $0x90] sm:$0xff] }
 0x161   : > { %v2181_v18 = vrot.slane %v2117_v36, 2  ;;  %v2182_v23 = vrot.slane %v2119_v24, 2  ;;  %v2187_v33 = vrot.slane %v2121_v26, 2  ;;  %v2188_v38 = vrot.slane %v2123_v0, 2  ;;  %v1051_v0 = vld [vmem:[#allocation2 + $0xd0] sm:$0xfe] }
 0x162   : > { %v2193_v6 = vrot.slane %v2125_v40, 2  ;;  %v2194_v42 = vrot.slane %v2127_v50, 2  ;;  %v2199_v30 = vrot.slane %v2129_v34, 2  ;;  %v2200_v3 = vrot.slane %v2131_v47, 2  ;;  %v1053_v47 = vld [vmem:[#allocation2 + $0x48] sm:$0x1] }
 0x163   : > { %v2183_v37 = vsel %vm1337_vm4, %v2181_v18, %v2182_v23  ;;  %v2189_v15 = vsel %vm1337_vm4, %v2187_v33, %v2188_v38  ;;  %v2205_v63 = vrot.slane %v2133_v39, 2  ;;  %v2206_v12 = vrot.slane %v2135_v52, 2  ;;  %v1079_v52 = vld [vmem:[#allocation2 + $0x130] sm:$0xfe] }
 0x164   : > { %v2195_v53 = vsel %vm1337_vm4, %v2193_v6, %v2194_v42  ;;  %v2201_v22 = vsel %vm1337_vm4, %v2199_v30, %v2200_v3  ;;  %v2211_v55 = vrot.slane %v2137_v5, 2  ;;  %v2212_v59 = vrot.slane %v2139_v56, 2  ;;  %v1253_v42 = vld [vmem:[#allocation2 + $0x98] sm:$0x3]  ;;  %v6300_v3 = vld [vmem:[#allocation41_spill] sm:$0xff] }
 0x165   : > { %v2207_v20 = vsel %vm1337_vm4, %v2205_v63, %v2206_v12  ;;  %v2217_v60 = vrot.slane %v2141_v21, 2  ;;  %v2218_v51 = vrot.slane %v2143_v61, 2  ;;  %v2223_v54 = vrot.slane %v2145_v13, 2  ;;  %v1081_v61 = vld [vmem:[#allocation2 + $0xe8] sm:$0x1] }
 0x166   : > { %v2213_v25 = vsel %vm1337_vm4, %v2211_v55, %v2212_v59  ;;  %v2224_v43 = vrot.slane %v2147_v14, 2  ;;  %v5222_v35 = vadd.f32 %v2183_v37, %v2062_v48  ;;  %v5224_v36 = vadd.f32 %v2189_v15, %v2064_v1  ;;  %v5239_v1 = vld [vmem:[#allocation2 + $0x118] sm:$0xff]  ;;  %v6304_v55 = vld [vmem:[#allocation23_spill] sm:$0xff]  ;;  %v6306_v59 = vld [vmem:[#allocation20_spill] sm:$0xff] }
 0x167   : > { %v2219_v57 = vsel %vm1337_vm4, %v2217_v60, %v2218_v51  ;;  %v5227_v45 = vadd.f32 %v2195_v53, %v2066_v19  ;;  %v5229_v24 = vadd.f32 %v2201_v22, %v2068_v9  ;;  %v5231_v26 = vadd.f32 %v2207_v20, %v2070_v32  ;;  %v6301_v15 = vld [vmem:[#allocation42_spill] sm:$0xff] }
 0x168   : > { %v2225_v40 = vsel %vm1337_vm4, %v2223_v54, %v2224_v43  ;;  %v5234_v50 = vadd.f32 %v2213_v25, %v2072_v4  ;;  %v5236_v34 = vadd.f32 %v2219_v57, %v2074_v58  ;;  %v3377_v48 = vmul.f32 -1.442695, %v5222_v35 }
 0x169   : > { %v5241_v39 = vadd.f32 %v2225_v40, %v2076_v62  ;;  %v3379_v19 = vmul.f32 -1.442695, %v5224_v36  ;;  %v3381_v9 = vmul.f32 -1.442695, %v5227_v45  ;;  %v3383_v32 = vmul.f32 -1.442695, %v5229_v24 }
 0x16a   : > { %3772 = vpow2.f32 %v3377_v48  ;;  %v3385_v4 = vmul.f32 -1.442695, %v5231_v26  ;;  %v1019_v58 = vmul.f32 %v5174_v31, %v4137_v27  ;;  %v1029_v5 = vmul.f32 %v4137_v27, %v1007_v44  ;;  %v1486_v40 = vld [vmem:[#allocation2 + $0x110] sm:$0xfe] }
 0x16b   : > { %3774 = vpow2.f32 %v3379_v19  ;;  %v3387_v56 = vmul.f32 -1.442695, %v5234_v50  ;;  %v1031_v62 = vmul.f32 %v4137_v27, %v5239_v1  ;;  %v1090_v21 = vmul.f32 %v4139_v28, %v1051_v0  ;;  %v1667_v0 = vld [vmem:[#allocation2 + $0x20] sm:$0x3] }
 0x16c   : > { %3776 = vpow2.f32 %v3381_v9  ;;  %v3389_v13 = vmul.f32 -1.442695, %v5236_v34  ;;  %v3391_v14 = vmul.f32 -1.442695, %v5241_v39  ;;  %v1092_v18 = vmul.f32 %v4139_v28, %v1053_v47 }
 0x16d   : > { %3778 = vpow2.f32 %v3383_v32  ;;  %v1118_v31 = vmul.f32 %v4139_v28, %v1079_v52  ;;  %v1157_v23 = vrot.slane %v1090_v21, 1  ;;  %v6298_v33 = vrot.slane %v4864_v46, 1  ;;  %v1488_v32 = vld [vmem:[#allocation2 + $0x98] sm:$0x1] }
 0x16e   : > { %v6299_v38 = vrot.slane %v4835_v11, 1  ;;  %3780 = vpow2.f32 %v3385_v4  ;;  %v1158_v30 = vrot.slane %v1092_v18, 1  ;;  %v1193_v37 = vrot.slane %v6300_v3, 1  ;;  %v6310_v3 = vld [vmem:[#allocation24_spill] sm:$0xff] }
 0x16f   : > { %v1194_v63 = vrot.slane %v6301_v15, 1  ;;  %3782 = vpow2.f32 %v3387_v56  ;;  %v1120_v12 = vmul.f32 %v4139_v28, %v1081_v61  ;;  %v6302_v53 = vrot.slane %v5058_v29, 1 }
 0x170   : > { %v1177_v6 = vsel %vm6170_vm3, %v6299_v38, %v6298_v33  ;;  %v6303_v22 = vrot.slane %v5055_v41, 1  ;;  %v6305_v11 = vrot.slane %v6304_v55, 1  ;;  %v6307_v20 = vrot.slane %v6306_v59, 1  ;;  %v3773_v51 = vpop.eup %3772  ;;  %v6309_v33 = vld [vmem:[#allocation5_spill] sm:$0xff] }
 0x171   : > { %3784 = vpow2.f32 %v3389_v13  ;;  %v1159_v54 = vsel %vm6170_vm3, %v1157_v23, %v1158_v30  ;;  %v1195_v25 = vsel %vm6170_vm3, %v1193_v37, %v1194_v63  ;;  %v5279_v28 = vadd.f32 %v1177_v6, %v4848_v10  ;;  %v3775_v29 = vpop.eup %3774  ;;  %v6335_v37 = vld [vmem:[#allocation13_spill] sm:$0xff] }
 0x172   : > { %v1183_v46 = vsel %vm6170_vm3, %v6303_v22, %v6302_v53  ;;  %v1189_v60 = vsel %vm6170_vm3, %v6307_v20, %v6305_v11  ;;  %v5282_v41 = vmul.f32 %v4280_v2, %v1253_v42  ;;  %3786 = vpow2.f32 %v3391_v14  ;;  %v3777_v57 = vpop.eup %3776 }
 0x173   : > { %v5284_v43 = vadd.f32 1.0, %v3773_v51  ;;  %v5286_v44 = vadd.f32 %v1159_v54, %v1019_v58  ;;  %v5288_v48 = vadd.f32 1.0, %v3775_v29  ;;  %v5291_v47 = vadd.f32 %v1183_v46, %v5052_v7  ;;  %v3779_v9 = vpop.eup %3778  ;;  %v5305_v7 = vld [vmem:[#allocation2 + $0x130] sm:$0xff] }
 0x174   : > { %v5293_v19 = vadd.f32 %v1189_v60, %v1029_v5  ;;  %v5295_v10 = vadd.f32 %v1195_v25, %v1031_v62  ;;  %v5297_v52 = vadd.f32 1.0, %v3777_v57  ;;  %v1199_v4 = vrot.slane %v1118_v31, 1  ;;  %v3781_v56 = vpop.eup %3780 }
 0x175   : > { %3788 = vrcp.f32 %v5284_v43  ;;  %v1200_v58 = vrot.slane %v1120_v12, 1  ;;  %v5302_v13 = vadd.f32 1.0, %v3779_v9  ;;  %v3783_v5 = vpop.eup %3782  ;;  %v5309_v14 = vmul.f32 %v4296_v8, %v1667_v0 }
 0x176   : > { %3790 = vrcp.f32 %v5288_v48  ;;  %v5311_v18 = vadd.f32 1.0, %v3781_v56  ;;  %v2336_v31 = vand.u32 2147483648, %v5284_v43  ;;  %v5315_v38 = vmul.f32 %v6309_v33, %v1486_v40 }
 0x177   : > { %6308 = vst [vmem:[#allocation18_spill] sm:$0xff] %v5309_v14  ;;  %v3785_v23 = vpop.eup %3784  ;;  %v5318_v6 = vmul.f32 %v6309_v33, %v1488_v32  ;;  %v2366_v42 = vand.u32 2147483648, %v5288_v48  ;;  %3792 = vrcp.f32 %v5297_v52  ;;  %v5326_v63 = vmul.f32 %v4137_v27, %v5305_v7 }
 0x178   : > { %v3787_v30 = vpop.eup %3786  ;;  %v5329_v12 = vsel %vm6170_vm3, %v1199_v4, %v1200_v58  ;;  %v5331_v53 = vadd.f32 1.0, %v3783_v5  ;;  %vm2330_vm5 = vweird.f32 %v5284_v43  ;;  %v2334_v22 = vand.u32 2147483647, %v5284_v43 }
 0x179   : > { %3794 = vrcp.f32 %v5302_v13  ;;  %v5338_v55 = vor.u32 1.1754944e-38, %v2336_v31  ;;  %vm2360_vm6 = vweird.f32 %v5288_v48  ;;  %v2364_v27 = vand.u32 2147483647, %v5288_v48 }
 0x17a   : > { %v2396_v11 = vand.u32 2147483648, %v5297_v52  ;;  %3796 = vrcp.f32 %v5311_v18  ;;  %v5346_v20 = vadd.f32 1.0, %v3785_v23  ;;  %v2367_v51 = vor.u32 1.1754944e-38, %v2366_v42 }
 0x17b   : > { %v5336_v46 = vpop.eup %3788  ;;  %v2426_v54 = vand.u32 2147483648, %v5302_v13  ;;  %v5351_v25 = vadd.f32 1.0, %v3787_v30  ;;  %vm2390_vm7 = vweird.f32 %v5297_v52  ;;  %v2394_v57 = vand.u32 2147483647, %v5297_v52 }
 0x17c   : > { %v5344_v59 = vpop.eup %3790  ;;  %v2326_v60 = vmul.f32 %v5336_v46, %v5284_v43  ;;  %v2424_v0 = vand.u32 2147483647, %v5302_v13  ;;  %vm2331_vm8 = vweird.f32 %v5336_v46  ;;  %vm5361_vm9 = vcmp.eq.f32.partialorder %v2334_v22, 8.507059e+37 }
 0x17d   : > { %v2356_v29 = vmul.f32 %v5344_v59, %v5288_v48  ;;  %v5358_v40 = vpop.eup %3792  ;;  %v2454_v4 = vand.u32 2147483647, %v5311_v18  ;;  %3798 = vrcp.f32 %v5331_v53  ;;  %vm5367_vm10 = vcmp.eq.f32.partialorder %v2364_v27, 8.507059e+37  ;;  %vm5400_vm2 = vmor %vm2330_vm5, %vm2331_vm8  ;;  %v1235_v48 = vld [vmem:[#allocation2 + $0xd0] sm:$0xfc] }
 0x17e   : > { %v2327_v9 = vsub.f32 1.0, %v2326_v60  ;;  %v2386_v5 = vmul.f32 %v5358_v40, %v5297_v52  ;;  %v2397_v31 = vor.u32 1.1754944e-38, %v2396_v11  ;;  %vm2420_vm11 = vweird.f32 %v5302_v13 }
 0x17f   : > { %v2357_v58 = vsub.f32 1.0, %v2356_v29  ;;  %v2456_v23 = vand.u32 2147483648, %v5311_v18  ;;  %v3795_v42 = vpop.eup %3794  ;;  %vm2361_vm12 = vweird.f32 %v5344_v59  ;;  %v2427_v22 = vor.u32 1.1754944e-38, %v2426_v54 }
 0x180   : > { %v2328_v30 = vmul.f32 %v5336_v46, %v2327_v9  ;;  %vm2450_vm13 = vweird.f32 %v5311_v18  ;;  %v3797_v27 = vpop.eup %3796  ;;  %v2387_v29 = vsub.f32 1.0, %v2386_v5  ;;  %vm2391_vm14 = vweird.f32 %v5358_v40  ;;  %vm5413_vm3 = vmor %vm2360_vm6, %vm2361_vm12 }
 0x181   : > { %v2358_v60 = vmul.f32 %v5344_v59, %v2357_v58  ;;  %vm5380_vm15 = vcmp.eq.f32.partialorder %v2394_v57, 8.507059e+37  ;;  %v2416_v61 = vmul.f32 %v3795_v42, %v5302_v13  ;;  %vm5385_vm0 = vcmp.eq.f32.partialorder %v2424_v0, 8.507059e+37  ;;  %vm5428_vm6 = vmor %vm2390_vm7, %vm2391_vm14 }
 0x182   : > { %v2329_v54 = vadd.f32 %v5336_v46, %v2328_v30  ;;  %v2446_v9 = vmul.f32 %v3797_v27, %v5311_v18  ;;  %vm5391_vm1 = vcmp.eq.f32.partialorder %v2454_v4, 8.507059e+37  ;;  %v2484_v58 = vand.u32 2147483647, %v5331_v53 }
 0x183   : > { %v2359_v0 = vadd.f32 %v5344_v59, %v2358_v60  ;;  %v2388_v5 = vmul.f32 %v5358_v40, %v2387_v29  ;;  %v2417_v30 = vsub.f32 1.0, %v2416_v61  ;;  %v2457_v15 = vor.u32 1.1754944e-38, %v2456_v23  ;;  %v3799_v4 = vpop.eup %3798 }
 0x184   : > { %v2333_v21 = vsel %vm5400_vm2, %v5336_v46, %v2329_v54  ;;  %vm2421_vm5 = vweird.f32 %v3795_v42  ;;  %v2447_v14 = vsub.f32 1.0, %v2446_v9  ;;  %vm2480_vm8 = vweird.f32 %v5331_v53  ;;  %v1265_v9 = vld [vmem:[#allocation2 + $0xe8] sm:$0x3] }
 0x185   : > { %3800 = vrcp.f32 %v5346_v20  ;;  %v2363_v61 = vsel %vm5413_vm3, %v5344_v59, %v2359_v0  ;;  %v2389_v46 = vadd.f32 %v5358_v40, %v2388_v5  ;;  %v2418_v23 = vmul.f32 %v3795_v42, %v2417_v30  ;;  %vm2422_vm3 = vmor %vm2420_vm11, %vm2421_vm5 }
 0x186   : > { %v2486_v60 = vand.u32 2147483648, %v5331_v53  ;;  %v2448_v29 = vmul.f32 %v3797_v27, %v2447_v14  ;;  %vm2451_vm12 = vweird.f32 %v3797_v27  ;;  %v2476_v54 = vmul.f32 %v3799_v4, %v5331_v53 }
 0x187   : > { %vm5433_vm2 = vcmp.eq.f32.partialorder %v2484_v58, 8.507059e+37  ;;  %v2338_v59 = vsel %vm5361_vm9, %v5338_v55, %v2333_v21  ;;  %v2393_v52 = vsel %vm5428_vm6, %v5358_v40, %v2389_v46  ;;  %v2419_v57 = vadd.f32 %v3795_v42, %v2418_v23  ;;  %vm2452_vm7 = vmor %vm2450_vm13, %vm2451_vm12 }
 0x188   : > { %v2514_v0 = vand.u32 2147483647, %v5346_v20  ;;  %v2368_v14 = vsel %vm5367_vm10, %v2367_v51, %v2363_v61  ;;  %v2449_v58 = vadd.f32 %v3797_v27, %v2448_v29  ;;  %v2477_v5 = vsub.f32 1.0, %v2476_v54  ;;  %v1237_v29 = vld [vmem:[#allocation2 + $0x48] sm:$0x3] }
 0x189   : > { %v2516_v30 = vand.u32 2147483648, %v5346_v20  ;;  %v2423_v32 = vsel %vm2422_vm3, %v3795_v42, %v2419_v57  ;;  %vm2481_vm9 = vweird.f32 %v3799_v4  ;;  %v2487_v21 = vor.u32 1.1754944e-38, %v2486_v60 }
 0x18a   : > { %vm2510_vm14 = vweird.f32 %v5346_v20  ;;  %3802 = vrcp.f32 %v5351_v25  ;;  %v2398_v51 = vsel %vm5380_vm15, %v2397_v31, %v2393_v52  ;;  %v2428_v13 = vsel %vm5385_vm0, %v2427_v22, %v2423_v32  ;;  %vm5476_vm11 = vmor %vm2480_vm8, %vm2481_vm9 }
 0x18b   : > { %v3801_v55 = vpop.eup %3800  ;;  %v2453_v40 = vsel %vm2452_vm7, %v3797_v27, %v2449_v58  ;;  %v2478_v56 = vmul.f32 %v3799_v4, %v2477_v5  ;;  %vm5461_vm10 = vcmp.eq.f32.partialorder %v2514_v0, 8.507059e+37  ;;  %v2517_v61 = vor.u32 1.1754944e-38, %v2516_v30  ;;  %v1263_v58 = vld [vmem:[#allocation2 + $0x130] sm:$0xfc] }
 0x18c   : > { %v2458_v42 = vsel %vm5391_vm1, %v2457_v15, %v2453_v40  ;;  %v2506_v18 = vmul.f32 %v3801_v55, %v5346_v20  ;;  %v2544_v46 = vand.u32 2147483647, %v5351_v25  ;;  %v2546_v31 = vand.u32 2147483648, %v5351_v25 }
 0x18d   : > { %v2479_v23 = vadd.f32 %v3799_v4, %v2478_v56  ;;  %v5468_v62 = vmul.f32 %v2338_v59, %v5222_v35  ;;  %v5471_v22 = vmul.f32 %v2368_v14, %v5224_v36  ;;  %vm2511_vm13 = vweird.f32 %v3801_v55  ;;  %v1261_v59 = vld [vmem:[#allocation2 + $0xa0] sm:$0x3] }
 0x18e   : > { %v2507_v15 = vsub.f32 1.0, %v2506_v18  ;;  %v5481_v27 = vmul.f32 %v2398_v51, %v5227_v45  ;;  %v5484_v11 = vmul.f32 %v2428_v13, %v5229_v24  ;;  %vm2540_vm15 = vweird.f32 %v5351_v25  ;;  %v1259_v45 = vld [vmem:[#allocation2 + $0x118] sm:$0xfc]  ;;  %vm2512_vm5 = vmor %vm2510_vm14, %vm2511_vm13 }
 0x18f   : > { %v2483_v35 = vsel %vm5476_vm11, %v3799_v4, %v2479_v23  ;;  %v2547_v36 = vor.u32 1.1754944e-38, %v2546_v31  ;;  %v5490_v53 = vmul.f32 %v2458_v42, %v5231_v26  ;;  %v2581_v60 = vadd.f32 %v5471_v22, %v5468_v62 }
 0x190   : > { %v3803_v54 = vpop.eup %3802  ;;  %v2488_v24 = vsel %vm5433_vm2, %v2487_v21, %v2483_v35  ;;  %v2508_v52 = vmul.f32 %v3801_v55, %v2507_v15  ;;  %v5498_v4 = vadd.f32 %v5329_v12, %v5326_v63  ;;  %vm5501_vm1 = vcmp.eq.f32.partialorder %v2544_v46, 8.507059e+37  ;;  %v6337_v35 = vld [vmem:[#allocation12_spill] sm:$0xff] }
 0x191   : > { %v2536_v57 = vmul.f32 %v3803_v54, %v5351_v25  ;;  %vm2541_vm0 = vweird.f32 %v3803_v54  ;;  %v5506_v0 = vmul.f32 %v2488_v24, %v5234_v50  ;;  %v2582_v14 = vadd.f32 %v2581_v60, %v5481_v27 }
 0x192   : > { %v2509_v5 = vadd.f32 %v3801_v55, %v2508_v52  ;;  %v3865_v30 = vmov 64.0   ;;  %v1274_v63 = vmul.f32 %v4280_v2, %v1235_v48  ;;  %v1276_v12 = vmul.f32 %v4280_v2, %v1237_v29  ;;  %v6339_v48 = vld [vmem:[#allocation35_spill] sm:$0xff]  ;;  %vm2542_vm8 = vmor %vm2540_vm15, %vm2541_vm0 }
 0x193   : > { %3804 = vrcp.f32 %v3865_v30  ;;  %v2537_v32 = vsub.f32 1.0, %v2536_v57  ;;  %v2583_v21 = vadd.f32 %v2582_v14, %v5484_v11  ;;  %v1298_v50 = vmul.f32 %v4280_v2, %v1259_v45 }
 0x194   : > { %v1300_v51 = vmul.f32 %v4280_v2, %v1261_v59  ;;  %v2513_v13 = vsel %vm2512_vm5, %v3801_v55, %v2509_v5  ;;  %v1302_v40 = vmul.f32 %v4280_v2, %v1263_v58  ;;  %v1304_v56 = vmul.f32 %v4280_v2, %v1265_v9  ;;  %v6341_v2 = vld [vmem:[#allocation34_spill] sm:$0xff]  ;;  %v6344_v59 = vld [vmem:[#allocation45_spill] sm:$0xff] }
 0x195   : > { %v1341_v42 = vrot.slane %v1274_v63, 2  ;;  %v2518_v18 = vsel %vm5461_vm10, %v2517_v61, %v2513_v13  ;;  %v2538_v46 = vmul.f32 %v3803_v54, %v2537_v32  ;;  %v2584_v20 = vadd.f32 %v2583_v21, %v5490_v53 }
 0x196   : > { %v1342_v23 = vrot.slane %v1276_v12, 2  ;;  %v5523_v31 = vmul.f32 %v2518_v18, %v5236_v34  ;;  %v6336_v15 = vrot.slane %v6335_v37, 2  ;;  %v6338_v60 = vrot.slane %v6337_v35, 2  ;;  %v6349_v12 = vld [vmem:[#allocation26_spill] sm:$0xff] }
 0x197   : > { %v6340_v29 = vrot.slane %v6339_v48, 2  ;;  %v6342_v45 = vrot.slane %v6341_v2, 2  ;;  %v6343_v61 = vrot.slane %v4867_v16, 2  ;;  %v6345_v24 = vrot.slane %v6344_v59, 2  ;;  %v6348_v16 = vld [vmem:[#allocation25_spill] sm:$0xff] }
 0x198   : > { %v1349_v55 = vsel %vm1337_vm4, %v6338_v60, %v6336_v15  ;;  %v2539_v34 = vadd.f32 %v3803_v54, %v2538_v46  ;;  %v2585_v57 = vadd.f32 %v2584_v20, %v5506_v0  ;;  %v1343_v14 = vsel %vm1337_vm4, %v1341_v42, %v1342_v23  ;;  %v6351_v60 = vld [vmem:[#allocation33_spill] sm:$0xff]  ;;  %v1492_v59 = vld [vmem:[#allocation2 + $0x88] sm:$0x1] }
 0x199   : > { %v1355_v43 = vsel %vm1337_vm4, %v6342_v45, %v6340_v29  ;;  %v1361_v52 = vsel %vm1337_vm4, %v6345_v24, %v6343_v61  ;;  %v6346_v58 = vrot.slane %v5282_v41, 2  ;;  %v6347_v9 = vrot.slane %v6310_v3, 2  ;;  %v3805_v30 = vpop.eup %3804  ;;  %v6352_v61 = vld [vmem:[#allocation4_spill] sm:$0xff] }
 0x19a   : > { %v1371_v63 = vrot.slane %v6348_v16, 2  ;;  %v1372_v32 = vrot.slane %v6349_v12, 2  ;;  %v1377_v21 = vrot.slane %v1298_v50, 2  ;;  %v1378_v13 = vrot.slane %v1300_v51, 2  ;;  %v6350_v51 = vld [vmem:[#allocation11_spill] sm:$0xff] }
 0x19b   : > { %v1367_v5 = vsel %vm1337_vm4, %v6347_v9, %v6346_v58  ;;  %v2543_v18 = vsel %vm2542_vm8, %v3803_v54, %v2539_v34  ;;  %v2586_v42 = vadd.f32 %v2585_v57, %v5523_v31  ;;  %v2608_v46 = vmul.f32 64.0, %v3805_v30  ;;  %v5561_v54 = vld [vmem:[#allocation2 + $0x90] sm:$0xff]  ;;  %v6355_v9 = vld [vmem:[#allocation46_spill] sm:$0xff] }
 0x19c   : > { %vm2612_vm6 = vweird.f32 %v3805_v30  ;;  %v2548_v41 = vsel %vm5501_vm1, %v2547_v36, %v2543_v18  ;;  %v1373_v3 = vsel %vm1337_vm4, %v1371_v63, %v1372_v32  ;;  %v1379_v20 = vsel %vm1337_vm4, %v1377_v21, %v1378_v13  ;;  %v1494_v16 = vld [vmem:[#allocation2 + $0x118] sm:$0xfe]  ;;  %v1496_v63 = vld [vmem:[#allocation2 + $0xa0] sm:$0x1]  ;;  %v1498_v12 = vld [vmem:[#allocation2 + $0x130] sm:$0xfe] }
 0x19d   : > { %v1383_v25 = vrot.slane %v1302_v40, 2  ;;  %v5558_v23 = vmul.f32 %v2548_v41, %v5241_v39  ;;  %v2609_v37 = vsub.f32 1.0, %v2608_v46  ;;  %v1384_v15 = vrot.slane %v1304_v56, 2  ;;  %v5570_v56 = vld [vmem:[#allocation2 + $0x78] sm:$0xff]  ;;  %v1504_v41 = vld [vmem:[#allocation2 + $0x40] sm:$0x1] }
 0x19e   : > { %v1403_v50 = vadd.f32 %v1343_v14, %v5286_v44  ;;  %v1405_v35 = vadd.f32 %v1349_v55, %v6350_v51  ;;  %v1407_v48 = vadd.f32 %v1355_v43, %v6351_v60  ;;  %v1409_v36 = vadd.f32 %v1361_v52, %v5279_v28  ;;  %v3851_v55 = vld [vmem:[#allocation2 + $0x110] sm:$0xff]  ;;  %v6354_v14 = vld [vmem:[#allocation39_spill] sm:$0xff]  ;;  %v1502_v46 = vld [vmem:[#allocation2 + $0x78] sm:$0xfe] }
 0x19f   : > { %v1411_v26 = vadd.f32 %v1367_v5, %v5291_v47  ;;  %v2587_v29 = vadd.f32 %v2586_v42, %v5558_v23  ;;  %v2610_v40 = vmul.f32 %v3805_v30, %v2609_v37  ;;  %v1385_v39 = vsel %vm1337_vm4, %v1383_v25, %v1384_v15  ;;  %v1490_v47 = vld [vmem:[#allocation2 + $0x90] sm:$0xfe]  ;;  %v1500_v42 = vld [vmem:[#allocation2 + $0xe8] sm:$0x1] }
 0x1a0   : > { %v1413_v2 = vadd.f32 %v1373_v3, %v5293_v19  ;;  %v1415_v44 = vadd.f32 %v1379_v20, %v5295_v10  ;;  %v1417_v45 = vadd.f32 %v1385_v39, %v5498_v4  ;;  %v1448_v43 = vmul.f32 %v3851_v55, %v6352_v61  ;;  %v6353_v4 = vld [vmem:[#allocation19_spill] sm:$0xff]  ;;  %v6358_v39 = vld [vmem:[#allocation14_spill] sm:$0xff] }
 0x1a1   : > { %v1450_v28 = vmul.f32 %v6352_v61, %v5561_v54  ;;  %v2588_v24 = vrot.slane %v2587_v29, 4  ;;  %v2611_v52 = vadd.f32 %v3805_v30, %v2610_v40  ;;  %v1452_v34 = vmul.f32 %v6352_v61, %v5239_v1 }
 0x1a2   : > { %v1454_v19 = vmul.f32 %v6352_v61, %v5305_v7  ;;  %v1456_v10 = vmul.f32 %v6352_v61, %v5570_v56  ;;  %v1458_v57 = vadd.f32 %v6353_v4, %v1403_v50  ;;  %v1460_v58 = vadd.f32 %v6354_v14, %v1405_v35  ;;  %v6363_v61 = vld [vmem:[#allocation36_spill] sm:$0xff] }
 0x1a3   : > { %v1462_v5 = vadd.f32 %v6355_v9, %v1407_v48  ;;  %v2589_v32 = vadd.f32 %v2588_v24, %v2587_v29  ;;  %v5587_v21 = vsel %vm2612_vm6, %v3805_v30, %v2611_v52  ;;  %v1464_v13 = vadd.f32 %v1448_v43, %v1409_v36  ;;  %v6356_v29 = vld [vmem:[#allocation15_spill] sm:$0xff] }
 0x1a4   : > { %v1466_v18 = vadd.f32 %v1450_v28, %v1411_v26  ;;  %v1468_v3 = vadd.f32 %v1452_v34, %v1413_v2  ;;  %v1470_v20 = vadd.f32 %v1454_v19, %v1415_v44  ;;  %v1472_v25 = vadd.f32 %v1456_v10, %v1417_v45  ;;  %v6361_v45 = vld [vmem:[#allocation37_spill] sm:$0xff] }
 0x1a5   : > { %v1529_v37 = vmul.f32 %v6309_v33, %v1490_v47  ;;  %v2590_v15 = vrot.slane %v2589_v32, 2  ;;  %v1531_v50 = vmul.f32 %v6309_v33, %v1492_v59  ;;  %v1533_v51 = vmul.f32 %v6309_v33, %v1494_v16  ;;  %v1669_v16 = vld [vmem:[#allocation2 + $0x110] sm:$0xfc] }
 0x1a6   : > { %v1535_v35 = vmul.f32 %v6309_v33, %v1496_v63  ;;  %v1537_v30 = vmul.f32 %v6309_v33, %v1498_v12  ;;  %v1539_v60 = vmul.f32 %v6309_v33, %v1500_v42  ;;  %v1541_v48 = vmul.f32 %v6309_v33, %v1502_v46 }
 0x1a7   : > { %v1543_v36 = vmul.f32 %v6309_v33, %v1504_v41  ;;  %v2591_v26 = vadd.f32 %v2590_v15, %v2589_v32  ;;  %v6357_v40 = vrot.slane %v6356_v29, 1  ;;  %v6359_v2 = vrot.slane %v6358_v39, 1  ;;  %v1679_v29 = vld [vmem:[#allocation2 + $0xa0] sm:$0x3] }
 0x1a8   : > { %vm6360_vm12 = vcmask 1046528   ;;  %v6362_v55 = vrot.slane %v6361_v45, 1  ;;  %v6364_v43 = vrot.slane %v6363_v61, 1  ;;  %v6366_v47 = vrot.slane %v4895_v17, 1  ;;  %v1685_v45 = vld [vmem:[#allocation2 + $0x78] sm:$0xfc] }
 0x1a9   : > { %v1581_v44 = vsel %vm6360_vm12, %v6359_v2, %v6357_v40  ;;  %vm6365_vm2 = vmmov %vm6360_vm12  ;;  %v6367_v59 = vrot.slane %v4889_v49, 1  ;;  %v1597_v33 = vrot.slane %v5315_v38, 1  ;;  %v1598_v52 = vrot.slane %v5318_v6, 1  ;;  %v1671_v49 = vld [vmem:[#allocation2 + $0x98] sm:$0x3] }
 0x1aa   : > { %v1587_v28 = vsel %vm6365_vm2, %v6364_v43, %v6362_v55  ;;  %vm6368_vm3 = vmmov %vm6365_vm2  ;;  %v1603_v34 = vrot.slane %v1529_v37, 1  ;;  %v1604_v19 = vrot.slane %v1531_v50, 1  ;;  %v2592_v10 = vrot.slane %v2591_v26, 1  ;;  %v1673_v6 = vld [vmem:[#allocation2 + $0x90] sm:$0xfc] }
 0x1ab   : > { %v1593_v24 = vsel %vm6368_vm3, %v6367_v59, %v6366_v47  ;;  %v1609_v4 = vrot.slane %v1533_v51, 1  ;;  %v1610_v14 = vrot.slane %v1535_v35, 1  ;;  %v1615_v9 = vrot.slane %v1537_v30, 1  ;;  %vm6369_vm7 = vmmov %vm6365_vm2  ;;  %v1675_v35 = vld [vmem:[#allocation2 + $0x88] sm:$0x3]  ;;  %v6374_v47 = vld [vmem:[#allocation17_spill] sm:$0xff] }
 0x1ac   : > { %v1599_v63 = vsel %vm6369_vm7, %v1597_v33, %v1598_v52  ;;  %vm6370_vm9 = vmmov %vm6365_vm2  ;;  %v1616_v17 = vrot.slane %v1539_v60, 1  ;;  %v1621_v32 = vrot.slane %v1541_v48, 1  ;;  %v2593_v42 = vadd.f32 %v2592_v10, %v2591_v26  ;;  %v1677_v30 = vld [vmem:[#allocation2 + $0x118] sm:$0xfc]  ;;  %v1681_v26 = vld [vmem:[#allocation2 + $0x130] sm:$0xfc] }
 0x1ad   : > { %v1605_v12 = vsel %vm6370_vm9, %v1603_v34, %v1604_v19  ;;  %vm6371_vm14 = vmmov %vm6365_vm2  ;;  %v1622_v38 = vrot.slane %v1543_v36, 1  ;;  %v1641_v41 = vadd.f32 %v1581_v44, %v1458_v57  ;;  %v1643_v15 = vadd.f32 %v1587_v28, %v1460_v58  ;;  %v1683_v2 = vld [vmem:[#allocation2 + $0xe8] sm:$0x3]  ;;  %v1687_v44 = vld [vmem:[#allocation2 + $0x40] sm:$0x3] }
 0x1ae   : > { %v1611_v46 = vsel %vm6371_vm14, %v1609_v4, %v1610_v14  ;;  %vm6372_vm10 = vmmov %vm6365_vm2  ;;  %v1645_v50 = vadd.f32 %v1593_v24, %v1462_v5  ;;  %v1647_v51 = vadd.f32 %v1599_v63, %v1464_v13  ;;  %v2614_v40 = vmul.f32 %v5587_v21, %v2593_v42  ;;  %v6376_v24 = vld [vmem:[#allocation16_spill] sm:$0xff]  ;;  %v6380_v10 = vld [vmem:[#allocation38_spill] sm:$0xff] }
 0x1af   : > { %v1617_v37 = vsel %vm6372_vm10, %v1615_v9, %v1616_v17  ;;  %vm6373_vm11 = vmmov %vm6365_vm2  ;;  %v1649_v48 = vadd.f32 %v1605_v12, %v1466_v18  ;;  %v1651_v39 = vadd.f32 %v1611_v46, %v1468_v3  ;;  %v1708_v55 = vmul.f32 %v4296_v8, %v1669_v16  ;;  %v6378_v34 = vld [vmem:[#allocation40_spill] sm:$0xff]  ;;  %v6382_v9 = vld [vmem:[#allocation47_spill] sm:$0xff] }
 0x1b0   : > { %v1623_v60 = vsel %vm6373_vm11, %v1621_v32, %v1622_v38  ;;  %v1653_v36 = vadd.f32 %v1617_v37, %v1470_v20  ;;  %v1710_v58 = vmul.f32 %v4296_v8, %v1671_v49  ;;  %v2616_v5 = vpack.c.bf16 %v2614_v40, %v2614_v40  ;;  %v6383_v63 = vld [vmem:[#allocation18_spill] sm:$0xff]  ;;  %vm6384_vm13 = vmmov %vm6365_vm2 }
 0x1b1   : > { %v1655_v57 = vadd.f32 %v1623_v60, %v1472_v25  ;;  %v1712_v13 = vmul.f32 %v4296_v8, %v1673_v6  ;;  %v1714_v61 = vmul.f32 %v4296_v8, %v1675_v35  ;;  %v1716_v43 = vmul.f32 %v4296_v8, %v1677_v30  ;;  %vm6385_vm15 = vmmov %vm6365_vm2 }
 0x1b2   : > { %v1718_v18 = vmul.f32 %v4296_v8, %v1679_v29  ;;  %v1720_v3 = vmul.f32 %v4296_v8, %v1681_v26  ;;  %v1722_v28 = vmul.f32 %v4296_v8, %v1683_v2  ;;  %v1724_v20 = vmul.f32 %v4296_v8, %v1685_v45  ;;  %2755 = vmatmul.bf16.vlgmr.msrb.gmra.mxu2 %v2616_v5  ;;  %vm6386_vm0 = vmmov %vm6365_vm2 }
 0x1b3   : > { %v1726_v25 = vmul.f32 %v4296_v8, %v1687_v44  ;;  %v6375_v59 = vrot.slane %v6374_v47, 2  ;;  %v6377_v33 = vrot.slane %v6376_v24, 2  ;;  %v6379_v19 = vrot.slane %v6378_v34, 2  ;;  %v1898_v47 = vld [vmem:[#allocation2 + $0xf0] sm:$0x1]  ;;  %vm6387_vm1 = vmmov %vm6386_vm0 }
 0x1b4   : > { %v6381_v4 = vrot.slane %v6380_v10, 2  ;;  %v1774_v16 = vrot.slane %v6382_v9, 2  ;;  %v1775_v12 = vrot.slane %v6383_v63, 2  ;;  %v1780_v17 = vrot.slane %v1708_v55, 2  ;;  %v1904_v10 = vld [vmem:[#allocation2 + $0x110] sm:$0xfe]  ;;  %vm6388_vm5 = vmmov %vm6386_vm0 }
 0x1b5   : > { %v1764_v52 = vsel %vm1337_vm4, %v6377_v33, %v6375_v59  ;;  %v1781_v32 = vrot.slane %v1710_v58, 2  ;;  %v1786_v49 = vrot.slane %v1712_v13, 2  ;;  %v1787_v8 = vrot.slane %v1714_v61, 2  ;;  %v3855_v9 = vld [vmem:[#allocation2 + $0xb0] sm:$0xff]  ;;  %vm6389_vm8 = vmmov %vm6386_vm0 }
 0x1b6   : > { %v1770_v14 = vsel %vm1337_vm4, %v6381_v4, %v6379_v19  ;;  %v1792_v42 = vrot.slane %v1716_v43, 2  ;;  %v1793_v46 = vrot.slane %v1718_v18, 2  ;;  %v1798_v38 = vrot.slane %v1720_v3, 2  ;;  %v1841_v43 = vld [vmem:[#allocation2 + $0x108] sm:$0xff]  ;;  %v1845_v3 = vld [vmem:[#allocation2 + $0x110] sm:$0xff]  ;;  %vm6390_vm6 = vmmov %vm6386_vm0 }
 0x1b7   : > { %v1776_v6 = vsel %vm1337_vm4, %v1774_v16, %v1775_v12  ;;  %v1782_v37 = vsel %vm1337_vm4, %v1780_v17, %v1781_v32  ;;  %v1799_v35 = vrot.slane %v1722_v28, 2  ;;  %v1804_v30 = vrot.slane %v1724_v20, 2  ;;  %v1843_v18 = vld [vmem:[#allocation2 + $0xc8] sm:$0xff]  ;;  %v1908_v4 = vld [vmem:[#allocation2 + $0x90] sm:$0xfe]  ;;  %vm6391_vm12 = vmmov %vm6386_vm0 }
 0x1b8   : > { %v1788_v29 = vsel %vm1337_vm4, %v1786_v49, %v1787_v8  ;;  %v1794_v40 = vsel %vm1337_vm4, %v1792_v42, %v1793_v46  ;;  %v1805_v60 = vrot.slane %v1726_v25, 2  ;;  %v1824_v26 = vadd.f32 %v1764_v52, %v1641_v41  ;;  %v3852_v20 = vld [vmem:[%s6130_s3 + $0x6] ss:$8 sm:$0x3]  ;;  %v1906_v32 = vld [vmem:[#allocation2 + $0x98] sm:$0x1] }
 0x1b9   : > { %v1800_v2 = vsel %vm1337_vm4, %v1798_v38, %v1799_v35  ;;  %v1826_v45 = vadd.f32 %v1770_v14, %v1643_v15  ;;  %v1828_v44 = vadd.f32 %v1776_v6, %v1645_v50  ;;  %v1830_v55 = vadd.f32 %v1782_v37, %v1647_v51  ;;  %v1896_v25 = vld [vmem:[#allocation2 + $0x108] sm:$0xfe]  ;;  %v1910_v14 = vld [vmem:[#allocation2 + $0x88] sm:$0x1]  ;;  %v1912_v49 = vld [vmem:[#allocation2 + $0x118] sm:$0xfe] }
 0x1ba   : > { %v1806_v58 = vsel %vm1337_vm4, %v1804_v30, %v1805_v60  ;;  %v1832_v5 = vadd.f32 %v1788_v29, %v1649_v48  ;;  %v1834_v13 = vadd.f32 %v1794_v40, %v1651_v39  ;;  %v1836_v61 = vadd.f32 %v1800_v2, %v1653_v36  ;;  %v3853_v15 = vld [vmem:[%s6130_s3 + $0x7] ss:$8 sm:$0x3]  ;;  %v1902_v48 = vld [vmem:[#allocation2 + $0x20] sm:$0x1] }
 0x1bb   : > { %v5648_v28 = vadd.f32 %v1806_v58, %v1655_v57  ;;  %v1860_v41 = vperm.slane %v3852_v20, 1  ;;  %v1931_v50 = vperm.slane %v3853_v15, 1  ;;  %v1900_v51 = vld [vmem:[#allocation2 + $0xc8] sm:$0xfe]  ;;  %v1914_v8 = vld [vmem:[#allocation2 + $0xa0] sm:$0x1] }
 0x1bc   : > { %v3854_v57 = vld [vmem:[%s6130_s3 + $0x10] ss:$8 sm:$0x3]  ;;  %v1918_v46 = vld [vmem:[#allocation2 + $0xe8] sm:$0x1] }
 0x1bd   : > { %v1864_v39 = vmul.f32 %v1860_v41, %v1841_v43  ;;  %v1866_v36 = vmul.f32 %v1860_v41, %v1843_v18  ;;  %v1868_v59 = vmul.f32 %v1860_v41, %v1845_v3  ;;  %v5659_v24 = vperm.slane %v3854_v57, 1  ;;  %v1920_v38 = vld [vmem:[#allocation2 + $0x78] sm:$0xfe]  ;;  %v1922_v6 = vld [vmem:[#allocation2 + $0x40] sm:$0x1] }
 0x1be   : > { %v1870_v33 = vmul.f32 %v1860_v41, %v5561_v54  ;;  %v1872_v52 = vmul.f32 %v1860_v41, %v5239_v1  ;;  %v1874_v34 = vmul.f32 %v1860_v41, %v5305_v7  ;;  %v1876_v19 = vmul.f32 %v1860_v41, %v5570_v56  ;;  %v1916_v56 = vld [vmem:[#allocation2 + $0x130] sm:$0xfe]  ;;  %v1924_v37 = vld [vmem:[#allocation2] sm:$0xfe]  ;;  %v1926_v35 = vld [vmem:[#allocation2 + $0x60] sm:$0x1] }
 0x1bf   : > { %v1878_v16 = vmul.f32 %v3855_v9, %v1860_v41  ;;  %v1880_v63 = vadd.f32 %v1864_v39, %v1824_v26  ;;  %v5665_v12 = vadd.f32 %v1866_v36, %v1826_v45  ;;  %v5667_v17 = vadd.f32 %v1868_v59, %v1828_v44 }
 0x1c0   : > { %v1886_v54 = vadd.f32 %v1870_v33, %v1830_v55  ;;  %v5669_v42 = vadd.f32 %v1872_v52, %v1832_v5  ;;  %v5671_v1 = vadd.f32 %v1874_v34, %v1834_v13  ;;  %v5673_v7 = vadd.f32 %v1876_v19, %v1836_v61 }
 0x1c1   : > { %v1935_v30 = vmul.f32 %v1931_v50, %v1896_v25  ;;  %v1937_v29 = vmul.f32 %v1931_v50, %v1898_v47  ;;  %v1939_v40 = vmul.f32 %v1931_v50, %v1900_v51  ;;  %v1941_v60 = vmul.f32 %v1931_v50, %v1902_v48 }
 0x1c2   : > { %v1943_v26 = vmul.f32 %v1931_v50, %v1904_v10  ;;  %v1945_v2 = vmul.f32 %v1931_v50, %v1906_v32  ;;  %v1947_v45 = vmul.f32 %v1931_v50, %v1908_v4  ;;  %v1949_v44 = vmul.f32 %v1931_v50, %v1910_v14  ;;  %v2079_v10 = vld [vmem:[#allocation2 + $0x108] sm:$0xfc] }
 0x1c3   : > { %v1951_v55 = vmul.f32 %v1931_v50, %v1912_v49  ;;  %v1953_v58 = vmul.f32 %v1931_v50, %v1914_v8  ;;  %v1955_v5 = vmul.f32 %v1931_v50, %v1916_v56  ;;  %v1957_v13 = vmul.f32 %v1931_v50, %v1918_v46  ;;  %v2081_v49 = vld [vmem:[#allocation2 + $0xf0] sm:$0x3]  ;;  %v2091_v8 = vld [vmem:[#allocation2 + $0x90] sm:$0xfc] }
 0x1c4   : > { %v1959_v61 = vmul.f32 %v1931_v50, %v1920_v38  ;;  %v1961_v43 = vmul.f32 %v1931_v50, %v1922_v6  ;;  %v1963_v18 = vmul.f32 %v1931_v50, %v1924_v37  ;;  %v1965_v3 = vmul.f32 %v1931_v50, %v1926_v35  ;;  %v2083_v6 = vld [vmem:[#allocation2 + $0xc8] sm:$0xfc]  ;;  %v2085_v37 = vld [vmem:[#allocation2 + $0x20] sm:$0x3]  ;;  %v2095_v35 = vld [vmem:[#allocation2 + $0x118] sm:$0xfc] }
 0x1c5   : > { %v2001_v20 = vrot.slane %v1935_v30, 1  ;;  %v2002_v41 = vrot.slane %v1937_v29, 1  ;;  %v2007_v15 = vrot.slane %v1939_v40, 1  ;;  %v2008_v39 = vrot.slane %v1941_v60, 1 }
 0x1c6   : > { %v2013_v25 = vrot.slane %v1943_v26, 1  ;;  %v2014_v47 = vrot.slane %v1945_v2, 1  ;;  %v2019_v51 = vrot.slane %v1947_v45, 1  ;;  %v2020_v48 = vrot.slane %v1949_v44, 1  ;;  %v2087_v26 = vld [vmem:[#allocation2 + $0x110] sm:$0xfc] }
 0x1c7   : > { %v5676_v36 = vadd.f32 %v1878_v16, %v5648_v28  ;;  %v2003_v59 = vsel %vm6384_vm13, %v2001_v20, %v2002_v41  ;;  %v2025_v57 = vrot.slane %v1951_v55, 1  ;;  %v2026_v33 = vrot.slane %v1953_v58, 1  ;;  %v2093_v28 = vld [vmem:[#allocation2 + $0x88] sm:$0x3]  ;;  %v2089_v2 = vld [vmem:[#allocation2 + $0x98] sm:$0x3] }
 0x1c8   : > { %v2009_v52 = vsel %vm6385_vm15, %v2007_v15, %v2008_v39  ;;  %v2015_v34 = vsel %vm6386_vm0, %v2013_v25, %v2014_v47  ;;  %v2031_v50 = vrot.slane %v1955_v5, 1  ;;  %v2032_v19 = vrot.slane %v1957_v13, 1  ;;  %v2097_v45 = vld [vmem:[#allocation2 + $0xa0] sm:$0x3]  ;;  %v2099_v5 = vld [vmem:[#allocation2 + $0x130] sm:$0xfc] }
 0x1c9   : > { %v2021_v4 = vsel %vm6387_vm1, %v2019_v51, %v2020_v48  ;;  %v2037_v14 = vrot.slane %v1959_v61, 1  ;;  %v2038_v9 = vrot.slane %v1961_v43, 1  ;;  %v2043_v32 = vrot.slane %v1963_v18, 1  ;;  %v2101_v13 = vld [vmem:[#allocation2 + $0xe8] sm:$0x3] }
 0x1ca   : > { %v2027_v16 = vsel %vm6388_vm5, %v2025_v57, %v2026_v33  ;;  %v2033_v56 = vsel %vm6389_vm8, %v2031_v50, %v2032_v19  ;;  %v2044_v46 = vrot.slane %v1965_v3, 1  ;;  %v2063_v38 = vadd.f32 %v2003_v59, %v1880_v63  ;;  %v2103_v61 = vld [vmem:[#allocation2 + $0x78] sm:$0xfc]  ;;  %v2105_v43 = vld [vmem:[#allocation2 + $0x40] sm:$0x3] }
 0x1cb   : > { %v2039_v30 = vsel %vm6390_vm6, %v2037_v14, %v2038_v9  ;;  %v2065_v29 = vadd.f32 %v2009_v52, %v5665_v12  ;;  %v2067_v40 = vadd.f32 %v2015_v34, %v5667_v17  ;;  %v2069_v60 = vadd.f32 %v2021_v4, %v1886_v54  ;;  %v2107_v18 = vld [vmem:[#allocation2] sm:$0xfc]  ;;  %v2109_v12 = vld [vmem:[#allocation2 + $0x60] sm:$0x3] }
 0x1cc   : > { %v2045_v44 = vsel %vm6391_vm12, %v2043_v32, %v2044_v46  ;;  %v2071_v55 = vadd.f32 %v2027_v16, %v5669_v42  ;;  %v2073_v58 = vadd.f32 %v2033_v56, %v5671_v1  ;;  %v2075_v63 = vadd.f32 %v2039_v30, %v5673_v7 }
 0x1cd   : > { %v2118_v17 = vmul.f32 %v5659_v24, %v2079_v10  ;;  %v2120_v54 = vmul.f32 %v5659_v24, %v2081_v49  ;;  %v2122_v3 = vmul.f32 %v5659_v24, %v2083_v6  ;;  %v2124_v20 = vmul.f32 %v5659_v24, %v2085_v37 }
 0x1ce   : > { %v2126_v42 = vmul.f32 %v5659_v24, %v2087_v26  ;;  %v2128_v1 = vmul.f32 %v5659_v24, %v2089_v2  ;;  %v2130_v7 = vmul.f32 %v5659_v24, %v2091_v8  ;;  %v2132_v41 = vmul.f32 %v5659_v24, %v2093_v28 }
 0x1cf   : > { %v2134_v15 = vmul.f32 %v5659_v24, %v2095_v35  ;;  %v2136_v39 = vmul.f32 %v5659_v24, %v2097_v45  ;;  %v2138_v25 = vmul.f32 %v5659_v24, %v2099_v5  ;;  %v2140_v47 = vmul.f32 %v5659_v24, %v2101_v13 }
 0x1d0   : > { %v2142_v51 = vmul.f32 %v5659_v24, %v2103_v61  ;;  %v2144_v48 = vmul.f32 %v5659_v24, %v2105_v43  ;;  %v2146_v59 = vmul.f32 %v5659_v24, %v2107_v18  ;;  %v2148_v57 = vmul.f32 %v5659_v24, %v2109_v12 }
 0x1d1   : > { %v2184_v33 = vrot.slane %v2118_v17, 2  ;;  %v2185_v52 = vrot.slane %v2120_v54, 2  ;;  %v2190_v34 = vrot.slane %v2122_v3, 2  ;;  %v2191_v50 = vrot.slane %v2124_v20, 2 }
 0x1d2   : > { %v2196_v19 = vrot.slane %v2126_v42, 2  ;;  %v2197_v10 = vrot.slane %v2128_v1, 2  ;;  %v2202_v4 = vrot.slane %v2130_v7, 2  ;;  %v2203_v14 = vrot.slane %v2132_v41, 2 }
 0x1d3   : > { %v2077_v9 = vadd.f32 %v2045_v44, %v5676_v36  ;;  %v2186_v32 = vsel %vm1337_vm4, %v2184_v33, %v2185_v52  ;;  %v2208_v49 = vrot.slane %v2134_v15, 2  ;;  %v2209_v8 = vrot.slane %v2136_v39, 2 }
 0x1d4   : > { %v2192_v28 = vsel %vm1337_vm4, %v2190_v34, %v2191_v50  ;;  %v2198_v16 = vsel %vm1337_vm4, %v2196_v19, %v2197_v10  ;;  %v2214_v56 = vrot.slane %v2138_v25, 2  ;;  %v2215_v24 = vrot.slane %v2140_v47, 2 }
 0x1d5   : > { %v2204_v46 = vsel %vm1337_vm4, %v2202_v4, %v2203_v14  ;;  %v2220_v6 = vrot.slane %v2142_v51, 2  ;;  %v2221_v37 = vrot.slane %v2144_v48, 2  ;;  %v2226_v35 = vrot.slane %v2146_v59, 2 }
 0x1d6   : > { %v2210_v30 = vsel %vm1337_vm4, %v2208_v49, %v2209_v8  ;;  %v2227_v26 = vrot.slane %v2148_v57, 2  ;;  %v5713_v2 = vadd.f32 %v2186_v32, %v2063_v38  ;;  %v5715_v36 = vadd.f32 %v2192_v28, %v2065_v29 }
 0x1d7   : > { %v2216_v45 = vsel %vm1337_vm4, %v2214_v56, %v2215_v24  ;;  %v5718_v44 = vadd.f32 %v2198_v16, %v2067_v40  ;;  %v5720_v5 = vadd.f32 %v2204_v46, %v2069_v60  ;;  %v5722_v13 = vadd.f32 %v2210_v30, %v2071_v55 }
 0x1d8   : > { %v2222_v61 = vsel %vm1337_vm4, %v2220_v6, %v2221_v37  ;;  %v2228_v43 = vsel %vm1337_vm4, %v2226_v35, %v2227_v26  ;;  %v5726_v18 = vadd.f32 %v2216_v45, %v2073_v58  ;;  %v3378_v12 = vmul.f32 -1.442695, %v5713_v2 }
 0x1d9   : > { %v5729_v38 = vadd.f32 %v2222_v61, %v2075_v63  ;;  %v3380_v29 = vmul.f32 -1.442695, %v5715_v36  ;;  %v3382_v17 = vmul.f32 -1.442695, %v5718_v44  ;;  %v3384_v40 = vmul.f32 -1.442695, %v5720_v5 }
 0x1da   : > { %v5734_v60 = vadd.f32 %v2228_v43, %v2077_v9  ;;  %3806 = vpow2.f32 %v3378_v12  ;;  %v3386_v55 = vmul.f32 -1.442695, %v5722_v13  ;;  %v3388_v54 = vmul.f32 -1.442695, %v5726_v18 }
 0x1db   : > { %3808 = vpow2.f32 %v3380_v29  ;;  %v3390_v58 = vmul.f32 -1.442695, %v5729_v38 }
 0x1dc   : > { %3810 = vpow2.f32 %v3382_v17  ;;  %v3392_v63 = vmul.f32 -1.442695, %v5734_v60 }
 0x1dd   : > { %3812 = vpow2.f32 %v3384_v40 }
 0x1de   : > { %3814 = vpow2.f32 %v3386_v55 }
 0x1df   : > { %3816 = vpow2.f32 %v3388_v54 }
 0x1e0   : > { %v3807_v3 = vpop.eup %3806  ;;  %3818 = vpow2.f32 %v3390_v58 }
 0x1e1   : > { %v3809_v20 = vpop.eup %3808  ;;  %v5740_v42 = vadd.f32 1.0, %v3807_v3  ;;  %3820 = vpow2.f32 %v3392_v63 }
 0x1e2   : > { %v3811_v1 = vpop.eup %3810  ;;  %v5742_v7 = vadd.f32 1.0, %v3809_v20 }
 0x1e3   : > { %v3813_v41 = vpop.eup %3812  ;;  %v5744_v15 = vadd.f32 1.0, %v3811_v1  ;;  %3822 = vrcp.f32 %v5740_v42  ;;  %v2351_v48 = vand.u32 2147483648, %v5740_v42  ;;  %vm2345_vm4 = vweird.f32 %v5740_v42 }
 0x1e4   : > { %v3815_v39 = vpop.eup %3814  ;;  %v5747_v25 = vadd.f32 1.0, %v3813_v41  ;;  %3824 = vrcp.f32 %v5742_v7  ;;  %v2381_v52 = vand.u32 2147483648, %v5742_v7  ;;  %v2349_v50 = vand.u32 2147483647, %v5740_v42 }
 0x1e5   : > { %v3817_v47 = vpop.eup %3816  ;;  %v5750_v51 = vadd.f32 1.0, %v3815_v39  ;;  %3826 = vrcp.f32 %v5744_v15  ;;  %v5767_v4 = vor.u32 1.1754944e-38, %v2351_v48  ;;  %vm2375_vm2 = vweird.f32 %v5742_v7 }
 0x1e6   : > { %v3819_v59 = vpop.eup %3818  ;;  %v5754_v33 = vadd.f32 1.0, %v3817_v47  ;;  %3828 = vrcp.f32 %v5747_v25  ;;  %v2379_v14 = vand.u32 2147483647, %v5742_v7  ;;  %vm2405_vm3 = vweird.f32 %v5744_v15 }
 0x1e7   : > { %v3821_v57 = vpop.eup %3820  ;;  %3830 = vrcp.f32 %v5750_v51  ;;  %v2409_v32 = vand.u32 2147483647, %v5744_v15  ;;  %v2411_v49 = vand.u32 2147483648, %v5744_v15  ;;  %v5778_v28 = vadd.f32 1.0, %v3819_v59 }
 0x1e8   : > { %v2382_v56 = vor.u32 1.1754944e-38, %v2381_v52  ;;  %3832 = vrcp.f32 %v5754_v33  ;;  %v5781_v24 = vadd.f32 1.0, %v3821_v57  ;;  %vm2435_vm7 = vweird.f32 %v5747_v25 }
 0x1e9   : > { %v5758_v34 = vpop.eup %3822  ;;  %vm5788_vm14 = vcmp.eq.f32.partialorder %v2349_v50, 8.507059e+37  ;;  %vm5792_vm10 = vcmp.eq.f32.partialorder %v2379_v14, 8.507059e+37  ;;  %v2439_v45 = vand.u32 2147483647, %v5747_v25  ;;  %v2441_v61 = vand.u32 2147483648, %v5747_v25 }
 0x1ea   : > { %v5763_v19 = vpop.eup %3824  ;;  %v2341_v10 = vmul.f32 %v5758_v34, %v5740_v42  ;;  %vm2346_vm9 = vweird.f32 %v5758_v34  ;;  %vm5799_vm11 = vcmp.eq.f32.partialorder %v2409_v32, 8.507059e+37  ;;  %v2412_v40 = vor.u32 1.1754944e-38, %v2411_v49 }
 0x1eb   : > { %v2371_v9 = vmul.f32 %v5763_v19, %v5742_v7  ;;  %v5776_v8 = vpop.eup %3826  ;;  %vm2376_vm13 = vweird.f32 %v5763_v19  ;;  %vm2465_vm15 = vweird.f32 %v5750_v51  ;;  %vm5815_vm1 = vmor %vm2345_vm4, %vm2346_vm9  ;;  %vm5819_vm5 = vcmp.eq.f32.partialorder %v2439_v45, 8.507059e+37 }
 0x1ec   : > { %v2342_v16 = vsub.f32 1.0, %v2341_v10  ;;  %v2401_v6 = vmul.f32 %v5776_v8, %v5744_v15  ;;  %v3829_v37 = vpop.eup %3828  ;;  %vm2406_vm0 = vweird.f32 %v5776_v8  ;;  %v2469_v48 = vand.u32 2147483647, %v5750_v51  ;;  %vm5827_vm8 = vmor %vm2375_vm2, %vm2376_vm13 }
 0x1ed   : > { %v2372_v46 = vsub.f32 1.0, %v2371_v9  ;;  %v3831_v43 = vpop.eup %3830  ;;  %v2431_v55 = vmul.f32 %v3829_v37, %v5747_v25  ;;  %3834 = vrcp.f32 %v5778_v28  ;;  %vm2436_vm6 = vweird.f32 %v3829_v37  ;;  %vm5842_vm4 = vmor %vm2405_vm3, %vm2406_vm0 }
 0x1ee   : > { %v2343_v35 = vmul.f32 %v5758_v34, %v2342_v16  ;;  %v2402_v29 = vsub.f32 1.0, %v2401_v6  ;;  %v2461_v58 = vmul.f32 %v3831_v43, %v5750_v51  ;;  %v3833_v1 = vpop.eup %3832  ;;  %vm2466_vm12 = vweird.f32 %v3831_v43  ;;  %vm5853_vm2 = vmor %vm2435_vm7, %vm2436_vm6 }
 0x1ef   : > { %v2373_v12 = vmul.f32 %v5763_v19, %v2372_v46  ;;  %v2432_v20 = vsub.f32 1.0, %v2431_v55  ;;  %v2491_v14 = vmul.f32 %v3833_v1, %v5754_v33  ;;  %v2442_v32 = vor.u32 1.1754944e-38, %v2441_v61  ;;  %vm5872_vm7 = vmor %vm2465_vm15, %vm2466_vm12 }
 0x1f0   : > { %v2344_v54 = vadd.f32 %v5758_v34, %v2343_v35  ;;  %v2403_v3 = vmul.f32 %v5776_v8, %v2402_v29  ;;  %v2462_v47 = vsub.f32 1.0, %v2461_v58  ;;  %v2471_v49 = vand.u32 2147483648, %v5750_v51 }
 0x1f1   : > { %v2374_v63 = vadd.f32 %v5763_v19, %v2373_v12  ;;  %v2433_v57 = vmul.f32 %v3829_v37, %v2432_v20  ;;  %vm5857_vm3 = vcmp.eq.f32.partialorder %v2469_v48, 8.507059e+37  ;;  %v2492_v46 = vsub.f32 1.0, %v2491_v14 }
 0x1f2   : > { %v2404_v42 = vadd.f32 %v5776_v8, %v2403_v3  ;;  %v2348_v52 = vsel %vm5815_vm1, %v5758_v34, %v2344_v54  ;;  %v2463_v10 = vmul.f32 %v3831_v43, %v2462_v47  ;;  %vm2495_vm9 = vweird.f32 %v5754_v33 }
 0x1f3   : > { %v2378_v50 = vsel %vm5827_vm8, %v5763_v19, %v2374_v63  ;;  %v2434_v34 = vadd.f32 %v3829_v37, %v2433_v57  ;;  %3836 = vrcp.f32 %v5781_v24  ;;  %v3835_v45 = vpop.eup %3834  ;;  %v2472_v26 = vor.u32 1.1754944e-38, %v2471_v49 }
 0x1f4   : > { %v2408_v9 = vsel %vm5842_vm4, %v5776_v8, %v2404_v42  ;;  %v2464_v15 = vadd.f32 %v3831_v43, %v2463_v10  ;;  %v2353_v8 = vsel %vm5788_vm14, %v5767_v4, %v2348_v52  ;;  %v2383_v6 = vsel %vm5792_vm10, %v2382_v56, %v2378_v50 }
 0x1f5   : > { %v2438_v25 = vsel %vm5853_vm2, %v3829_v37, %v2434_v34  ;;  %v2413_v30 = vsel %vm5799_vm11, %v2412_v40, %v2408_v9  ;;  %v2493_v56 = vmul.f32 %v3833_v1, %v2492_v46  ;;  %vm2496_vm14 = vweird.f32 %v3833_v1  ;;  %v3638_v40 = vld [vmem:[%s6133_s6 + $0x64] sm:$0xf] }
 0x1f6   : > { %v2468_v4 = vsel %vm5872_vm7, %v3831_v43, %v2464_v15  ;;  %v2443_v37 = vsel %vm5819_vm5, %v2442_v32, %v2438_v25  ;;  %v2501_v51 = vand.u32 2147483648, %v5754_v33  ;;  %v2521_v61 = vmul.f32 %v3835_v45, %v5778_v28  ;;  %vm5896_vm10 = vmor %vm2495_vm9, %vm2496_vm14 }
 0x1f7   : > { %v2494_v12 = vadd.f32 %v3833_v1, %v2493_v56  ;;  %v2499_v29 = vand.u32 2147483647, %v5754_v33  ;;  %v5887_v55 = vmul.f32 %v2353_v8, %v5713_v2  ;;  %v5890_v17 = vmul.f32 %v2383_v6, %v5715_v36 }
 0x1f8   : > { %v2473_v43 = vsel %vm5857_vm3, %v2472_v26, %v2468_v4  ;;  %v2522_v54 = vsub.f32 1.0, %v2521_v61  ;;  %v2529_v58 = vand.u32 2147483647, %v5778_v28  ;;  %v5902_v63 = vmul.f32 %v2413_v30, %v5718_v44  ;;  %v3640_v26 = vld [vmem:[%s6133_s6 + $0x74] sm:$0xf] }
 0x1f9   : > { %v2498_v2 = vsel %vm5896_vm10, %v3833_v1, %v2494_v12  ;;  %v2531_v36 = vand.u32 2147483648, %v5778_v28  ;;  %v5908_v3 = vmul.f32 %v2443_v37, %v5720_v5  ;;  %v2594_v33 = vadd.f32 %v5890_v17, %v5887_v55  ;;  %v3837_v20 = vpop.eup %3836  ;;  %v3516_v37 = vld [vmem:[%s6133_s6 + $0x70] sm:$0xf]  ;;  %v2650_v12 = vld [vmem:[%s6132_s5] sm:$0x1] }
 0x1fa   : > { %v2502_v41 = vor.u32 1.1754944e-38, %v2501_v51  ;;  %v2523_v39 = vmul.f32 %v3835_v45, %v2522_v54  ;;  %vm2526_vm11 = vweird.f32 %v3835_v45  ;;  %vm2500_vm13 = vcmp.eq.f32.partialorder %v2499_v29, 8.507059e+37  ;;  %v3508_v29 = vld [vmem:[%s6133_s6 + $0x60] sm:$0xf] }
 0x1fb   : > { %v2551_v47 = vmul.f32 %v3837_v20, %v5781_v24  ;;  %v5914_v44 = vmul.f32 %v2473_v43, %v5722_v13  ;;  %v2595_v1 = vadd.f32 %v2594_v33, %v5902_v63  ;;  %vm2525_vm15 = vweird.f32 %v5778_v28  ;;  %v3639_v43 = vld [vmem:[%s6133_s6 + $0x64] sm:$0xf0]  ;;  %v3500_v33 = vld [vmem:[%s6133_s6 + $0x50] sm:$0xf] }
 0x1fc   : > { %v2503_v48 = vsel %vm2500_vm13, %v2502_v41, %v2498_v2  ;;  %v2524_v59 = vadd.f32 %v3835_v45, %v2523_v39  ;;  %vm2527_vm0 = vmor %vm2525_vm15, %vm2526_vm11  ;;  %vm2530_vm1 = vcmp.eq.f32.partialorder %v2529_v58, 8.507059e+37  ;;  %v2532_v5 = vor.u32 1.1754944e-38, %v2531_v36  ;;  %v3510_v58 = vld [vmem:[%s6133_s6 + $0x68] sm:$0xf0]  ;;  %v3636_v41 = vld [vmem:[%s6133_s6 + $0x54] sm:$0xf] }
 0x1fd   : > { %v2552_v42 = vsub.f32 1.0, %v2551_v47  ;;  %v2596_v57 = vadd.f32 %v2595_v1, %v5908_v3  ;;  %vm2556_vm5 = vweird.f32 %v3837_v20  ;;  %v2559_v50 = vand.u32 2147483647, %v5781_v24  ;;  %v3502_v1 = vld [vmem:[%s6133_s6 + $0x58] sm:$0xf0] }
 0x1fe   : > { %v2528_v52 = vsel %vm2527_vm0, %v3835_v45, %v2524_v59  ;;  %v2561_v7 = vand.u32 2147483648, %v5781_v24  ;;  %v5922_v14 = vmul.f32 %v2503_v48, %v5726_v18  ;;  %vm2555_vm8 = vweird.f32 %v5781_v24 }
 0x1ff   : > { %v2533_v13 = vsel %vm2530_vm1, %v2532_v5, %v2528_v52  ;;  %v2553_v10 = vmul.f32 %v3837_v20, %v2552_v42  ;;  %v2597_v9 = vadd.f32 %v2596_v57, %v5914_v44  ;;  %vm2557_vm6 = vmor %vm2555_vm8, %vm2556_vm5  ;;  %vm2560_vm12 = vcmp.eq.f32.partialorder %v2559_v50, 8.507059e+37  ;;  %v3492_v5 = vld [vmem:[%s6133_s6 + $0x40] sm:$0xf]  ;;  %v3635_v42 = vld [vmem:[%s6133_s6 + $0x44] sm:$0xf0] }
 0x200   : > { %v5927_v34 = vmul.f32 %v2533_v13, %v5729_v38  ;;  %v2562_v49 = vor.u32 1.1754944e-38, %v2561_v7  ;;  %v3509_v54 = vor.u32 %v3639_v43, %v3508_v29  ;;  %v3513_v36 = vor.u32 %v3638_v40, %v3510_v58  ;;  %v3634_v57 = vld [vmem:[%s6133_s6 + $0x44] sm:$0xf]  ;;  %v3494_v50 = vld [vmem:[%s6133_s6 + $0x48] sm:$0xf0] }
 0x201   : > { %v2554_v28 = vadd.f32 %v3837_v20, %v2553_v10  ;;  %v2598_v32 = vadd.f32 %v2597_v9, %v5922_v14  ;;  %v3505_v59 = vor.u32 %v3636_v41, %v3502_v1  ;;  %v3493_v52 = vor.u32 %v3635_v42, %v3492_v5  ;;  %v3484_v10 = vld [vmem:[%s6133_s6 + $0x30] sm:$0xf]  ;;  %v3633_v9 = vld [vmem:[%s6133_s6 + $0x34] sm:$0xf0] }
 0x202   : > { %v3497_v13 = vor.u32 %v3634_v57, %v3494_v50  ;;  %v3649_v5 = vld [vmem:[%s6135_s8 + $0x38] sm:$0xff]  ;;  %v3656_v50 = vld [vmem:[%s6135_s8 + $0x70] sm:$0xff] }
 0x203   : > { %v2558_v19 = vsel %vm2557_vm6, %v3837_v20, %v2554_v28  ;;  %v2599_v15 = vadd.f32 %v2598_v32, %v5927_v34  ;;  %v3637_v20 = vld [vmem:[%s6133_s6 + $0x54] sm:$0xf0]  ;;  %v3632_v28 = vld [vmem:[%s6133_s6 + $0x34] sm:$0xf]  ;;  %v3486_v32 = vld [vmem:[%s6133_s6 + $0x38] sm:$0xf0]  ;;  %3118 = vmatpush.bf16.msrb.mxu0 %v3649_v5 }
 0x204   : > { %v2563_v16 = vsel %vm2560_vm12, %v2562_v49, %v2558_v19  ;;  %v3501_v47 = vor.u32 %v3637_v20, %v3500_v33  ;;  %v3485_v49 = vor.u32 %v3633_v9, %v3484_v10  ;;  %v3489_v19 = vor.u32 %v3632_v28, %v3486_v32  ;;  %v3657_v42 = vld [vmem:[%s6135_s8 + $0x78] sm:$0xff]  ;;  %v3647_v10 = vld [vmem:[%s6135_s8 + $0x28] sm:$0xff] }
 0x205   : > { %v5932_v18 = vmul.f32 %v2563_v16, %v5734_v60  ;;  %v3641_v60 = vld [vmem:[%s6133_s6 + $0x74] sm:$0xf0]  ;;  %v3631_v16 = vld [vmem:[%s6133_s6 + $0x24] sm:$0xf0]  ;;  %3147 = vmatpush.bf16.msrb.mxu1 %v3657_v42 }
 0x206   : > { %v3517_v51 = vor.u32 %v3641_v60, %v3516_v37  ;;  %v3655_v9 = vld [vmem:[%s6135_s8 + $0x68] sm:$0xff] }
 0x207   : > { %v2600_v46 = vadd.f32 %v2599_v15, %v5932_v18  ;;  %v3476_v15 = vld [vmem:[%s6133_s6 + $0x20] sm:$0xf] }
 0x208   : > { %2896 = vmatpush.bf16.msra.mxu2 %v3517_v51  ;;  %v3627_v51 = vld [vmem:[%s6133_s6 + $0x4] sm:$0xf0] }
 0x209   : > { %v2601_v8 = vrot.slane %v2600_v46, 4  ;;  %3148 = vmatpush.bf16.msrb.mxu1 %v3656_v50 }
 0x20b   : > { %v2602_v6 = vadd.f32 %v2601_v8, %v2600_v46  ;;  %v3630_v8 = vld [vmem:[%s6133_s6 + $0x24] sm:$0xf] }
 0x20c   : > { %2897 = vmatpush.bf16.msra.mxu2 %v3509_v54 }
 0x20d   : > { %v2603_v24 = vrot.slane %v2602_v6, 2  ;;  %3149 = vmatpush.bf16.msrb.mxu1 %v3655_v9 }
 0x20f   : > { %v2604_v25 = vadd.f32 %v2603_v24, %v2602_v6  ;;  %v3478_v6 = vld [vmem:[%s6133_s6 + $0x28] sm:$0xf0]  ;;  %v3477_v24 = vor.u32 %v3631_v16, %v3476_v15  ;;  %v3646_v15 = vld [vmem:[%s6135_s8 + $0x20] sm:$0xff] }
 0x210   : > { %2898 = vmatpush.bf16.msra.mxu2 %v3501_v47  ;;  %v3654_v16 = vld [vmem:[%s6135_s8 + $0x60] sm:$0xff] }
 0x211   : > { %v2605_v38 = vrot.slane %v2604_v25, 1  ;;  %3150 = vmatpush.bf16.msrb.mxu1 %v3654_v16 }
 0x213   : > { %v2606_v35 = vadd.f32 %v2605_v38, %v2604_v25  ;;  %v3481_v38 = vor.u32 %v3630_v8, %v3478_v6  ;;  %v3645_v6 = vld [vmem:[%s6135_s8 + $0x18] sm:$0xff] }
 0x214   : > { %2899 = vmatpush.bf16.msra.mxu2 %v3493_v52 }
 0x215   : > { %v2615_v45 = vmul.f32 %v5587_v21, %v2606_v35  ;;  %v3518_v21 = vld [vmem:[%s6133_s6 + $0x78] sm:$0xf0]  ;;  %v3468_v35 = vld [vmem:[%s6133_s6 + $0x10] sm:$0xf] }
 0x216   : > { %v3521_v61 = vor.u32 %v3640_v26, %v3518_v21  ;;  %v3460_v26 = vld [vmem:[%s6133_s6] sm:$0xf]  ;;  %v3626_v21 = vld [vmem:[%s6133_s6 + $0x4] sm:$0xf] }
 0x217   : > { %v2617_v30 = vpack.c.bf16 %v2615_v45, %v2615_v45  ;;  %v3629_v45 = vld [vmem:[%s6133_s6 + $0x14] sm:$0xf0] }
 0x218   : > { %2909 = vmatpush.bf16.msra.mxu3 %v3521_v61  ;;  %2900 = vmatpush.bf16.msra.mxu2 %v3485_v49  ;;  %v3469_v37 = vor.u32 %v3629_v45, %v3468_v35  ;;  %v3462_v61 = vld [vmem:[%s6133_s6 + $0x8] sm:$0xf0]  ;;  %v3644_v45 = vld [vmem:[%s6135_s8 + $0x10] sm:$0xff] }
 0x219   : > { %2768 = vmatmul.bf16.vlgmr.msrb.gmra.mxu3 %v2617_v30  ;;  %v3465_v29 = vor.u32 %v3626_v21, %v3462_v61 }
 0x21c   : > { %2910 = vmatpush.bf16.msra.mxu3 %v3513_v36  ;;  %2901 = vmatpush.bf16.msra.mxu2 %v3477_v24  ;;  %v3653_v24 = vld [vmem:[%s6135_s8 + $0x58] sm:$0xff] }
 0x21d   : > { %3151 = vmatpush.bf16.msrb.mxu1 %v3653_v24 }
 0x220   : > { %2911 = vmatpush.bf16.msra.mxu3 %v3505_v59  ;;  %2902 = vmatpush.bf16.msra.mxu2 %v3469_v37  ;;  %v2810_v59 = vld [vmem:[%s6134_s7] sm:$0x3]  ;;  %v3651_v37 = vld [vmem:[%s6135_s8 + $0x48] sm:$0xff] }
 0x221   : > { %v2892_v57 = vperm.slane %v2810_v59, 0  ;;  %v2893_v52 = vperm.slane %v2810_v59, 1 }
 0x224   : > { %2912 = vmatpush.bf16.msra.mxu3 %v3497_v13 }
 0x228   : > { %2913 = vmatpush.bf16.msra.mxu3 %v3489_v19 }
 0x22c   : > { %2914 = vmatpush.bf16.msra.mxu3 %v3481_v38 }
 0x235   : > { %v2756_v4 = vpop.f32.mrf.mxu2 }
 0x236   : > { %v2757_v2 = vadd.f32 %v2756_v4, %v2650_v12  ;;  %v3628_v4 = vld [vmem:[%s6133_s6 + $0x14] sm:$0xf]  ;;  %v3461_v12 = vor.u32 %v3627_v51, %v3460_v26  ;;  %v3642_v26 = vld [vmem:[%s6135_s8] sm:$0xff] }
 0x237   : > { %v3650_v51 = vld [vmem:[%s6135_s8 + $0x40] sm:$0xff] }
 0x238   : > { %2903 = vmatpush.bf16.msra.mxu2 %v3461_v12 }
 0x23d   : > { %v2758_v56 = vpop.f32.mrf.mxu2 }
 0x23e   : > { %v3470_v56 = vld [vmem:[%s6133_s6 + $0x18] sm:$0xf0] }
 0x23f   : > { %v3473_v60 = vor.u32 %v3628_v4, %v3470_v56  ;;  %v3643_v56 = vld [vmem:[%s6135_s8 + $0x8] sm:$0xff] }
 0x241   : > { %2915 = vmatpush.bf16.msra.mxu3 %v3473_v60 }
 0x245   : > { %2916 = vmatpush.bf16.msra.mxu3 %v3465_v29 }
 0x29c   : > { %v2769_v39 = vpop.f32.mrf.mxu3 }
 0x29d   : > { %v5975_v48 = vadd.f32 %v2769_v39, %v2757_v2 }
 0x29f   : > { %v3457_v7 = vmul.f32 -1.442695, %v5975_v48 }
 0x2a1   : > { %3838 = vpow2.f32 %v3457_v7 }
 0x2a4   : > { %v2771_v46 = vpop.f32.mrf.mxu3 }
 0x2a7   : > { %v3839_v25 = vpop.eup %3838 }
 0x2a8   : > { %v2776_v30 = vadd.f32 1.0, %v3839_v25 }
 0x2aa   : > { %3840 = vrcp.f32 %v2776_v30  ;;  %v2788_v58 = vand.u32 2147483648, %v2776_v30  ;;  %v2786_v36 = vand.u32 2147483647, %v2776_v30  ;;  %vm2782_vm2 = vweird.f32 %v2776_v30 }
 0x2ac   : > { %v2789_v20 = vor.u32 1.1754944e-38, %v2788_v58  ;;  %vm2787_vm9 = vcmp.eq.f32.partialorder %v2786_v36, 8.507059e+37 }
 0x2b0   : > { %v3841_v43 = vpop.eup %3840 }
 0x2b1   : > { %v2778_v40 = vmul.f32 %v3841_v43, %v2776_v30  ;;  %vm2783_vm4 = vweird.f32 %v3841_v43  ;;  %v3652_v30 = vld [vmem:[%s6135_s8 + $0x50] sm:$0xff] }
 0x2b2   : > { %vm2784_vm3 = vmor %vm2782_vm2, %vm2783_vm4  ;;  %3152 = vmatpush.bf16.msrb.mxu1 %v3652_v30 }
 0x2b3   : > { %v2779_v54 = vsub.f32 1.0, %v2778_v40 }
 0x2b5   : > { %v2780_v2 = vmul.f32 %v3841_v43, %v2779_v54 }
 0x2b6   : > { %3153 = vmatpush.bf16.msrb.mxu1 %v3651_v37 }
 0x2b7   : > { %v2781_v33 = vadd.f32 %v3841_v43, %v2780_v2 }
 0x2b9   : > { %v2785_v41 = vsel %vm2784_vm3, %v3841_v43, %v2781_v33 }
 0x2ba   : > { %v2790_v39 = vsel %vm2787_vm9, %v2789_v20, %v2785_v41  ;;  %3154 = vmatpush.bf16.msrb.mxu1 %v3650_v51  ;;  %v365_v51 = vld [vmem:[%s4035_s28 + $0x8] sm:$0xff]  }
 0x2bb   : > { %v2792_v47 = vmul.f32 %v2790_v39, %v5975_v48  ;;  %v3648_v48 = vld [vmem:[%s6135_s8 + $0x30] sm:$0xff] }
 0x2bc   : > { %3119 = vmatpush.bf16.msrb.mxu0 %v3648_v48 }
 0x2bd   : > { %v2793_v1 = vpack.c.bf16 %v2792_v47, %v2792_v47 }
 0x2bf   : > { %2904 = vmatmul.bf16.vlgmr.msra.gmra.mxu2 %v2793_v1  ;;  %2917 = vmatmul.bf16.vlgmr.msra.gmra.mxu3 %v2793_v1 }
 0x2c0   : > { %3120 = vmatpush.bf16.msrb.mxu0 %v3647_v10 }
 0x2c4   : > { %3121 = vmatpush.bf16.msrb.mxu0 %v3646_v15 }
 0x2c8   : > { %3122 = vmatpush.bf16.msrb.mxu0 %v3645_v6 }
 0x2cc   : > { %3123 = vmatpush.bf16.msrb.mxu0 %v3644_v45 }
 0x2d0   : > { %3124 = vmatpush.bf16.msrb.mxu0 %v3643_v56 }
 0x2d4   : > { %3125 = vmatpush.bf16.msrb.mxu0 %v3642_v26 }
 0x342   : > { %v2905_v7 = vpop.f32.mrf.mxu2  ;;  %v2918_v13 = vpop.f32.mrf.mxu3 }
 0x343   : > { %v2906_v28 = vadd.f32 %v2905_v7, %v2892_v57  ;;  %v2919_v32 = vadd.f32 %v2918_v13, %v2893_v52 }
 0x345   : > { %v3522_v49 = vmul.f32 -1.442695, %v2906_v28  ;;  %v3523_v19 = vmul.f32 -1.442695, %v2919_v32 }
 0x347   : > { %3842 = vpow2.f32 %v3522_v49 }
 0x348   : > { %3844 = vpow2.f32 %v3523_v19 }
 0x34a   : > { %v2907_v46 = vpop.f32.mrf.mxu2  ;;  %v2920_v8 = vpop.f32.mrf.mxu3 }
 0x34d   : > { %v3843_v25 = vpop.eup %3842 }
 0x34e   : > { %v3845_v38 = vpop.eup %3844  ;;  %v2928_v35 = vadd.f32 1.0, %v3843_v25  ;;  %v363_v25 = vld [vmem:[%s4035_s28] sm:$0xff]  }
 0x34f   : > { %v2929_v4 = vadd.f32 1.0, %v3845_v38  ;;  %v3176_v38 = vunpack.c.l.bf16 %v363_v25 }
 0x350   : > { %3846 = vrcp.f32 %v2928_v35  ;;  %v2941_v43 = vand.u32 2147483648, %v2928_v35  ;;  %v2939_v58 = vand.u32 2147483647, %v2928_v35  ;;  %vm2935_vm10 = vweird.f32 %v2928_v35 }
 0x351   : > { %3848 = vrcp.f32 %v2929_v4  ;;  %v2956_v2 = vand.u32 2147483648, %v2929_v4  ;;  %v2954_v33 = vand.u32 2147483647, %v2929_v4  ;;  %vm2950_vm13 = vweird.f32 %v2929_v4 }
 0x352   : > { %v2942_v41 = vor.u32 1.1754944e-38, %v2941_v43  ;;  %vm2940_vm15 = vcmp.eq.f32.partialorder %v2939_v58, 8.507059e+37 }
 0x353   : > { %v2957_v1 = vor.u32 1.1754944e-38, %v2956_v2  ;;  %vm2955_vm1 = vcmp.eq.f32.partialorder %v2954_v33, 8.507059e+37 }
 0x356   : > { %v3847_v60 = vpop.eup %3846 }
 0x357   : > { %v3849_v21 = vpop.eup %3848  ;;  %v2931_v61 = vmul.f32 %v3847_v60, %v2928_v35  ;;  %vm2936_vm7 = vweird.f32 %v3847_v60 }
 0x358   : > { %v2946_v12 = vmul.f32 %v3849_v21, %v2929_v4  ;;  %vm2951_vm14 = vweird.f32 %v3849_v21  ;;  %vm2937_vm11 = vmor %vm2935_vm10, %vm2936_vm7 }
 0x359   : > { %v2932_v29 = vsub.f32 1.0, %v2931_v61  ;;  %vm2952_vm0 = vmor %vm2950_vm13, %vm2951_vm14 }
 0x35a   : > { %v2947_v40 = vsub.f32 1.0, %v2946_v12  ;;  %v3178_v12 = vunpack.c.l.bf16 %v365_v51 }
 0x35b   : > { %v2933_v54 = vmul.f32 %v3847_v60, %v2932_v29 }
 0x35c   : > { %v2948_v36 = vmul.f32 %v3849_v21, %v2947_v40  ;;  %v3179_v40 = vunpack.c.h.bf16 %v365_v51 }
 0x35d   : > { %v2934_v20 = vadd.f32 %v3847_v60, %v2933_v54 }
 0x35e   : > { %v2949_v39 = vadd.f32 %v3849_v21, %v2948_v36 }
 0x35f   : > { %v2938_v47 = vsel %vm2937_vm11, %v3847_v60, %v2934_v20 }
 0x360   : > { %v2943_v59 = vsel %vm2940_vm15, %v2942_v41, %v2938_v47  ;;  %v2953_v5 = vsel %vm2952_vm0, %v3849_v21, %v2949_v39  ;;  %v367_v39 = vld [vmem:[%s4035_s28 + $0x10] sm:$0xff]  }
 0x361   : > { %v2960_v42 = vperm.slane %v2943_v59, 0  ;;  %v2958_v57 = vsel %vm2955_vm1, %v2957_v1, %v2953_v5  ;;  %v3180_v59 = vunpack.c.l.bf16 %v367_v39 }
 0x362   : > { %v2961_v52 = vperm.slane %v2958_v57, 0  ;;  %v3181_v57 = vunpack.c.h.bf16 %v367_v39 }
 0x363   : > { %v2962_v48 = vmul.f32 %v2960_v42, %v5468_v62  ;;  %v2964_v50 = vmul.f32 %v2960_v42, %v5471_v22  ;;  %v2966_v28 = vmul.f32 %v2960_v42, %v5481_v27  ;;  %v2968_v32 = vmul.f32 %v2960_v42, %v5484_v11 }
 0x364   : > { %v2963_v7 = vmul.f32 %v2961_v52, %v5887_v55  ;;  %v2965_v13 = vmul.f32 %v2961_v52, %v5890_v17  ;;  %v2967_v49 = vmul.f32 %v2961_v52, %v5902_v63  ;;  %v2969_v19 = vmul.f32 %v2961_v52, %v5908_v3 }
 0x365   : > { %v2978_v10 = vpack.c.bf16 %v2964_v50, %v2962_v48  ;;  %v2980_v15 = vpack.c.bf16 %v2968_v32, %v2966_v28  ;;  %v2970_v22 = vmul.f32 %v2960_v42, %v5490_v53  ;;  %v2972_v55 = vmul.f32 %v2960_v42, %v5506_v0  ;;  %v369_v28 = vld [vmem:[%s4035_s28 + $0x18] sm:$0xff]  }
 0x366   : > { %v2979_v9 = vpack.c.bf16 %v2965_v13, %v2963_v7  ;;  %v2981_v62 = vpack.c.bf16 %v2969_v19, %v2967_v49  ;;  %v2971_v17 = vmul.f32 %v2961_v52, %v5914_v44  ;;  %v2973_v16 = vmul.f32 %v2961_v52, %v5922_v14  ;;  %v3707_v44 = vld [vmem:[%s6136_s9] ss:$0 sm:$0xff] }
 0x367   : > { %3126 = vmatmul.bf16.vlgmr.msrb.gmra.mxu0 %v2978_v10  ;;  %v2982_v46 = vpack.c.bf16 %v2972_v55, %v2970_v22  ;;  %v2974_v11 = vmul.f32 %v2960_v42, %v5523_v31  ;;  %v2976_v63 = vmul.f32 %v2960_v42, %v5558_v23  ;;  %v2975_v3 = vmul.f32 %v2961_v52, %v5927_v34 }
 0x368   : > { %3155 = vmatmul.bf16.vlgmr.msrb.gmra.mxu1 %v2979_v9  ;;  %v2983_v27 = vpack.c.bf16 %v2973_v16, %v2971_v17  ;;  %v2977_v8 = vmul.f32 %v2961_v52, %v5932_v18  ;;  %v3177_v18 = vunpack.c.h.bf16 %v363_v25  ;;  %v3182_v19 = vunpack.c.l.bf16 %v369_v28 }
 0x369   : > { %v2984_v53 = vpack.c.bf16 %v2976_v63, %v2974_v11 }
 0x36a   : > { %v2985_v6 = vpack.c.bf16 %v2977_v8, %v2975_v3 }
 0x377   : > { %3131 = vmatmul.bf16.gmra.mxu0 %v2980_v15 }
 0x378   : > { %3160 = vmatmul.bf16.gmra.mxu1 %v2981_v62  ;;  %v3183_v62 = vunpack.c.h.bf16 %v369_v28 }
 0x387   : > { %3136 = vmatmul.bf16.gmra.mxu0 %v2982_v46 }
 0x388   : > { %3165 = vmatmul.bf16.gmra.mxu1 %v2983_v27 }
 0x397   : > { %3141 = vmatmul.bf16.gmra.mxu0 %v2984_v53 }
 0x398   : > { %3170 = vmatmul.bf16.gmra.mxu1 %v2985_v6 }
 0x3e4   : > { %v3127_v0 = vpop.f32.mrf.mxu0 }
 0x3e5   : > { %v3156_v14 = vpop.f32.mrf.mxu1  ;;  %v3128_v24 = vadd.f32 %v3707_v44, %v3127_v0 }
 0x3e7   : > { %v3157_v23 = vadd.f32 %v3156_v14, %v3128_v24 }
 0x3e9   : > { %v3184_v30 = vadd.f32 %v3176_v38, %v3157_v23 }
 0x3ec   : > { %v3129_v31 = vpop.f32.mrf.mxu0 }
 0x3ed   : > { %v3130_v34 = vadd.f32 %v3707_v44, %v3129_v31  ;;  %v3158_v35 = vpop.f32.mrf.mxu1 }
 0x3ef   : > { %v3159_v45 = vadd.f32 %v3158_v35, %v3130_v34 }
 0x3f1   : > { %v3185_v4 = vadd.f32 %v3177_v18, %v3159_v45 }
 0x3f3   : > { %v3661_v56 = vpack.c.bf16 %v3185_v4, %v3184_v30 }
 0x3f4   : > { %v3132_v37 = vpop.f32.mrf.mxu0 }
 0x3f5   : > { %3662 = vst [vmem:[%s6115_s11] sm:$0xff] %v3661_v56   ;;  %v3161_v60 = vpop.f32.mrf.mxu1  ;;  %v3133_v26 = vadd.f32 %v3707_v44, %v3132_v37 }
 0x3f7   : > { %v3162_v61 = vadd.f32 %v3161_v60, %v3133_v26 }
 0x3f9   : > { %v3186_v58 = vadd.f32 %v3178_v12, %v3162_v61 }
 0x3fc   : > { %v3134_v21 = vpop.f32.mrf.mxu0 }
 0x3fd   : > { %v3135_v29 = vadd.f32 %v3707_v44, %v3134_v21  ;;  %v3163_v43 = vpop.f32.mrf.mxu1 }
 0x3ff   : > { %v3164_v54 = vadd.f32 %v3163_v43, %v3135_v29 }
 0x401   : > { %v3187_v2 = vadd.f32 %v3179_v40, %v3164_v54 }
 0x403   : > { %v3666_v36 = vpack.c.bf16 %v3187_v2, %v3186_v58 }
 0x404   : > { %v3137_v33 = vpop.f32.mrf.mxu0 }
 0x405   : > { %3678 = vst [vmem:[%s6115_s11 + $0x8] sm:$0xff] %v3666_v36   ;;  %v3166_v20 = vpop.f32.mrf.mxu1  ;;  %v3138_v41 = vadd.f32 %v3707_v44, %v3137_v33 }
 0x407   : > { %v3167_v1 = vadd.f32 %v3166_v20, %v3138_v41 }
 0x409   : > { %v3188_v48 = vadd.f32 %v3180_v59, %v3167_v1 }
 0x40c   : > { %v3139_v47 = vpop.f32.mrf.mxu0 }
 0x40d   : > { %v3140_v5 = vadd.f32 %v3707_v44, %v3139_v47  ;;  %v3168_v42 = vpop.f32.mrf.mxu1 }
 0x40f   : > { %v3169_v52 = vadd.f32 %v3168_v42, %v3140_v5 }
 0x411   : > { %v3189_v50 = vadd.f32 %v3181_v57, %v3169_v52 }
 0x413   : > { %v3671_v7 = vpack.c.bf16 %v3189_v50, %v3188_v48 }
 0x414   : > { %v3142_v13 = vpop.f32.mrf.mxu0 }
 0x415   : > { %3679 = vst [vmem:[%s6115_s11 + $0x10] sm:$0xff] %v3671_v7   ;;  %v3171_v10 = vpop.f32.mrf.mxu1  ;;  %v3143_v9 = vadd.f32 %v3707_v44, %v3142_v13 }
 0x417   : > { %v3172_v49 = vadd.f32 %v3171_v10, %v3143_v9 }
 0x419   : > { %v3190_v17 = vadd.f32 %v3182_v19, %v3172_v49 }
 0x41c   : > { %v3144_v32 = vpop.f32.mrf.mxu0 }
 0x41d   : > { %v3145_v15 = vadd.f32 %v3707_v44, %v3144_v32  ;;  %v3173_v22 = vpop.f32.mrf.mxu1 }
 0x41f   : > { %v3174_v55 = vadd.f32 %v3173_v22, %v3145_v15 }
 0x421   : > { %v3191_v16 = vadd.f32 %v3183_v62, %v3174_v55 }
 0x423   : > { %v3676_v46 = vpack.c.bf16 %v3191_v16, %v3190_v17 }
 0x425   : > { %3680 = vst [vmem:[%s6115_s11 + $0x18] sm:$0xff] %v3676_v46  }
 0x426 PF: > { %s20_s13 = sadd.s32 1, %s3862_s13  }
 0x427   : > { %p17_p4 = scmp.ge.s32.totalorder %s20_s13, 4  }
 0x429   :  { %19 = sbr.rel (!%p17_p4) target bundleno = 1 (0x1), region = 100 }

</bundles_post_ra>
